<compile_context>
chip_gen: v6e
topology: v6e:2x2x1
jax: 0.10.0
libtpu: 0.0.40
codegen_flags: <defaults>
</compile_context>

<pallas_src>
import functools

import jax
import jax.numpy as jnp
from jax import lax
from jax.experimental import pallas as pl
from jax.experimental.pallas import tpu as pltpu

_LN_EPS = 1e-5


def _round_up(x, m):
    return ((x + m - 1) // m) * m


def _lane_mask(hp, h_real):
    lane = lax.broadcasted_iota(jnp.int32, (1, hp), 1)
    return (lane < h_real).astype(jnp.float32)


def _masked_layernorm(x, w, b, h_real, hmask):
    # PyTorch LayerNorm over the (padded) last dim.  Padded lanes of `x` are
    # exactly zero, so sums over Hp equal sums over the true H; the lane mask
    # keeps (x - mu) from leaking into the variance on padded lanes, and the
    # zero-padded w/b keep padded output lanes at exactly zero.
    inv_h = 1.0 / h_real
    mu = jnp.sum(x, axis=-1, keepdims=True) * inv_h
    centered = (x - mu) * hmask
    var = jnp.sum(centered * centered, axis=-1, keepdims=True) * inv_h
    return centered * lax.rsqrt(var + _LN_EPS) * w + b


def _kproj_kernel(h_real, compute_dtype,
                  x_conf_ref, phi2_w_ref, phi2_b_ref, w2_ref, k_ref):
    """k = attention_2(phi2(x_conf)) for one row tile (hoisted out of the attention loop)."""
    hp = x_conf_ref.shape[-1]
    hmask = _lane_mask(hp, h_real)
    xc = x_conf_ref[...].astype(jnp.float32)
    kin = _masked_layernorm(xc, phi2_w_ref[...], phi2_b_ref[...], h_real, hmask)
    # y = x @ W^T with W stored (out, in): contract dim 1 of both operands.
    k = lax.dot_general(kin.astype(compute_dtype), w2_ref[...],
                        (((1,), (1,)), ((), ())),
                        preferred_element_type=jnp.float32)
    k_ref[...] = k.astype(k_ref.dtype)


def _cross_attention_kernel(h_real, compute_dtype,
                            x_mole_ref, bcol_ref, brow_ref, x_conf_ref, k_ref,
                            phi1_w_ref, phi1_b_ref, w1_ref,
                            rho1_w_ref, rho1_b_ref, rho2_w_ref, rho2_b_ref,
                            rho_ln_w_ref, rho_ln_b_ref,
                            x_enc_ref, attn_ref):
    hp = x_mole_ref.shape[-1]
    hmask = _lane_mask(hp, h_real)

    # q = attention_1(phi1(x_mole)) for this query tile.
    xm = x_mole_ref[...].astype(jnp.float32)
    q_in = _masked_layernorm(xm, phi1_w_ref[...], phi1_b_ref[...], h_real, hmask)
    q = lax.dot_general(q_in.astype(compute_dtype), w1_ref[...],
                        (((1,), (1,)), ((), ())),
                        preferred_element_type=jnp.float32)

    # logits = q @ k^T (k precomputed once by _kproj_kernel, VMEM-resident).
    dot = lax.dot_general(q.astype(compute_dtype), k_ref[...],
                          (((1,), (1,)), ((), ())),
                          preferred_element_type=jnp.float32)

    # group mask: batch[:, None] == batch[None, :]
    mask = (bcol_ref[...] == brow_ref[...]).astype(jnp.float32)      # (TQ, Np)

    # Softmax faithful to the reference (stabilizer is max(dot * mask)):
    #   reuse dm = dot*mask, one per-row reciprocal instead of an NxN divide.
    dm = dot * mask
    max_v = jnp.max(dm, axis=1, keepdims=True)
    e = jnp.exp(dm - max_v * mask)           # == exp((dot - max_v) * mask)
    em = e * mask
    denom = jnp.sum(em, axis=1, keepdims=True)
    inv = 1.0 / denom                        # exact, (TQ, 1)
    attn = em * inv
    attn_ref[...] = attn.astype(attn_ref.dtype)

    # x_weighted = attn @ x_conf
    xw = jnp.dot(attn.astype(compute_dtype), x_conf_ref[...],
                 preferred_element_type=jnp.float32)

    # rho: Linear -> SiLU -> Linear -> SiLU -> LayerNorm (elementwise in f32)
    h = lax.dot_general(xw.astype(compute_dtype), rho1_w_ref[...],
                        (((1,), (1,)), ((), ())),
                        preferred_element_type=jnp.float32) + rho1_b_ref[...]
    h = h * jax.nn.sigmoid(h)
    h = lax.dot_general(h.astype(compute_dtype), rho2_w_ref[...],
                        (((1,), (1,)), ((), ())),
                        preferred_element_type=jnp.float32) + rho2_b_ref[...]
    h = h * jax.nn.sigmoid(h)
    x_enc_ref[...] = _masked_layernorm(
        h, rho_ln_w_ref[...], rho_ln_b_ref[...], h_real, hmask
    ).astype(x_enc_ref.dtype)


def _vmem_budget_bytes():
    try:
        kind = jax.devices()[0].device_kind.lower()
    except Exception:
        kind = ""
    # v5e / v6e: 128 MiB VMEM; v7x (and unknown): be conservative, 64 MiB.
    cap = 128 * 1024 * 1024 if ("v5" in kind or "v6" in kind) else 64 * 1024 * 1024
    return int(cap * 0.70)   # headroom for Mosaic internal scratch / padding


def _choose_tq(np_min, hp, cd_itemsize, budget):
    # VMEM-resident set (constant index_map blocks; x2 is a conservative
    # allowance for the pipeline's buffering).
    resident = 2 * (3 * hp * hp * cd_itemsize        # w1, rho1_w, rho2_w
                    + 2 * np_min * hp * cd_itemsize  # x_conf, k
                    + np_min * 4                     # batch row
                    + 8 * hp * 4)                    # LN weights / biases
    for tq in (512, 256, 128, 64, 32, 16, 8):
        if tq > np_min:
            continue
        per_tile = (2 * (tq * hp * 4          # x_mole block (double-buffered)
                         + tq * 128 * 4       # batch-col block (lane-padded)
                         + tq * hp * 4        # x_enc block
                         + tq * np_min * 4)   # attn block
                    + 4 * tq * np_min * 4     # f32 logits / softmax temporaries
                    + 4 * tq * hp * 4)        # f32 q / xw / h temporaries
        if resident + per_tile <= budget:
            return tq
    return 8


@functools.partial(jax.jit, static_argnames=("compute_dtype",))
def cross_attention(x_mole, x_conf, batch, params, *, compute_dtype=jnp.bfloat16):
    N, H = x_mole.shape
    budget = _vmem_budget_bytes()
    cd = jnp.dtype(compute_dtype)
    f32 = jnp.float32

    Hp = _round_up(H, 128)                       # lane-dense hidden dim
    np_min = _round_up(N, 128)                   # lane-dense attn columns
    TQ = _choose_tq(np_min, Hp, cd.itemsize, budget)
    Np = _round_up(N, max(TQ, 128))              # multiple of both TQ and 128
    grid = (Np // TQ,)

    pad2 = lambda a, r, c: jnp.pad(a.astype(f32),
                                   ((0, r - a.shape[0]), (0, c - a.shape[1])))
    row = lambda v: jnp.pad(v.astype(f32), (0, Hp - v.shape[0])).reshape(1, Hp)

    xm_p = pad2(x_mole, Np, Hp)
    xc_p = pad2(x_conf, Np, Hp)

    # Padded rows get unique group ids: they only attend to themselves (finite,
    # sliced away afterwards) and real rows never see them.
    batch = batch.astype(jnp.int32)
    if Np > N:
        pad_ids = jnp.max(batch) + 1 + jnp.arange(Np - N, dtype=jnp.int32)
        batch_p = jnp.concatenate([batch, pad_ids])
    else:
        batch_p = batch
    bcol = batch_p.reshape(Np, 1)
    brow = batch_p.reshape(1, Np)

    # Weights stay in their native (out, in) orientation; MXU operands are cast
    # once to the compute dtype (bf16 halves their VMEM residency).
    w1 = pad2(params["w1"], Hp, Hp).astype(cd)
    w2 = pad2(params["w2"], Hp, Hp).astype(cd)
    rho1_w = pad2(params["rho1_w"], Hp, Hp).astype(cd)
    rho2_w = pad2(params["rho2_w"], Hp, Hp).astype(cd)

    cparams = pltpu.CompilerParams(
        dimension_semantics=("parallel",),       # shard query tiles across TCs (v7x)
        vmem_limit_bytes=budget,
    )
    const = lambda i: (0, 0)
    tile_row = lambda i: (i, 0)

    # --- k = attention_2(phi2(x_conf)), computed once -------------------------
    k = pl.pallas_call(
        functools.partial(_kproj_kernel, H, compute_dtype),
        out_shape=jax.ShapeDtypeStruct((Np, Hp), cd),
        grid=grid,
        in_specs=[
            pl.BlockSpec((TQ, Hp), tile_row),    # x_conf tile
            pl.BlockSpec((1, Hp), const),        # phi2 weight
            pl.BlockSpec((1, Hp), const),        # phi2 bias
            pl.BlockSpec((Hp, Hp), const),       # attention_2 weight
        ],
        out_specs=pl.BlockSpec((TQ, Hp), tile_row),
        compiler_params=cparams,
    )(xc_p, row(params["phi2_w"]), row(params["phi2_b"]), w2)

    # --- main cross-attention, tiled over query rows ---------------------------
    x_enc_p, attn_p = pl.pallas_call(
        functools.partial(_cross_attention_kernel, H, compute_dtype),
        out_shape=(
            jax.ShapeDtypeStruct((Np, Hp), f32),
            jax.ShapeDtypeStruct((Np, Np), f32),
        ),
        grid=grid,
        in_specs=[
            pl.BlockSpec((TQ, Hp), tile_row),    # x_mole tile
            pl.BlockSpec((TQ, 1), tile_row),     # batch (query column) tile
            pl.BlockSpec((1, Np), const),        # batch (key row), resident
            pl.BlockSpec((Np, Hp), const),       # x_conf, resident
            pl.BlockSpec((Np, Hp), const),       # k, resident
            pl.BlockSpec((1, Hp), const),        # phi1 weight
            pl.BlockSpec((1, Hp), const),        # phi1 bias
            pl.BlockSpec((Hp, Hp), const),       # attention_1 weight
            pl.BlockSpec((Hp, Hp), const),       # rho Linear 1 weight
            pl.BlockSpec((1, Hp), const),        # rho Linear 1 bias
            pl.BlockSpec((Hp, Hp), const),       # rho Linear 2 weight
            pl.BlockSpec((1, Hp), const),        # rho Linear 2 bias
            pl.BlockSpec((1, Hp), const),        # rho LayerNorm weight
            pl.BlockSpec((1, Hp), const),        # rho LayerNorm bias
        ],
        out_specs=(
            pl.BlockSpec((TQ, Hp), tile_row),
            pl.BlockSpec((TQ, Np), tile_row),
        ),
        compiler_params=cparams,
    )(
        xm_p, bcol, brow, xc_p.astype(cd), k,
        row(params["phi1_w"]), row(params["phi1_b"]), w1,
        rho1_w, row(params["rho1_b"]), rho2_w, row(params["rho2_b"]),
        row(params["rho_ln_w"]), row(params["rho_ln_b"]),
    )

    return x_enc_p[:N, :H], attn_p[:N, :N]
    # TODO(synk): for very large N, add a second (arbitrary) key-tile grid axis
    # with a flash-style online masked softmax so per-step VMEM is TQ*TK, not TQ*N.


def init_params(key, hidden_dim):
    ks = jax.random.split(key, 6)
    s = 1.0 / jnp.sqrt(hidden_dim)
    H = hidden_dim
    return {
        # attention_1 / attention_2: Linear(H, H, bias=False), weight shape (out, in)
        "w1": jax.random.uniform(ks[0], (H, H), jnp.float32, -s, s),
        "w2": jax.random.uniform(ks[1], (H, H), jnp.float32, -s, s),
        # phi1 / phi2: LayerNorm(H)
        "phi1_w": jnp.ones((H,), jnp.float32),
        "phi1_b": jnp.zeros((H,), jnp.float32),
        "phi2_w": jnp.ones((H,), jnp.float32),
        "phi2_b": jnp.zeros((H,), jnp.float32),
        # rho: Linear(H,H)+b, SiLU, Linear(H,H)+b, SiLU, LayerNorm(H)
        "rho1_w": jax.random.uniform(ks[2], (H, H), jnp.float32, -s, s),
        "rho1_b": jax.random.uniform(ks[3], (H,), jnp.float32, -s, s),
        "rho2_w": jax.random.uniform(ks[4], (H, H), jnp.float32, -s, s),
        "rho2_b": jax.random.uniform(ks[5], (H,), jnp.float32, -s, s),
        "rho_ln_w": jnp.ones((H,), jnp.float32),
        "rho_ln_b": jnp.zeros((H,), jnp.float32),
    }


def reference(x_mole, x_conf, batch, p):
    # Pure-JAX reference mirroring the PyTorch forward exactly.
    def ln(x, w, b, eps=1e-5):
        mu = x.mean(-1, keepdims=True)
        var = ((x - mu) ** 2).mean(-1, keepdims=True)
        return (x - mu) / jnp.sqrt(var + eps) * w + b

    q = ln(x_mole, p["phi1_w"], p["phi1_b"]) @ p["w1"].T
    k = ln(x_conf, p["phi2_w"], p["phi2_b"]) @ p["w2"].T
    dot = q @ k.T
    mask = (batch[:, None] == batch[None, :]).astype(jnp.float32)
    max_v = (dot * mask).max(axis=1, keepdims=True)
    masked = (dot - max_v) * mask
    e = jnp.exp(masked)
    aw = e / (e * mask).sum(axis=1, keepdims=True)
    aw = aw * mask
    xw = aw @ x_conf
    h = xw @ p["rho1_w"].T + p["rho1_b"]
    h = h * jax.nn.sigmoid(h)
    h = h @ p["rho2_w"].T + p["rho2_b"]
    h = h * jax.nn.sigmoid(h)
    return ln(h, p["rho_ln_w"], p["rho_ln_b"]), aw


if __name__ == "__main__":
    N, H = 8, 32
    key = jax.random.PRNGKey(0)
    k_xm, k_xc, k_p = jax.random.split(key, 3)

    x_mole = jax.random.normal(k_xm, (N, H), jnp.float32)
    x_conf = jax.random.normal(k_xc, (N, H), jnp.float32)
    batch = jnp.array([0, 0, 0, 1, 1, 2, 2, 2], jnp.int32)
    params = init_params(k_p, H)

    x_enc_ref, attn_ref = reference(x_mole, x_conf, batch, params)

    # Exact path: f32 MXU operands -> tight tolerance vs the pure-JAX reference.
    x_enc32, attn32 = cross_attention(x_mole, x_conf, batch, params,
                                      compute_dtype=jnp.float32)
    jax.block_until_ready((x_enc32, attn32))
    assert jnp.allclose(x_enc32, x_enc_ref, atol=1e-4, rtol=1e-4), "x_encoded mismatch (f32)"
    assert jnp.allclose(attn32, attn_ref, atol=1e-5, rtol=1e-5), "attention mismatch (f32)"

    # Fast path: bf16 MXU operands with f32 accumulation (perf review) -> looser
    # sanity check; the strict correctness gate is the f32 path above.
    x_enc16, attn16 = cross_attention(x_mole, x_conf, batch, params,
                                      compute_dtype=jnp.bfloat16)
    jax.block_until_ready((x_enc16, attn16))
    assert jnp.allclose(x_enc16, x_enc_ref, atol=2e-1, rtol=2e-1), "x_encoded mismatch (bf16)"
    assert jnp.allclose(attn16, attn_ref, atol=2e-1, rtol=2e-1), "attention mismatch (bf16)"

    print("KERNEL_OK")
</pallas_src>

<mosaic_0001>
module attributes {stable_mosaic.version = 11 : i64} {
  func.func @_kproj_kernel(%arg0: i32, %arg1: memref<128x128xf32, #tpu.memory_space<vmem>>, %arg2: memref<1x128xf32, #tpu.memory_space<vmem>>, %arg3: memref<1x128xf32, #tpu.memory_space<vmem>>, %arg4: memref<128x128xf32, #tpu.memory_space<vmem>>, %arg5: memref<128x128xf32, #tpu.memory_space<vmem>>) attributes {dimension_semantics = [#tpu.dimension_semantics<parallel>], iteration_bounds = array<i64: 1>, scalar_prefetch = 0 : i64, scratch_operands = 0 : i64, tpu.core_type = #tpu.core_type<tc>, window_params = [{transform_indices = @transform_0, window_bounds = array<i64: 128, 128>}, {pipeline_mode = #tpu.pipeline_mode<synchronous>, transform_indices = @transform_1, window_bounds = array<i64: 1, 128>}, {pipeline_mode = #tpu.pipeline_mode<synchronous>, transform_indices = @transform_2, window_bounds = array<i64: 1, 128>}, {pipeline_mode = #tpu.pipeline_mode<synchronous>, transform_indices = @transform_3, window_bounds = array<i64: 128, 128>}, {transform_indices = @transform_4, window_bounds = array<i64: 128, 128>}]} {
    %0 = tpu.iota {dimensions = array<i32: 1>} : vector<1x128xi32>
    %c32_i32 = arith.constant 32 : i32
    %1 = vector.broadcast %c32_i32 : i32 to vector<1x128xi32>
    %2 = arith.cmpi slt, %0, %1 : vector<1x128xi32>
    %3 = arith.extui %2 : vector<1x128xi1> to vector<1x128xi32>
    %4 = arith.sitofp %3 : vector<1x128xi32> to vector<1x128xf32>
    %c0 = arith.constant 0 : index
    %c0_0 = arith.constant 0 : index
    %5 = vector.load %arg1[%c0, %c0_0] : memref<128x128xf32, #tpu.memory_space<vmem>>, vector<128x128xf32>
    %c0_1 = arith.constant 0 : index
    %c0_2 = arith.constant 0 : index
    %6 = vector.load %arg2[%c0_1, %c0_2] : memref<1x128xf32, #tpu.memory_space<vmem>>, vector<1x128xf32>
    %c0_3 = arith.constant 0 : index
    %c0_4 = arith.constant 0 : index
    %7 = vector.load %arg3[%c0_3, %c0_4] : memref<1x128xf32, #tpu.memory_space<vmem>>, vector<1x128xf32>
    %cst = arith.constant dense<0.000000e+00> : vector<128xf32>
    %8 = vector.multi_reduction <add>, %5, %cst [1] : vector<128x128xf32> to vector<128xf32>
    %9 = vector.shape_cast %8 : vector<128xf32> to vector<128x1xf32>
    %cst_5 = arith.constant 3.125000e-02 : f32
    %10 = vector.broadcast %cst_5 : f32 to vector<128x1xf32>
    %11 = arith.mulf %9, %10 : vector<128x1xf32>
    %12 = vector.broadcast %11 : vector<128x1xf32> to vector<128x128xf32>
    %13 = arith.subf %5, %12 : vector<128x128xf32>
    %14 = vector.broadcast %4 : vector<1x128xf32> to vector<128x128xf32>
    %15 = arith.mulf %13, %14 : vector<128x128xf32>
    %16 = arith.mulf %15, %15 : vector<128x128xf32>
    %cst_6 = arith.constant dense<0.000000e+00> : vector<128xf32>
    %17 = vector.multi_reduction <add>, %16, %cst_6 [1] : vector<128x128xf32> to vector<128xf32>
    %18 = vector.shape_cast %17 : vector<128xf32> to vector<128x1xf32>
    %cst_7 = arith.constant 3.125000e-02 : f32
    %19 = vector.broadcast %cst_7 : f32 to vector<128x1xf32>
    %20 = arith.mulf %18, %19 : vector<128x1xf32>
    %cst_8 = arith.constant 9.99999974E-6 : f32
    %21 = vector.broadcast %cst_8 : f32 to vector<128x1xf32>
    %22 = arith.addf %20, %21 : vector<128x1xf32>
    %23 = math.rsqrt %22 : vector<128x1xf32>
    %24 = vector.broadcast %23 : vector<128x1xf32> to vector<128x128xf32>
    %25 = arith.mulf %15, %24 : vector<128x128xf32>
    %26 = vector.broadcast %6 : vector<1x128xf32> to vector<128x128xf32>
    %27 = arith.mulf %25, %26 : vector<128x128xf32>
    %28 = vector.broadcast %7 : vector<1x128xf32> to vector<128x128xf32>
    %29 = arith.addf %27, %28 : vector<128x128xf32>
    %c0_9 = arith.constant 0 : index
    %c0_10 = arith.constant 0 : index
    %30 = vector.load %arg4[%c0_9, %c0_10] : memref<128x128xf32, #tpu.memory_space<vmem>>, vector<128x128xf32>
    %cst_11 = arith.constant dense<0.000000e+00> : vector<128x128xf32>
    %31 = tpu.matmul %29, %30, %cst_11 {dimension_numbers = #tpu.dot_dimension_numbers<[1], [1], [0], [0], [0, 0, 1, 0], [], []>} : vector<128x128xf32>, vector<128x128xf32>, vector<128x128xf32> -> vector<128x128xf32>
    %c0_12 = arith.constant 0 : index
    %c0_13 = arith.constant 0 : index
    %32 = vector.load %arg5[%c0_12, %c0_13] : memref<128x128xf32, #tpu.memory_space<vmem>>, vector<128x128xf32>
    tpu.vector_store %arg5[%c0_12, %c0_13], %31 {strides = array<i32>} : memref<128x128xf32, #tpu.memory_space<vmem>>, vector<128x128xf32>,
    return
  }
  func.func @transform_0(%arg0: i32) -> (i32, i32) {
    %c0_i32 = arith.constant 0 : i32
    %c0_i32_0 = arith.constant 0 : i32
    return %arg0, %c0_i32 : i32, i32
  }
  func.func @transform_1(%arg0: i32) -> (i32, i32) {
    %c0_i32 = arith.constant 0 : i32
    %c0_i32_0 = arith.constant 0 : i32
    %c0_i32_1 = arith.constant 0 : i32
    return %c0_i32, %c0_i32_0 : i32, i32
  }
  func.func @transform_2(%arg0: i32) -> (i32, i32) {
    %c0_i32 = arith.constant 0 : i32
    %c0_i32_0 = arith.constant 0 : i32
    %c0_i32_1 = arith.constant 0 : i32
    return %c0_i32, %c0_i32_0 : i32, i32
  }
  func.func @transform_3(%arg0: i32) -> (i32, i32) {
    %c0_i32 = arith.constant 0 : i32
    %c0_i32_0 = arith.constant 0 : i32
    %c0_i32_1 = arith.constant 0 : i32
    return %c0_i32, %c0_i32_0 : i32, i32
  }
  func.func @transform_4(%arg0: i32) -> (i32, i32) {
    %c0_i32 = arith.constant 0 : i32
    %c0_i32_0 = arith.constant 0 : i32
    return %arg0, %c0_i32 : i32, i32
  }
}

module attributes {stable_mosaic.version = 11 : i64} {
  func.func @_cross_attention_kernel(%arg0: i32, %arg1: memref<128x128xf32, #tpu.memory_space<vmem>>, %arg2: memref<128x1xi32, #tpu.memory_space<vmem>>, %arg3: memref<1x128xi32, #tpu.memory_space<vmem>>, %arg4: memref<128x128xf32, #tpu.memory_space<vmem>>, %arg5: memref<128x128xf32, #tpu.memory_space<vmem>>, %arg6: memref<1x128xf32, #tpu.memory_space<vmem>>, %arg7: memref<1x128xf32, #tpu.memory_space<vmem>>, %arg8: memref<128x128xf32, #tpu.memory_space<vmem>>, %arg9: memref<128x128xf32, #tpu.memory_space<vmem>>, %arg10: memref<1x128xf32, #tpu.memory_space<vmem>>, %arg11: memref<128x128xf32, #tpu.memory_space<vmem>>, %arg12: memref<1x128xf32, #tpu.memory_space<vmem>>, %arg13: memref<1x128xf32, #tpu.memory_space<vmem>>, %arg14: memref<1x128xf32, #tpu.memory_space<vmem>>, %arg15: memref<128x128xf32, #tpu.memory_space<vmem>>, %arg16: memref<128x128xf32, #tpu.memory_space<vmem>>) attributes {dimension_semantics = [#tpu.dimension_semantics<parallel>], iteration_bounds = array<i64: 1>, scalar_prefetch = 0 : i64, scratch_operands = 0 : i64, tpu.core_type = #tpu.core_type<tc>, window_params = [{transform_indices = @transform_0, window_bounds = array<i64: 128, 128>}, {transform_indices = @transform_1, window_bounds = array<i64: 128, 1>}, {pipeline_mode = #tpu.pipeline_mode<synchronous>, transform_indices = @transform_2, window_bounds = array<i64: 1, 128>}, {pipeline_mode = #tpu.pipeline_mode<synchronous>, transform_indices = @transform_3, window_bounds = array<i64: 128, 128>}, {pipeline_mode = #tpu.pipeline_mode<synchronous>, transform_indices = @transform_4, window_bounds = array<i64: 128, 128>}, {pipeline_mode = #tpu.pipeline_mode<synchronous>, transform_indices = @transform_5, window_bounds = array<i64: 1, 128>}, {pipeline_mode = #tpu.pipeline_mode<synchronous>, transform_indices = @transform_6, window_bounds = array<i64: 1, 128>}, {pipeline_mode = #tpu.pipeline_mode<synchronous>, transform_indices = @transform_7, window_bounds = array<i64: 128, 128>}, {pipeline_mode = #tpu.pipeline_mode<synchronous>, transform_indices = @transform_8, window_bounds = array<i64: 128, 128>}, {pipeline_mode = #tpu.pipeline_mode<synchronous>, transform_indices = @transform_9, window_bounds = array<i64: 1, 128>}, {pipeline_mode = #tpu.pipeline_mode<synchronous>, transform_indices = @transform_10, window_bounds = array<i64: 128, 128>}, {pipeline_mode = #tpu.pipeline_mode<synchronous>, transform_indices = @transform_11, window_bounds = array<i64: 1, 128>}, {pipeline_mode = #tpu.pipeline_mode<synchronous>, transform_indices = @transform_12, window_bounds = array<i64: 1, 128>}, {pipeline_mode = #tpu.pipeline_mode<synchronous>, transform_indices = @transform_13, window_bounds = array<i64: 1, 128>}, {transform_indices = @transform_14, window_bounds = array<i64: 128, 128>}, {transform_indices = @transform_15, window_bounds = array<i64: 128, 128>}]} {
    %0 = tpu.iota {dimensions = array<i32: 1>} : vector<1x128xi32>
    %c32_i32 = arith.constant 32 : i32
    %1 = vector.broadcast %c32_i32 : i32 to vector<1x128xi32>
    %2 = arith.cmpi slt, %0, %1 : vector<1x128xi32>
    %3 = arith.extui %2 : vector<1x128xi1> to vector<1x128xi32>
    %4 = arith.sitofp %3 : vector<1x128xi32> to vector<1x128xf32>
    %c0 = arith.constant 0 : index
    %c0_0 = arith.constant 0 : index
    %5 = vector.load %arg1[%c0, %c0_0] : memref<128x128xf32, #tpu.memory_space<vmem>>, vector<128x128xf32>
    %c0_1 = arith.constant 0 : index
    %c0_2 = arith.constant 0 : index
    %6 = vector.load %arg6[%c0_1, %c0_2] : memref<1x128xf32, #tpu.memory_space<vmem>>, vector<1x128xf32>
    %c0_3 = arith.constant 0 : index
    %c0_4 = arith.constant 0 : index
    %7 = vector.load %arg7[%c0_3, %c0_4] : memref<1x128xf32, #tpu.memory_space<vmem>>, vector<1x128xf32>
    %cst = arith.constant dense<0.000000e+00> : vector<128xf32>
    %8 = vector.multi_reduction <add>, %5, %cst [1] : vector<128x128xf32> to vector<128xf32>
    %9 = vector.shape_cast %8 : vector<128xf32> to vector<128x1xf32>
    %cst_5 = arith.constant 3.125000e-02 : f32
    %10 = vector.broadcast %cst_5 : f32 to vector<128x1xf32>
    %11 = arith.mulf %9, %10 : vector<128x1xf32>
    %12 = vector.broadcast %11 : vector<128x1xf32> to vector<128x128xf32>
    %13 = arith.subf %5, %12 : vector<128x128xf32>
    %14 = vector.broadcast %4 : vector<1x128xf32> to vector<128x128xf32>
    %15 = arith.mulf %13, %14 : vector<128x128xf32>
    %16 = arith.mulf %15, %15 : vector<128x128xf32>
    %cst_6 = arith.constant dense<0.000000e+00> : vector<128xf32>
    %17 = vector.multi_reduction <add>, %16, %cst_6 [1] : vector<128x128xf32> to vector<128xf32>
    %18 = vector.shape_cast %17 : vector<128xf32> to vector<128x1xf32>
    %cst_7 = arith.constant 3.125000e-02 : f32
    %19 = vector.broadcast %cst_7 : f32 to vector<128x1xf32>
    %20 = arith.mulf %18, %19 : vector<128x1xf32>
    %cst_8 = arith.constant 9.99999974E-6 : f32
    %21 = vector.broadcast %cst_8 : f32 to vector<128x1xf32>
    %22 = arith.addf %20, %21 : vector<128x1xf32>
    %23 = math.rsqrt %22 : vector<128x1xf32>
    %24 = vector.broadcast %23 : vector<128x1xf32> to vector<128x128xf32>
    %25 = arith.mulf %15, %24 : vector<128x128xf32>
    %26 = vector.broadcast %6 : vector<1x128xf32> to vector<128x128xf32>
    %27 = arith.mulf %25, %26 : vector<128x128xf32>
    %28 = vector.broadcast %7 : vector<1x128xf32> to vector<128x128xf32>
    %29 = arith.addf %27, %28 : vector<128x128xf32>
    %c0_9 = arith.constant 0 : index
    %c0_10 = arith.constant 0 : index
    %30 = vector.load %arg8[%c0_9, %c0_10] : memref<128x128xf32, #tpu.memory_space<vmem>>, vector<128x128xf32>
    %cst_11 = arith.constant dense<0.000000e+00> : vector<128x128xf32>
    %31 = tpu.matmul %29, %30, %cst_11 {dimension_numbers = #tpu.dot_dimension_numbers<[1], [1], [0], [0], [0, 0, 1, 0], [], []>} : vector<128x128xf32>, vector<128x128xf32>, vector<128x128xf32> -> vector<128x128xf32>
    %c0_12 = arith.constant 0 : index
    %c0_13 = arith.constant 0 : index
    %32 = vector.load %arg5[%c0_12, %c0_13] : memref<128x128xf32, #tpu.memory_space<vmem>>, vector<128x128xf32>
    %cst_14 = arith.constant dense<0.000000e+00> : vector<128x128xf32>
    %33 = tpu.matmul %31, %32, %cst_14 {dimension_numbers = #tpu.dot_dimension_numbers<[1], [1], [0], [0], [0, 0, 1, 0], [], []>} : vector<128x128xf32>, vector<128x128xf32>, vector<128x128xf32> -> vector<128x128xf32>
    %c0_15 = arith.constant 0 : index
    %c0_16 = arith.constant 0 : index
    %34 = vector.load %arg2[%c0_15, %c0_16] : memref<128x1xi32, #tpu.memory_space<vmem>>, vector<128x1xi32>
    %c0_17 = arith.constant 0 : index
    %c0_18 = arith.constant 0 : index
    %35 = vector.load %arg3[%c0_17, %c0_18] : memref<1x128xi32, #tpu.memory_space<vmem>>, vector<1x128xi32>
    %36 = vector.broadcast %34 : vector<128x1xi32> to vector<128x128xi32>
    %37 = vector.broadcast %35 : vector<1x128xi32> to vector<128x128xi32>
    %38 = arith.cmpi eq, %36, %37 : vector<128x128xi32>
    %39 = arith.extui %38 : vector<128x128xi1> to vector<128x128xi32>
    %40 = arith.sitofp %39 : vector<128x128xi32> to vector<128x128xf32>
    %41 = arith.mulf %33, %40 : vector<128x128xf32>
    %cst_19 = arith.constant dense<0xFF800000> : vector<128xf32>
    %42 = vector.multi_reduction <maximumf>, %41, %cst_19 [1] : vector<128x128xf32> to vector<128xf32>
    %43 = vector.shape_cast %42 : vector<128xf32> to vector<128x1xf32>
    %44 = vector.broadcast %43 : vector<128x1xf32> to vector<128x128xf32>
    %45 = arith.mulf %44, %40 : vector<128x128xf32>
    %46 = arith.subf %41, %45 : vector<128x128xf32>
    %47 = math.exp %46 : vector<128x128xf32>
    %48 = arith.mulf %47, %40 : vector<128x128xf32>
    %cst_20 = arith.constant dense<0.000000e+00> : vector<128xf32>
    %49 = vector.multi_reduction <add>, %48, %cst_20 [1] : vector<128x128xf32> to vector<128xf32>
    %50 = vector.shape_cast %49 : vector<128xf32> to vector<128x1xf32>
    %cst_21 = arith.constant 1.000000e+00 : f32
    %51 = vector.broadcast %cst_21 : f32 to vector<128x1xf32>
    %52 = arith.divf %51, %50 : vector<128x1xf32>
    %53 = vector.broadcast %52 : vector<128x1xf32> to vector<128x128xf32>
    %54 = arith.mulf %48, %53 : vector<128x128xf32>
    %c0_22 = arith.constant 0 : index
    %c0_23 = arith.constant 0 : index
    %55 = vector.load %arg16[%c0_22, %c0_23] : memref<128x128xf32, #tpu.memory_space<vmem>>, vector<128x128xf32>
    tpu.vector_store %arg16[%c0_22, %c0_23], %54 {strides = array<i32>} : memref<128x128xf32, #tpu.memory_space<vmem>>, vector<128x128xf32>,
    %c0_24 = arith.constant 0 : index
    %c0_25 = arith.constant 0 : index
    %56 = vector.load %arg4[%c0_24, %c0_25] : memref<128x128xf32, #tpu.memory_space<vmem>>, vector<128x128xf32>
    %cst_26 = arith.constant dense<0.000000e+00> : vector<128x128xf32>
    %57 = tpu.matmul %54, %56, %cst_26 {dimension_numbers = #tpu.dot_dimension_numbers<[1], [0], [0], [1], [0, 0, 1, 1], [], []>} : vector<128x128xf32>, vector<128x128xf32>, vector<128x128xf32> -> vector<128x128xf32>
    %c0_27 = arith.constant 0 : index
    %c0_28 = arith.constant 0 : index
    %58 = vector.load %arg9[%c0_27, %c0_28] : memref<128x128xf32, #tpu.memory_space<vmem>>, vector<128x128xf32>
    %cst_29 = arith.constant dense<0.000000e+00> : vector<128x128xf32>
    %59 = tpu.matmul %57, %58, %cst_29 {dimension_numbers = #tpu.dot_dimension_numbers<[1], [1], [0], [0], [0, 0, 1, 0], [], []>} : vector<128x128xf32>, vector<128x128xf32>, vector<128x128xf32> -> vector<128x128xf32>
    %c0_30 = arith.constant 0 : index
    %c0_31 = arith.constant 0 : index
    %60 = vector.load %arg10[%c0_30, %c0_31] : memref<1x128xf32, #tpu.memory_space<vmem>>, vector<1x128xf32>
    %61 = vector.broadcast %60 : vector<1x128xf32> to vector<128x128xf32>
    %62 = arith.addf %59, %61 : vector<128x128xf32>
    %63 = arith.negf %62 : vector<128x128xf32>
    %64 = math.exp %63 : vector<128x128xf32>
    %cst_32 = arith.constant 1.000000e+00 : f32
    %65 = vector.broadcast %cst_32 : f32 to vector<128x128xf32>
    %66 = arith.addf %65, %64 : vector<128x128xf32>
    %67 = arith.divf %65, %66 : vector<128x128xf32>
    %68 = arith.mulf %62, %67 : vector<128x128xf32>
    %c0_33 = arith.constant 0 : index
    %c0_34 = arith.constant 0 : index
    %69 = vector.load %arg11[%c0_33, %c0_34] : memref<128x128xf32, #tpu.memory_space<vmem>>, vector<128x128xf32>
    %cst_35 = arith.constant dense<0.000000e+00> : vector<128x128xf32>
    %70 = tpu.matmul %68, %69, %cst_35 {dimension_numbers = #tpu.dot_dimension_numbers<[1], [1], [0], [0], [0, 0, 1, 0], [], []>} : vector<128x128xf32>, vector<128x128xf32>, vector<128x128xf32> -> vector<128x128xf32>
    %c0_36 = arith.constant 0 : index
    %c0_37 = arith.constant 0 : index
    %71 = vector.load %arg12[%c0_36, %c0_37] : memref<1x128xf32, #tpu.memory_space<vmem>>, vector<1x128xf32>
    %72 = vector.broadcast %71 : vector<1x128xf32> to vector<128x128xf32>
    %73 = arith.addf %70, %72 : vector<128x128xf32>
    %74 = arith.negf %73 : vector<128x128xf32>
    %75 = math.exp %74 : vector<128x128xf32>
    %cst_38 = arith.constant 1.000000e+00 : f32
    %76 = vector.broadcast %cst_38 : f32 to vector<128x128xf32>
    %77 = arith.addf %76, %75 : vector<128x128xf32>
    %78 = arith.divf %76, %77 : vector<128x128xf32>
    %79 = arith.mulf %73, %78 : vector<128x128xf32>
    %c0_39 = arith.constant 0 : index
    %c0_40 = arith.constant 0 : index
    %80 = vector.load %arg13[%c0_39, %c0_40] : memref<1x128xf32, #tpu.memory_space<vmem>>, vector<1x128xf32>
    %c0_41 = arith.constant 0 : index
    %c0_42 = arith.constant 0 : index
    %81 = vector.load %arg14[%c0_41, %c0_42] : memref<1x128xf32, #tpu.memory_space<vmem>>, vector<1x128xf32>
    %cst_43 = arith.constant dense<0.000000e+00> : vector<128xf32>
    %82 = vector.multi_reduction <add>, %79, %cst_43 [1] : vector<128x128xf32> to vector<128xf32>
    %83 = vector.shape_cast %82 : vector<128xf32> to vector<128x1xf32>
    %cst_44 = arith.constant 3.125000e-02 : f32
    %84 = vector.broadcast %cst_44 : f32 to vector<128x1xf32>
    %85 = arith.mulf %83, %84 : vector<128x1xf32>
    %86 = vector.broadcast %85 : vector<128x1xf32> to vector<128x128xf32>
    %87 = arith.subf %79, %86 : vector<128x128xf32>
    %88 = vector.broadcast %4 : vector<1x128xf32> to vector<128x128xf32>
    %89 = arith.mulf %87, %88 : vector<128x128xf32>
    %90 = arith.mulf %89, %89 : vector<128x128xf32>
    %cst_45 = arith.constant dense<0.000000e+00> : vector<128xf32>
    %91 = vector.multi_reduction <add>, %90, %cst_45 [1] : vector<128x128xf32> to vector<128xf32>
    %92 = vector.shape_cast %91 : vector<128xf32> to vector<128x1xf32>
    %cst_46 = arith.constant 3.125000e-02 : f32
    %93 = vector.broadcast %cst_46 : f32 to vector<128x1xf32>
    %94 = arith.mulf %92, %93 : vector<128x1xf32>
    %cst_47 = arith.constant 9.99999974E-6 : f32
    %95 = vector.broadcast %cst_47 : f32 to vector<128x1xf32>
    %96 = arith.addf %94, %95 : vector<128x1xf32>
    %97 = math.rsqrt %96 : vector<128x1xf32>
    %98 = vector.broadcast %97 : vector<128x1xf32> to vector<128x128xf32>
    %99 = arith.mulf %89, %98 : vector<128x128xf32>
    %100 = vector.broadcast %80 : vector<1x128xf32> to vector<128x128xf32>
    %101 = arith.mulf %99, %100 : vector<128x128xf32>
    %102 = vector.broadcast %81 : vector<1x128xf32> to vector<128x128xf32>
    %103 = arith.addf %101, %102 : vector<128x128xf32>
    %c0_48 = arith.constant 0 : index
    %c0_49 = arith.constant 0 : index
    %104 = vector.load %arg15[%c0_48, %c0_49] : memref<128x128xf32, #tpu.memory_space<vmem>>, vector<128x128xf32>
    tpu.vector_store %arg15[%c0_48, %c0_49], %103 {strides = array<i32>} : memref<128x128xf32, #tpu.memory_space<vmem>>, vector<128x128xf32>,
    return
  }
  func.func @transform_0(%arg0: i32) -> (i32, i32) {
    %c0_i32 = arith.constant 0 : i32
    %c0_i32_0 = arith.constant 0 : i32
    return %arg0, %c0_i32 : i32, i32
  }
  func.func @transform_1(%arg0: i32) -> (i32, i32) {
    %c0_i32 = arith.constant 0 : i32
    %c0_i32_0 = arith.constant 0 : i32
    return %arg0, %c0_i32 : i32, i32
  }
  func.func @transform_2(%arg0: i32) -> (i32, i32) {
    %c0_i32 = arith.constant 0 : i32
    %c0_i32_0 = arith.constant 0 : i32
    %c0_i32_1 = arith.constant 0 : i32
    return %c0_i32, %c0_i32_0 : i32, i32
  }
  func.func @transform_3(%arg0: i32) -> (i32, i32) {
    %c0_i32 = arith.constant 0 : i32
    %c0_i32_0 = arith.constant 0 : i32
    %c0_i32_1 = arith.constant 0 : i32
    return %c0_i32, %c0_i32_0 : i32, i32
  }
  func.func @transform_4(%arg0: i32) -> (i32, i32) {
    %c0_i32 = arith.constant 0 : i32
    %c0_i32_0 = arith.constant 0 : i32
    %c0_i32_1 = arith.constant 0 : i32
    return %c0_i32, %c0_i32_0 : i32, i32
  }
  func.func @transform_5(%arg0: i32) -> (i32, i32) {
    %c0_i32 = arith.constant 0 : i32
    %c0_i32_0 = arith.constant 0 : i32
    %c0_i32_1 = arith.constant 0 : i32
    return %c0_i32, %c0_i32_0 : i32, i32
  }
  func.func @transform_6(%arg0: i32) -> (i32, i32) {
    %c0_i32 = arith.constant 0 : i32
    %c0_i32_0 = arith.constant 0 : i32
    %c0_i32_1 = arith.constant 0 : i32
    return %c0_i32, %c0_i32_0 : i32, i32
  }
  func.func @transform_7(%arg0: i32) -> (i32, i32) {
    %c0_i32 = arith.constant 0 : i32
    %c0_i32_0 = arith.constant 0 : i32
    %c0_i32_1 = arith.constant 0 : i32
    return %c0_i32, %c0_i32_0 : i32, i32
  }
  func.func @transform_8(%arg0: i32) -> (i32, i32) {
    %c0_i32 = arith.constant 0 : i32
    %c0_i32_0 = arith.constant 0 : i32
    %c0_i32_1 = arith.constant 0 : i32
    return %c0_i32, %c0_i32_0 : i32, i32
  }
  func.func @transform_9(%arg0: i32) -> (i32, i32) {
    %c0_i32 = arith.constant 0 : i32
    %c0_i32_0 = arith.constant 0 : i32
    %c0_i32_1 = arith.constant 0 : i32
    return %c0_i32, %c0_i32_0 : i32, i32
  }
  func.func @transform_10(%arg0: i32) -> (i32, i32) {
    %c0_i32 = arith.constant 0 : i32
    %c0_i32_0 = arith.constant 0 : i32
    %c0_i32_1 = arith.constant 0 : i32
    return %c0_i32, %c0_i32_0 : i32, i32
  }
  func.func @transform_11(%arg0: i32) -> (i32, i32) {
    %c0_i32 = arith.constant 0 : i32
    %c0_i32_0 = arith.constant 0 : i32
    %c0_i32_1 = arith.constant 0 : i32
    return %c0_i32, %c0_i32_0 : i32, i32
  }
  func.func @transform_12(%arg0: i32) -> (i32, i32) {
    %c0_i32 = arith.constant 0 : i32
    %c0_i32_0 = arith.constant 0 : i32
    %c0_i32_1 = arith.constant 0 : i32
    return %c0_i32, %c0_i32_0 : i32, i32
  }
  func.func @transform_13(%arg0: i32) -> (i32, i32) {
    %c0_i32 = arith.constant 0 : i32
    %c0_i32_0 = arith.constant 0 : i32
    %c0_i32_1 = arith.constant 0 : i32
    return %c0_i32, %c0_i32_0 : i32, i32
  }
  func.func @transform_14(%arg0: i32) -> (i32, i32) {
    %c0_i32 = arith.constant 0 : i32
    %c0_i32_0 = arith.constant 0 : i32
    return %arg0, %c0_i32 : i32, i32
  }
  func.func @transform_15(%arg0: i32) -> (i32, i32) {
    %c0_i32 = arith.constant 0 : i32
    %c0_i32_0 = arith.constant 0 : i32
    return %arg0, %c0_i32 : i32, i32
  }
}

</mosaic_0001>

<bundles_post_ra>
// kernel: cross_attention.2
= control target key start
LH: loop header
LB: loop body
LE: loop exit
PB: predicated region body
PF: predicated region fallthrough
CT: control target
= control target key end

     0   :  { %v17_v25 = vlaneseq  ;;  %v613_v31 = vmov 0.0   ;;  %s987_s0 = inlined_call_operand.vmem [shape: f32[128,128], index: 0, kind: input, shape index: {}]   ;;  %s988_s3 = inlined_call_operand.vmem [shape: f32[128,128], index: 3, kind: input, shape index: {}]   ;;  %s989_s1 = inlined_call_operand.vmem [shape: f32[1,128], index: 1, kind: input, shape index: {}]   ;;  %s990_s2 = inlined_call_operand.vmem [shape: f32[1,128], index: 2, kind: input, shape index: {}]   ;;  %s991_s4 = inlined_call_operand.vmem [shape: f32[128,128], index: 4, kind: output, shape index: {}]  }
   0x1   :  { %v642_v0 = vld [vmem:[%s987_s0] sm:$0xff]  ;;  %v647_v1 = vld [vmem:[%s987_s0 + $0x8] sm:$0xff]  ;;  %v666_v4 = vld [vmem:[%s987_s0 + $0x10] sm:$0xff] }
   0x2   :  { %40 = vadd.xlane.f32.xlu0 %v642_v0  ;;  %42 = vadd.xlane.f32.xlu1 %v647_v1  ;;  %v654_v2 = vld [vmem:[%s987_s0 + $0x40] sm:$0xff]  ;;  %v659_v3 = vld [vmem:[%s987_s0 + $0x48] sm:$0xff]  ;;  %v671_v5 = vld [vmem:[%s987_s0 + $0x50] sm:$0xff]  ;;  %v18_v26 = vand.u32 127, %v17_v25 }
   0x3   :  { %v678_v6 = vld [vmem:[%s987_s0 + $0x18] sm:$0xff]  ;;  %v690_v8 = vld [vmem:[%s987_s0 + $0x20] sm:$0xff]  ;;  %v702_v10 = vld [vmem:[%s987_s0 + $0x28] sm:$0xff] }
   0x4   :  { %v683_v7 = vld [vmem:[%s987_s0 + $0x58] sm:$0xff]  ;;  %v695_v9 = vld [vmem:[%s987_s0 + $0x60] sm:$0xff]  ;;  %v707_v11 = vld [vmem:[%s987_s0 + $0x68] sm:$0xff]  ;;  %vm19_vm0 = vcmp.lt.s32.totalorder %v18_v26, 32 }
   0x5   :  { %v714_v12 = vld [vmem:[%s987_s0 + $0x30] sm:$0xff]  ;;  %v726_v14 = vld [vmem:[%s987_s0 + $0x38] sm:$0xff]  ;;  %v289_v18 = vld [vmem:[%s988_s3 + $0x68] sm:$0xff]  ;;  %v762_v32 = vsel %vm19_vm0, 1.0, %v613_v31 }
   0x6   :  { %56 = vadd.xlane.f32.xlu0 %v654_v2  ;;  %58 = vadd.xlane.f32.xlu1 %v659_v3  ;;  %v719_v13 = vld [vmem:[%s987_s0 + $0x70] sm:$0xff]  ;;  %v731_v15 = vld [vmem:[%s987_s0 + $0x78] sm:$0xff]  ;;  %v288_v19 = vld [vmem:[%s988_s3 + $0x60] sm:$0xff] }
   0x7   :  { %v291_v16 = vld [vmem:[%s988_s3 + $0x78] sm:$0xff]  ;;  %v290_v17 = vld [vmem:[%s988_s3 + $0x70] sm:$0xff]  ;;  %v285_v22 = vld [vmem:[%s988_s3 + $0x48] sm:$0xff] }
   0x8   :  { %492 = vmatprep.subr.mxu0 %v291_v16  ;;  %548 = vmatprep.subr.mxu1 %v291_v16  ;;  %v287_v20 = vld [vmem:[%s988_s3 + $0x58] sm:$0xff]  ;;  %v286_v21 = vld [vmem:[%s988_s3 + $0x50] sm:$0xff]  ;;  %v284_v23 = vld [vmem:[%s988_s3 + $0x40] sm:$0xff] }
   0x9   :  { %493 = vmatpush3.xpose.msra.mxu0 %v291_v16  ;;  %564 = vmatpush3.xpose.msra.mxu1 %v291_v16  ;;  %v283_v24 = vld [vmem:[%s988_s3 + $0x38] sm:$0xff] }
   0xa   :  { %44 = vadd.xlane.f32.xlu0 %v666_v4  ;;  %60 = vadd.xlane.f32.xlu1 %v671_v5 }
   0xb   :  { %494 = vmatprep.subr.mxu0 %v290_v17  ;;  %549 = vmatprep.subr.mxu1 %v290_v17 }
   0xd   :  { %495 = vmatpush3.xpose.msra.mxu0 %v290_v17  ;;  %565 = vmatpush3.xpose.msra.mxu1 %v290_v17 }
   0xe   :  { %46 = vadd.xlane.f32.xlu0 %v678_v6  ;;  %62 = vadd.xlane.f32.xlu1 %v683_v7 }
   0xf   :  { %496 = vmatprep.subr.mxu0 %v289_v18  ;;  %550 = vmatprep.subr.mxu1 %v289_v18 }
  0x11   :  { %497 = vmatpush3.xpose.msra.mxu0 %v289_v18  ;;  %566 = vmatpush3.xpose.msra.mxu1 %v289_v18 }
  0x12   :  { %48 = vadd.xlane.f32.xlu0 %v690_v8  ;;  %64 = vadd.xlane.f32.xlu1 %v695_v9 }
  0x13   :  { %498 = vmatprep.subr.mxu0 %v288_v19  ;;  %551 = vmatprep.subr.mxu1 %v288_v19 }
  0x15   :  { %499 = vmatpush3.xpose.msra.mxu0 %v288_v19  ;;  %567 = vmatpush3.xpose.msra.mxu1 %v288_v19 }
  0x16   :  { %50 = vadd.xlane.f32.xlu0 %v702_v10  ;;  %66 = vadd.xlane.f32.xlu1 %v707_v11 }
  0x17   :  { %500 = vmatprep.subr.mxu0 %v287_v20  ;;  %552 = vmatprep.subr.mxu1 %v287_v20 }
  0x19   :  { %501 = vmatpush3.xpose.msra.mxu0 %v287_v20  ;;  %568 = vmatpush3.xpose.msra.mxu1 %v287_v20 }
  0x1a   :  { %52 = vadd.xlane.f32.xlu0 %v714_v12  ;;  %68 = vadd.xlane.f32.xlu1 %v719_v13 }
  0x1b   :  { %502 = vmatprep.subr.mxu0 %v286_v21  ;;  %553 = vmatprep.subr.mxu1 %v286_v21 }
  0x1d   :  { %503 = vmatpush3.xpose.msra.mxu0 %v286_v21  ;;  %569 = vmatpush3.xpose.msra.mxu1 %v286_v21 }
  0x1e   :  { %54 = vadd.xlane.f32.xlu0 %v726_v14  ;;  %70 = vadd.xlane.f32.xlu1 %v731_v15 }
  0x1f   :  { %504 = vmatprep.subr.mxu0 %v285_v22  ;;  %554 = vmatprep.subr.mxu1 %v285_v22 }
  0x21   :  { %505 = vmatpush3.xpose.msra.mxu0 %v285_v22  ;;  %570 = vmatpush3.xpose.msra.mxu1 %v285_v22 }
  0x22   :  { %506 = vmatprep.subr.mxu0 %v284_v23  ;;  %555 = vmatprep.subr.mxu1 %v284_v23 }
  0x25   :  { %507 = vmatpush3.xpose.msra.mxu0 %v284_v23  ;;  %571 = vmatpush3.xpose.msra.mxu1 %v284_v23 }
  0x26   :  { %508 = vmatprep.subr.mxu0 %v283_v24  ;;  %556 = vmatprep.subr.mxu1 %v283_v24 }
  0x29   :  { %509 = vmatpush3.xpose.msra.mxu0 %v283_v24  ;;  %572 = vmatpush3.xpose.msra.mxu1 %v283_v24 }
  0x8b   :  { %v41_v27 = vpop.xlane.xlu0 %40  ;;  %v43_v28 = vpop.xlane.xlu1 %42 }
  0x8c   :  { %v72_v29 = vmul.f32 0.03125, %v41_v27  ;;  %v73_v30 = vmul.f32 0.03125, %v43_v28  ;;  %v281_v27 = vld [vmem:[%s988_s3 + $0x28] sm:$0xff] }
  0x8e   :  { %v88_v33 = vsub.f32 %v642_v0, %v72_v29  ;;  %v89_v34 = vsub.f32 %v647_v1, %v73_v30 }
  0x8f   :  { %v57_v35 = vpop.xlane.xlu0 %56  ;;  %v59_v36 = vpop.xlane.xlu1 %58 }
  0x90   :  { %v80_v37 = vmul.f32 0.03125, %v57_v35  ;;  %v81_v38 = vmul.f32 0.03125, %v59_v36  ;;  %v767_v39 = vmul.f32 %v762_v32, %v88_v33  ;;  %v770_v40 = vmul.f32 %v762_v32, %v89_v34 }
  0x92   :  { %v96_v41 = vsub.f32 %v654_v2, %v80_v37  ;;  %v97_v42 = vsub.f32 %v659_v3, %v81_v38  ;;  %v120_v43 = vmul.f32 %v767_v39, %v767_v39  ;;  %v121_v46 = vmul.f32 %v770_v40, %v770_v40  ;;  %v280_v37 = vld [vmem:[%s988_s3 + $0x20] sm:$0xff] }
  0x93   :  { %v45_v44 = vpop.xlane.xlu0 %44  ;;  %v61_v45 = vpop.xlane.xlu1 %60 }
  0x94   :  { %v74_v47 = vmul.f32 0.03125, %v45_v44  ;;  %136 = vadd.xlane.f32.xlu0 %v120_v43  ;;  %v82_v48 = vmul.f32 0.03125, %v61_v45  ;;  %v779_v49 = vmul.f32 %v762_v32, %v96_v41  ;;  %v782_v50 = vmul.f32 %v762_v32, %v97_v42 }
  0x96   :  { %v90_v51 = vsub.f32 %v666_v4, %v74_v47  ;;  %v98_v52 = vsub.f32 %v671_v5, %v82_v48  ;;  %v128_v53 = vmul.f32 %v779_v49, %v779_v49  ;;  %v129_v56 = vmul.f32 %v782_v50, %v782_v50  ;;  %v279_v48 = vld [vmem:[%s988_s3 + $0x18] sm:$0xff] }
  0x97   :  { %v47_v54 = vpop.xlane.xlu0 %46  ;;  %v63_v55 = vpop.xlane.xlu1 %62 }
  0x98   :  { %v75_v57 = vmul.f32 0.03125, %v47_v54  ;;  %138 = vadd.xlane.f32.xlu0 %v121_v46  ;;  %152 = vadd.xlane.f32.xlu1 %v128_v53  ;;  %v83_v58 = vmul.f32 0.03125, %v63_v55  ;;  %v791_v59 = vmul.f32 %v762_v32, %v90_v51  ;;  %v794_v60 = vmul.f32 %v762_v32, %v98_v52  ;;  %v278_v53 = vld [vmem:[%s988_s3 + $0x10] sm:$0xff]  ;;  %v276_v55 = vld [vmem:[%s988_s3] sm:$0xff] }
  0x9a   :  { %v91_v61 = vsub.f32 %v678_v6, %v75_v57  ;;  %v99_v62 = vsub.f32 %v683_v7, %v83_v58  ;;  %v122_v63 = vmul.f32 %v791_v59, %v791_v59  ;;  %v130_v2 = vmul.f32 %v794_v60, %v794_v60  ;;  %v282_v6 = vld [vmem:[%s988_s3 + $0x30] sm:$0xff] }
  0x9b   :  { %v49_v0 = vpop.xlane.xlu0 %48  ;;  %v65_v1 = vpop.xlane.xlu1 %64  ;;  %510 = vmatprep.subr.mxu0 %v282_v6  ;;  %557 = vmatprep.subr.mxu1 %v282_v6 }
  0x9c   :  { %v76_v3 = vmul.f32 0.03125, %v49_v0  ;;  %154 = vadd.xlane.f32.xlu1 %v129_v56  ;;  %140 = vadd.xlane.f32.xlu0 %v122_v63  ;;  %v84_v4 = vmul.f32 0.03125, %v65_v1  ;;  %v803_v5 = vmul.f32 %v762_v32, %v91_v61  ;;  %v806_v16 = vmul.f32 %v762_v32, %v99_v62 }
  0x9d   :  { %511 = vmatpush3.xpose.msra.mxu0 %v282_v6  ;;  %573 = vmatpush3.xpose.msra.mxu1 %v282_v6 }
  0x9e   :  { %v92_v7 = vsub.f32 %v690_v8, %v76_v3  ;;  %v100_v17 = vsub.f32 %v695_v9, %v84_v4  ;;  %v123_v18 = vmul.f32 %v803_v5, %v803_v5  ;;  %v131_v21 = vmul.f32 %v806_v16, %v806_v16  ;;  %512 = vmatprep.subr.mxu0 %v281_v27 }
  0x9f   :  { %v51_v19 = vpop.xlane.xlu0 %50  ;;  %v67_v20 = vpop.xlane.xlu1 %66  ;;  %558 = vmatprep.subr.mxu1 %v281_v27 }
  0xa0   :  { %v77_v22 = vmul.f32 0.03125, %v51_v19  ;;  %156 = vadd.xlane.f32.xlu1 %v130_v2  ;;  %142 = vadd.xlane.f32.xlu0 %v123_v18  ;;  %v85_v23 = vmul.f32 0.03125, %v67_v20  ;;  %v818_v24 = vmul.f32 %v762_v32, %v92_v7  ;;  %v821_v8 = vmul.f32 %v762_v32, %v100_v17 }
  0xa1   :  { %513 = vmatpush3.xpose.msra.mxu0 %v281_v27  ;;  %574 = vmatpush3.xpose.msra.mxu1 %v281_v27 }
  0xa2   :  { %v93_v9 = vsub.f32 %v702_v10, %v77_v22  ;;  %v101_v25 = vsub.f32 %v707_v11, %v85_v23  ;;  %v124_v26 = vmul.f32 %v818_v24, %v818_v24  ;;  %v132_v30 = vmul.f32 %v821_v8, %v821_v8  ;;  %514 = vmatprep.subr.mxu0 %v280_v37 }
  0xa3   :  { %v53_v28 = vpop.xlane.xlu0 %52  ;;  %v69_v29 = vpop.xlane.xlu1 %68  ;;  %559 = vmatprep.subr.mxu1 %v280_v37 }
  0xa4   :  { %v78_v31 = vmul.f32 0.03125, %v53_v28  ;;  %158 = vadd.xlane.f32.xlu1 %v131_v21  ;;  %144 = vadd.xlane.f32.xlu0 %v124_v26  ;;  %v86_v10 = vmul.f32 0.03125, %v69_v29  ;;  %v833_v11 = vmul.f32 %v762_v32, %v93_v9  ;;  %v836_v33 = vmul.f32 %v762_v32, %v101_v25 }
  0xa5   :  { %515 = vmatpush3.xpose.msra.mxu0 %v280_v37  ;;  %575 = vmatpush3.xpose.msra.mxu1 %v280_v37  ;;  %v890_v37 = vld [vmem:[%s990_s2] ss:$0 sm:$0xff] }
  0xa6   :  { %v94_v34 = vsub.f32 %v714_v12, %v78_v31  ;;  %v102_v35 = vsub.f32 %v719_v13, %v86_v10  ;;  %v125_v36 = vmul.f32 %v833_v11, %v833_v11  ;;  %v133_v42 = vmul.f32 %v836_v33, %v836_v33  ;;  %516 = vmatprep.subr.mxu0 %v279_v48 }
  0xa7   :  { %v55_v38 = vpop.xlane.xlu0 %54  ;;  %v71_v41 = vpop.xlane.xlu1 %70  ;;  %560 = vmatprep.subr.mxu1 %v279_v48 }
  0xa8   :  { %v79_v43 = vmul.f32 0.03125, %v55_v38  ;;  %160 = vadd.xlane.f32.xlu1 %v132_v30  ;;  %146 = vadd.xlane.f32.xlu0 %v125_v36  ;;  %v87_v12 = vmul.f32 0.03125, %v71_v41  ;;  %v848_v13 = vmul.f32 %v762_v32, %v94_v34  ;;  %v851_v44 = vmul.f32 %v762_v32, %v102_v35  ;;  %v884_v30 = vld [vmem:[%s989_s1] ss:$0 sm:$0xff] }
  0xa9   :  { %517 = vmatpush3.xpose.msra.mxu0 %v279_v48  ;;  %576 = vmatpush3.xpose.msra.mxu1 %v279_v48 }
  0xaa   :  { %v95_v45 = vsub.f32 %v726_v14, %v79_v43  ;;  %v103_v46 = vsub.f32 %v731_v15, %v87_v12  ;;  %v126_v47 = vmul.f32 %v848_v13, %v848_v13  ;;  %v134_v51 = vmul.f32 %v851_v44, %v851_v44  ;;  %518 = vmatprep.subr.mxu0 %v278_v53 }
  0xab   :  { %561 = vmatprep.subr.mxu1 %v278_v53 }
  0xac   :  { %162 = vadd.xlane.f32.xlu1 %v133_v42  ;;  %148 = vadd.xlane.f32.xlu0 %v126_v47  ;;  %v863_v52 = vmul.f32 %v762_v32, %v95_v45  ;;  %v866_v14 = vmul.f32 %v762_v32, %v103_v46  ;;  %v277_v32 = vld [vmem:[%s988_s3 + $0x8] sm:$0xff] }
  0xad   :  { %519 = vmatpush3.xpose.msra.mxu0 %v278_v53  ;;  %577 = vmatpush3.xpose.msra.mxu1 %v278_v53 }
  0xae   :  { %v127_v15 = vmul.f32 %v863_v52, %v863_v52  ;;  %v135_v54 = vmul.f32 %v866_v14, %v866_v14  ;;  %520 = vmatprep.subr.mxu0 %v277_v32  ;;  %562 = vmatprep.subr.mxu1 %v277_v32 }
  0xb0   :  { %164 = vadd.xlane.f32.xlu1 %v134_v51  ;;  %150 = vadd.xlane.f32.xlu0 %v127_v15 }
  0xb1   :  { %521 = vmatpush3.xpose.msra.mxu0 %v277_v32  ;;  %578 = vmatpush3.xpose.msra.mxu1 %v277_v32 }
  0xb2   :  { %522 = vmatprep.subr.mxu0 %v276_v55  ;;  %563 = vmatprep.subr.mxu1 %v276_v55 }
  0xb4   :  { %166 = vadd.xlane.f32.xlu1 %v135_v54 }
  0xb5   :  { %523 = vmatpush3.xpose.msra.mxu0 %v276_v55  ;;  %579 = vmatpush3.xpose.msra.mxu1 %v276_v55 }
 0x11d   :  { %v137_v56 = vpop.xlane.xlu0 %136 }
 0x11e   :  { %v168_v57 = vmul.f32 0.03125, %v137_v56 }
 0x120   :  { %v184_v58 = vadd.f32 1e-05, %v168_v57 }
 0x121   :  { %v153_v61 = vpop.xlane.xlu1 %152  ;;  %v139_v62 = vpop.xlane.xlu0 %138 }
 0x122   :  { %581 = vrsqrt.f32 %v184_v58  ;;  %v176_v63 = vmul.f32 0.03125, %v153_v61  ;;  %v169_v0 = vmul.f32 0.03125, %v139_v62 }
 0x124   :  { %v192_v1 = vadd.f32 1e-05, %v176_v63  ;;  %v185_v2 = vadd.f32 1e-05, %v169_v0 }
 0x125   :  { %v155_v3 = vpop.xlane.xlu1 %154  ;;  %v141_v4 = vpop.xlane.xlu0 %140 }
 0x126   :  { %583 = vrsqrt.f32 %v192_v1  ;;  %v177_v6 = vmul.f32 0.03125, %v155_v3  ;;  %v170_v7 = vmul.f32 0.03125, %v141_v4 }
 0x127   :  { %585 = vrsqrt.f32 %v185_v2 }
 0x128   :  { %v193_v17 = vadd.f32 1e-05, %v177_v6  ;;  %v186_v18 = vadd.f32 1e-05, %v170_v7 }
 0x129   :  { %v157_v19 = vpop.xlane.xlu1 %156  ;;  %v143_v20 = vpop.xlane.xlu0 %142 }
 0x12a   :  { %587 = vrsqrt.f32 %v193_v17  ;;  %v178_v21 = vmul.f32 0.03125, %v157_v19  ;;  %v171_v22 = vmul.f32 0.03125, %v143_v20 }
 0x12b   :  { %589 = vrsqrt.f32 %v186_v18 }
 0x12c   :  { %v194_v23 = vadd.f32 1e-05, %v178_v21  ;;  %v187_v9 = vadd.f32 1e-05, %v171_v22 }
 0x12d   :  { %v159_v25 = vpop.xlane.xlu1 %158  ;;  %v145_v26 = vpop.xlane.xlu0 %144 }
 0x12e   :  { %591 = vrsqrt.f32 %v194_v23  ;;  %v179_v27 = vmul.f32 0.03125, %v159_v25  ;;  %v172_v28 = vmul.f32 0.03125, %v145_v26 }
 0x12f   :  { %v582_v29 = vpop.eup %581  ;;  %593 = vrsqrt.f32 %v187_v9 }
 0x130   :  { %v195_v31 = vadd.f32 1e-05, %v179_v27  ;;  %v188_v10 = vadd.f32 1e-05, %v172_v28  ;;  %v216_v34 = vmul.f32 %v582_v29, %v767_v39 }
 0x131   :  { %v161_v35 = vpop.xlane.xlu1 %160  ;;  %v147_v36 = vpop.xlane.xlu0 %146 }
 0x132   :  { %595 = vrsqrt.f32 %v195_v31  ;;  %v180_v38 = vmul.f32 0.03125, %v161_v35  ;;  %v173_v41 = vmul.f32 0.03125, %v147_v36  ;;  %v238_v42 = vmul.f32 %v884_v30, %v216_v34 }
 0x133   :  { %v584_v43 = vpop.eup %583  ;;  %597 = vrsqrt.f32 %v188_v10 }
 0x134   :  { %v586_v12 = vpop.eup %585  ;;  %v196_v45 = vadd.f32 1e-05, %v180_v38  ;;  %v189_v46 = vadd.f32 1e-05, %v173_v41  ;;  %v260_v47 = vadd.f32 %v890_v37, %v238_v42  ;;  %v224_v39 = vmul.f32 %v584_v43, %v779_v49 }
 0x135   :  { %v163_v48 = vpop.xlane.xlu1 %162  ;;  %v149_v51 = vpop.xlane.xlu0 %148  ;;  %v217_v15 = vmul.f32 %v586_v12, %v770_v40 }
 0x136   :  { %599 = vrsqrt.f32 %v196_v45  ;;  %v181_v53 = vmul.f32 0.03125, %v163_v48  ;;  %v174_v54 = vmul.f32 0.03125, %v149_v51  ;;  %524 = vmatprep.mubr.f32.mxu0 %v260_v47  ;;  %v246_v32 = vmul.f32 %v884_v30, %v224_v39 }
 0x137   :  { %v588_v55 = vpop.eup %587  ;;  %601 = vrsqrt.f32 %v189_v46  ;;  %v239_v56 = vmul.f32 %v884_v30, %v217_v15 }
 0x138   :  { %v590_v57 = vpop.eup %589  ;;  %v197_v58 = vadd.f32 1e-05, %v181_v53  ;;  %v190_v61 = vadd.f32 1e-05, %v174_v54  ;;  %v268_v62 = vadd.f32 %v890_v37, %v246_v32  ;;  %v225_v49 = vmul.f32 %v588_v55, %v782_v50 }
 0x139   :  { %v165_v63 = vpop.xlane.xlu1 %164  ;;  %v151_v0 = vpop.xlane.xlu0 %150  ;;  %v261_v40 = vadd.f32 %v890_v37, %v239_v56  ;;  %v218_v1 = vmul.f32 %v590_v57, %v791_v59 }
 0x13a   :  { %603 = vrsqrt.f32 %v197_v58  ;;  %v182_v2 = vmul.f32 0.03125, %v165_v63  ;;  %v175_v3 = vmul.f32 0.03125, %v151_v0  ;;  %536 = vmatprep.mubr.f32.mxu1 %v268_v62  ;;  %v247_v4 = vmul.f32 %v884_v30, %v225_v49 }
 0x13b   :  { %v592_v6 = vpop.eup %591  ;;  %605 = vrsqrt.f32 %v190_v61  ;;  %525 = vmatmul.mubr.f32.vlgmr.msra.gmra.mxu0 %v261_v40  ;;  %v240_v7 = vmul.f32 %v884_v30, %v218_v1 }
 0x13c   :  { %v594_v17 = vpop.eup %593  ;;  %v198_v18 = vadd.f32 1e-05, %v182_v2  ;;  %v191_v50 = vadd.f32 1e-05, %v175_v3  ;;  %v269_v19 = vadd.f32 %v890_v37, %v247_v4  ;;  %v226_v20 = vmul.f32 %v592_v6, %v794_v60 }
 0x13d   :  { %v167_v21 = vpop.xlane.xlu1 %166  ;;  %v262_v59 = vadd.f32 %v890_v37, %v240_v7  ;;  %v219_v22 = vmul.f32 %v594_v17, %v803_v5 }
 0x13e   :  { %607 = vrsqrt.f32 %v198_v18  ;;  %v183_v23 = vmul.f32 0.03125, %v167_v21  ;;  %537 = vmatmul.mubr.f32.vlgmr.msra.gmra.mxu1 %v269_v19  ;;  %v248_v9 = vmul.f32 %v884_v30, %v226_v20 }
 0x13f   :  { %v596_v25 = vpop.eup %595  ;;  %609 = vrsqrt.f32 %v191_v50  ;;  %527 = vmatprep.mubr.f32.mxu0 %v262_v59  ;;  %v241_v26 = vmul.f32 %v884_v30, %v219_v22 }
 0x140   :  { %v598_v27 = vpop.eup %597  ;;  %v199_v28 = vadd.f32 1e-05, %v183_v23  ;;  %v270_v29 = vadd.f32 %v890_v37, %v248_v9  ;;  %v227_v60 = vmul.f32 %v596_v25, %v806_v16 }
 0x141   :  { %v263_v31 = vadd.f32 %v890_v37, %v241_v26  ;;  %v220_v5 = vmul.f32 %v598_v27, %v818_v24 }
 0x142   :  { %611 = vrsqrt.f32 %v199_v28  ;;  %539 = vmatprep.mubr.f32.mxu1 %v270_v29  ;;  %v249_v10 = vmul.f32 %v884_v30, %v227_v60 }
 0x143   :  { %v600_v34 = vpop.eup %599  ;;  %528 = vmatmul.mubr.f32.gmra.mxu0 %v263_v31  ;;  %v242_v35 = vmul.f32 %v884_v30, %v220_v5 }
 0x144   :  { %v602_v36 = vpop.eup %601  ;;  %v271_v38 = vadd.f32 %v890_v37, %v249_v10  ;;  %v228_v41 = vmul.f32 %v600_v34, %v821_v8 }
 0x145   :  { %v264_v42 = vadd.f32 %v890_v37, %v242_v35  ;;  %v221_v16 = vmul.f32 %v602_v36, %v833_v11 }
 0x146   :  { %540 = vmatmul.mubr.f32.gmra.mxu1 %v271_v38  ;;  %v250_v24 = vmul.f32 %v884_v30, %v228_v41 }
 0x147   :  { %v604_v43 = vpop.eup %603  ;;  %530 = vmatprep.mubr.f32.mxu0 %v264_v42  ;;  %v243_v12 = vmul.f32 %v884_v30, %v221_v16 }
 0x148   :  { %v606_v45 = vpop.eup %605  ;;  %v272_v46 = vadd.f32 %v890_v37, %v250_v24  ;;  %v229_v47 = vmul.f32 %v604_v43, %v836_v33 }
 0x149   :  { %v265_v39 = vadd.f32 %v890_v37, %v243_v12  ;;  %v222_v8 = vmul.f32 %v606_v45, %v848_v13 }
 0x14a   :  { %542 = vmatprep.mubr.f32.mxu1 %v272_v46  ;;  %v251_v48 = vmul.f32 %v884_v30, %v229_v47 }
 0x14b   :  { %v608_v11 = vpop.eup %607  ;;  %531 = vmatmul.mubr.f32.gmra.mxu0 %v265_v39  ;;  %v244_v51 = vmul.f32 %v884_v30, %v222_v8 }
 0x14c   :  { %v610_v15 = vpop.eup %609  ;;  %v273_v53 = vadd.f32 %v890_v37, %v251_v48  ;;  %v230_v54 = vmul.f32 %v608_v11, %v851_v44 }
 0x14d   :  { %v266_v32 = vadd.f32 %v890_v37, %v244_v51  ;;  %v223_v33 = vmul.f32 %v610_v15, %v863_v52 }
 0x14e   :  { %543 = vmatmul.mubr.f32.gmra.mxu1 %v273_v53  ;;  %v252_v55 = vmul.f32 %v884_v30, %v230_v54 }
 0x14f   :  { %v612_v13 = vpop.eup %611  ;;  %533 = vmatprep.mubr.f32.mxu0 %v266_v32  ;;  %v245_v56 = vmul.f32 %v884_v30, %v223_v33 }
 0x150   :  { %v274_v57 = vadd.f32 %v890_v37, %v252_v55  ;;  %v231_v58 = vmul.f32 %v612_v13, %v866_v14 }
 0x151   :  { %v267_v61 = vadd.f32 %v890_v37, %v245_v56 }
 0x152   :  { %545 = vmatprep.mubr.f32.mxu1 %v274_v57  ;;  %v253_v44 = vmul.f32 %v884_v30, %v231_v58 }
 0x153   :  { %534 = vmatmul.mubr.f32.gmra.mxu0 %v267_v61 }
 0x154   :  { %v275_v62 = vadd.f32 %v890_v37, %v253_v44 }
 0x156   :  { %546 = vmatmul.mubr.f32.gmra.mxu1 %v275_v62 }
 0x1fb   :  { %v526_v52 = vpop.f32.mrf.mxu0 }
 0x1fc   :  { %438 = vst [vmem:[%s991_s4 + $0x8] sm:$0xff] %v526_v52 }
 0x1fd   :  { %v358_v49 = vpop.f32.mrf.mxu0 }
 0x1fe   :  { %437 = vst [vmem:[%s991_s4] sm:$0xff] %v358_v49  ;;  %v538_v14 = vpop.f32.mrf.mxu1 }
 0x1ff   :  { %446 = vst [vmem:[%s991_s4 + $0x48] sm:$0xff] %v538_v14 }
 0x200   :  { %v398_v30 = vpop.f32.mrf.mxu1 }
 0x201   :  { %445 = vst [vmem:[%s991_s4 + $0x40] sm:$0xff] %v398_v30 }
 0x203   :  { %v529_v37 = vpop.f32.mrf.mxu0 }
 0x204   :  { %440 = vst [vmem:[%s991_s4 + $0x18] sm:$0xff] %v529_v37 }
 0x205   :  { %v368_v63 = vpop.f32.mrf.mxu0 }
 0x206   :  { %439 = vst [vmem:[%s991_s4 + $0x10] sm:$0xff] %v368_v63  ;;  %v541_v0 = vpop.f32.mrf.mxu1 }
 0x207   :  { %448 = vst [vmem:[%s991_s4 + $0x58] sm:$0xff] %v541_v0 }
 0x208   :  { %v408_v40 = vpop.f32.mrf.mxu1 }
 0x209   :  { %447 = vst [vmem:[%s991_s4 + $0x50] sm:$0xff] %v408_v40 }
 0x20b   :  { %v532_v1 = vpop.f32.mrf.mxu0 }
 0x20c   :  { %442 = vst [vmem:[%s991_s4 + $0x28] sm:$0xff] %v532_v1 }
 0x20d   :  { %v378_v2 = vpop.f32.mrf.mxu0 }
 0x20e   :  { %441 = vst [vmem:[%s991_s4 + $0x20] sm:$0xff] %v378_v2  ;;  %v544_v3 = vpop.f32.mrf.mxu1 }
 0x20f   :  { %450 = vst [vmem:[%s991_s4 + $0x68] sm:$0xff] %v544_v3 }
 0x210   :  { %v418_v4 = vpop.f32.mrf.mxu1 }
 0x211   :  { %449 = vst [vmem:[%s991_s4 + $0x60] sm:$0xff] %v418_v4 }
 0x213   :  { %v535_v6 = vpop.f32.mrf.mxu0 }
 0x214   :  { %444 = vst [vmem:[%s991_s4 + $0x38] sm:$0xff] %v535_v6 }
 0x215   :  { %v388_v7 = vpop.f32.mrf.mxu0 }
 0x216   :  { %443 = vst [vmem:[%s991_s4 + $0x30] sm:$0xff] %v388_v7  ;;  %v547_v17 = vpop.f32.mrf.mxu1 }
 0x217   :  { %452 = vst [vmem:[%s991_s4 + $0x78] sm:$0xff] %v547_v17 }
 0x218   :  { %v428_v18 = vpop.f32.mrf.mxu1 }
 0x219   :  { %451 = vst [vmem:[%s991_s4 + $0x70] sm:$0xff] %v428_v18 }

// kernel: cross_attention.3
= control target key start
LH: loop header
LB: loop body
LE: loop exit
PB: predicated region body
PF: predicated region fallthrough
CT: control target
= control target key end

     0   :  { %v49_v25 = vlaneseq  ;;  %v2710_v31 = vmov 0.0   ;;  %s4046_s0 = inlined_call_operand.vmem [shape: f32[128,128], index: 0, kind: input, shape index: {}]   ;;  %s4047_s7 = inlined_call_operand.vmem [shape: f32[128,128], index: 7, kind: input, shape index: {}]   ;;  %s4048_s4 = inlined_call_operand.vmem [shape: f32[128,128], index: 4, kind: input, shape index: {}]   ;;  %s4049_s5 = inlined_call_operand.vmem [shape: f32[1,128], index: 5, kind: input, shape index: {}]   ;;  %s4050_s6 = inlined_call_operand.vmem [shape: f32[1,128], index: 6, kind: input, shape index: {}]   ;;  %s4051_s1 = inlined_call_operand.vmem [shape: s32[128,1], index: 1, kind: input, shape index: {}]   ;;  %s4052_s2 = inlined_call_operand.vmem [shape: s32[1,128], index: 2, kind: input, shape index: {}]   ;;  %s4053_s3 = inlined_call_operand.vmem [shape: f32[128,128], index: 3, kind: input, shape index: {}]   ;;  %s4054_s8 = inlined_call_operand.vmem [shape: f32[128,128], index: 8, kind: input, shape index: {}]   ;;  %s4055_s15 = inlined_call_operand.vmem [shape: f32[128,128], index: 15, kind: output, shape index: {1}]   ;;  %s4056_s10 = inlined_call_operand.vmem [shape: f32[128,128], index: 10, kind: input, shape index: {}]   ;;  %s4057_s9 = inlined_call_operand.vmem [shape: f32[1,128], index: 9, kind: input, shape index: {}]   ;;  %s4058_s11 = inlined_call_operand.vmem [shape: f32[1,128], index: 11, kind: input, shape index: {}]   ;;  %s4059_s12 = inlined_call_operand.vmem [shape: f32[1,128], index: 12, kind: input, shape index: {}]   ;;  %s4060_s13 = inlined_call_operand.vmem [shape: f32[1,128], index: 13, kind: input, shape index: {}]   ;;  %s4061_s14 = inlined_call_operand.vmem [shape: f32[128,128], index: 14, kind: output, shape index: {0}]  }
   0x1   :  { %v2795_v0 = vld [vmem:[%s4046_s0] sm:$0xff]  ;;  %v2800_v1 = vld [vmem:[%s4046_s0 + $0x10] sm:$0xff]  ;;  %v2807_v2 = vld [vmem:[%s4046_s0 + $0x8] sm:$0xff] }
   0x2   :  { %72 = vadd.xlane.f32.xlu0 %v2795_v0  ;;  %76 = vadd.xlane.f32.xlu1 %v2800_v1  ;;  %v2812_v3 = vld [vmem:[%s4046_s0 + $0x18] sm:$0xff]  ;;  %v2819_v4 = vld [vmem:[%s4046_s0 + $0x20] sm:$0xff]  ;;  %v2824_v5 = vld [vmem:[%s4046_s0 + $0x28] sm:$0xff]  ;;  %v50_v26 = vand.u32 127, %v49_v25 }
   0x3   :  { %v2831_v6 = vld [vmem:[%s4046_s0 + $0x30] sm:$0xff]  ;;  %v2836_v7 = vld [vmem:[%s4046_s0 + $0x38] sm:$0xff]  ;;  %v2843_v8 = vld [vmem:[%s4046_s0 + $0x40] sm:$0xff] }
   0x4   :  { %v2848_v9 = vld [vmem:[%s4046_s0 + $0x48] sm:$0xff]  ;;  %v2855_v10 = vld [vmem:[%s4046_s0 + $0x50] sm:$0xff]  ;;  %v2860_v11 = vld [vmem:[%s4046_s0 + $0x58] sm:$0xff]  ;;  %vm51_vm0 = vcmp.lt.s32.totalorder %v50_v26, 32 }
   0x5   :  { %v2867_v12 = vld [vmem:[%s4046_s0 + $0x60] sm:$0xff]  ;;  %v2872_v13 = vld [vmem:[%s4046_s0 + $0x68] sm:$0xff]  ;;  %v2879_v14 = vld [vmem:[%s4046_s0 + $0x70] sm:$0xff]  ;;  %v2916_v32 = vsel %vm51_vm0, 1.0, %v2710_v31 }
   0x6   :  { %74 = vadd.xlane.f32.xlu0 %v2807_v2  ;;  %78 = vadd.xlane.f32.xlu1 %v2812_v3  ;;  %v2884_v15 = vld [vmem:[%s4046_s0 + $0x78] sm:$0xff]  ;;  %v322_v17 = vld [vmem:[%s4047_s7 + $0x70] sm:$0xff]  ;;  %v321_v18 = vld [vmem:[%s4047_s7 + $0x68] sm:$0xff] }
   0x7   :  { %v323_v16 = vld [vmem:[%s4047_s7 + $0x78] sm:$0xff]  ;;  %v320_v19 = vld [vmem:[%s4047_s7 + $0x60] sm:$0xff]  ;;  %v318_v21 = vld [vmem:[%s4047_s7 + $0x50] sm:$0xff] }
   0x8   :  { %2170 = vmatprep.subr.mxu0 %v323_v16  ;;  %v319_v20 = vld [vmem:[%s4047_s7 + $0x58] sm:$0xff]  ;;  %v317_v22 = vld [vmem:[%s4047_s7 + $0x48] sm:$0xff]  ;;  %v316_v23 = vld [vmem:[%s4047_s7 + $0x40] sm:$0xff] }
   0x9   :  { %2171 = vmatpush3.xpose.msra.mxu0 %v323_v16  ;;  %v315_v24 = vld [vmem:[%s4047_s7 + $0x38] sm:$0xff] }
   0xa   :  { %80 = vadd.xlane.f32.xlu0 %v2819_v4  ;;  %82 = vadd.xlane.f32.xlu1 %v2824_v5 }
   0xb   :  { %2172 = vmatprep.subr.mxu0 %v322_v17 }
   0xd   :  { %2173 = vmatpush3.xpose.msra.mxu0 %v322_v17 }
   0xe   :  { %84 = vadd.xlane.f32.xlu0 %v2831_v6  ;;  %86 = vadd.xlane.f32.xlu1 %v2836_v7 }
   0xf   :  { %2174 = vmatprep.subr.mxu0 %v321_v18 }
  0x11   :  { %2175 = vmatpush3.xpose.msra.mxu0 %v321_v18 }
  0x12   :  { %88 = vadd.xlane.f32.xlu0 %v2843_v8  ;;  %90 = vadd.xlane.f32.xlu1 %v2848_v9 }
  0x13   :  { %2176 = vmatprep.subr.mxu0 %v320_v19 }
  0x15   :  { %2177 = vmatpush3.xpose.msra.mxu0 %v320_v19 }
  0x16   :  { %92 = vadd.xlane.f32.xlu0 %v2855_v10  ;;  %94 = vadd.xlane.f32.xlu1 %v2860_v11 }
  0x17   :  { %2178 = vmatprep.subr.mxu0 %v319_v20 }
  0x19   :  { %2179 = vmatpush3.xpose.msra.mxu0 %v319_v20 }
  0x1a   :  { %96 = vadd.xlane.f32.xlu0 %v2867_v12  ;;  %98 = vadd.xlane.f32.xlu1 %v2872_v13 }
  0x1b   :  { %2180 = vmatprep.subr.mxu0 %v318_v21 }
  0x1d   :  { %2181 = vmatpush3.xpose.msra.mxu0 %v318_v21 }
  0x1e   :  { %100 = vadd.xlane.f32.xlu0 %v2879_v14  ;;  %102 = vadd.xlane.f32.xlu1 %v2884_v15 }
  0x1f   :  { %2182 = vmatprep.subr.mxu0 %v317_v22 }
  0x21   :  { %2183 = vmatpush3.xpose.msra.mxu0 %v317_v22 }
  0x22   :  { %2184 = vmatprep.subr.mxu0 %v316_v23 }
  0x25   :  { %2185 = vmatpush3.xpose.msra.mxu0 %v316_v23 }
  0x26   :  { %2186 = vmatprep.subr.mxu0 %v315_v24 }
  0x29   :  { %2187 = vmatpush3.xpose.msra.mxu0 %v315_v24 }
  0x8b   :  { %v73_v27 = vpop.xlane.xlu0 %72  ;;  %v77_v28 = vpop.xlane.xlu1 %76 }
  0x8c   :  { %v104_v29 = vmul.f32 0.03125, %v73_v27  ;;  %v106_v30 = vmul.f32 0.03125, %v77_v28  ;;  %v313_v27 = vld [vmem:[%s4047_s7 + $0x28] sm:$0xff] }
  0x8e   :  { %v120_v33 = vsub.f32 %v2795_v0, %v104_v29  ;;  %v122_v34 = vsub.f32 %v2800_v1, %v106_v30 }
  0x8f   :  { %v75_v35 = vpop.xlane.xlu0 %74  ;;  %v79_v36 = vpop.xlane.xlu1 %78 }
  0x90   :  { %v105_v37 = vmul.f32 0.03125, %v75_v35  ;;  %v107_v38 = vmul.f32 0.03125, %v79_v36  ;;  %v2921_v39 = vmul.f32 %v2916_v32, %v120_v33  ;;  %v2924_v40 = vmul.f32 %v2916_v32, %v122_v34 }
  0x92   :  { %v121_v41 = vsub.f32 %v2807_v2, %v105_v37  ;;  %v123_v42 = vsub.f32 %v2812_v3, %v107_v38  ;;  %v152_v43 = vmul.f32 %v2921_v39, %v2921_v39  ;;  %v154_v46 = vmul.f32 %v2924_v40, %v2924_v40  ;;  %v312_v38 = vld [vmem:[%s4047_s7 + $0x20] sm:$0xff] }
  0x93   :  { %v81_v44 = vpop.xlane.xlu0 %80  ;;  %v83_v45 = vpop.xlane.xlu1 %82 }
  0x94   :  { %v108_v47 = vmul.f32 0.03125, %v81_v44  ;;  %168 = vadd.xlane.f32.xlu0 %v152_v43  ;;  %v109_v48 = vmul.f32 0.03125, %v83_v45  ;;  %v2933_v49 = vmul.f32 %v2916_v32, %v121_v41  ;;  %v2936_v50 = vmul.f32 %v2916_v32, %v123_v42 }
  0x96   :  { %v124_v51 = vsub.f32 %v2819_v4, %v108_v47  ;;  %v125_v52 = vsub.f32 %v2824_v5, %v109_v48  ;;  %v153_v53 = vmul.f32 %v2933_v49, %v2933_v49  ;;  %v155_v56 = vmul.f32 %v2936_v50, %v2936_v50 }
  0x97   :  { %v85_v54 = vpop.xlane.xlu0 %84  ;;  %v87_v55 = vpop.xlane.xlu1 %86 }
  0x98   :  { %v110_v57 = vmul.f32 0.03125, %v85_v54  ;;  %172 = vadd.xlane.f32.xlu0 %v154_v46  ;;  %170 = vadd.xlane.f32.xlu1 %v153_v53  ;;  %v111_v58 = vmul.f32 0.03125, %v87_v55  ;;  %v2945_v59 = vmul.f32 %v2916_v32, %v124_v51  ;;  %v2948_v60 = vmul.f32 %v2916_v32, %v125_v52  ;;  %v311_v51 = vld [vmem:[%s4047_s7 + $0x18] sm:$0xff]  ;;  %v310_v54 = vld [vmem:[%s4047_s7 + $0x10] sm:$0xff] }
  0x9a   :  { %v126_v61 = vsub.f32 %v2831_v6, %v110_v57  ;;  %v127_v62 = vsub.f32 %v2836_v7, %v111_v58  ;;  %v156_v63 = vmul.f32 %v2945_v59, %v2945_v59  ;;  %v157_v2 = vmul.f32 %v2948_v60, %v2948_v60  ;;  %v314_v6 = vld [vmem:[%s4047_s7 + $0x30] sm:$0xff]  ;;  %v308_v57 = vld [vmem:[%s4047_s7] sm:$0xff]  ;;  %v484_v58 = vld [vmem:[%s4048_s4 + $0x78] sm:$0xff] }
  0x9b   :  { %v89_v0 = vpop.xlane.xlu0 %88  ;;  %v91_v1 = vpop.xlane.xlu1 %90  ;;  %2188 = vmatprep.subr.mxu0 %v314_v6  ;;  %2226 = vmatprep.subr.mxu1 %v484_v58 }
  0x9c   :  { %v112_v3 = vmul.f32 0.03125, %v89_v0  ;;  %174 = vadd.xlane.f32.xlu1 %v155_v56  ;;  %176 = vadd.xlane.f32.xlu0 %v156_v63  ;;  %v113_v4 = vmul.f32 0.03125, %v91_v1  ;;  %v2957_v5 = vmul.f32 %v2916_v32, %v126_v61  ;;  %v2960_v16 = vmul.f32 %v2916_v32, %v127_v62  ;;  %v309_v56 = vld [vmem:[%s4047_s7 + $0x8] sm:$0xff]  ;;  %v483_v61 = vld [vmem:[%s4048_s4 + $0x70] sm:$0xff]  ;;  %v481_v63 = vld [vmem:[%s4048_s4 + $0x60] sm:$0xff] }
  0x9d   :  { %2189 = vmatpush3.xpose.msra.mxu0 %v314_v6  ;;  %2227 = vmatpush3.xpose.msra.mxu1 %v484_v58  ;;  %v482_v62 = vld [vmem:[%s4048_s4 + $0x68] sm:$0xff]  ;;  %v480_v0 = vld [vmem:[%s4048_s4 + $0x58] sm:$0xff]  ;;  %v479_v1 = vld [vmem:[%s4048_s4 + $0x50] sm:$0xff] }
  0x9e   :  { %v128_v7 = vsub.f32 %v2843_v8, %v112_v3  ;;  %v129_v17 = vsub.f32 %v2848_v9, %v113_v4  ;;  %v158_v18 = vmul.f32 %v2957_v5, %v2957_v5  ;;  %v159_v21 = vmul.f32 %v2960_v16, %v2960_v16  ;;  %2190 = vmatprep.subr.mxu0 %v313_v27  ;;  %v477_v3 = vld [vmem:[%s4048_s4 + $0x40] sm:$0xff]  ;;  %v476_v4 = vld [vmem:[%s4048_s4 + $0x38] sm:$0xff]  ;;  %v475_v6 = vld [vmem:[%s4048_s4 + $0x30] sm:$0xff] }
  0x9f   :  { %v93_v19 = vpop.xlane.xlu0 %92  ;;  %v95_v20 = vpop.xlane.xlu1 %94  ;;  %2228 = vmatprep.subr.mxu1 %v483_v61 }
  0xa0   :  { %v114_v22 = vmul.f32 0.03125, %v93_v19  ;;  %178 = vadd.xlane.f32.xlu1 %v157_v2  ;;  %180 = vadd.xlane.f32.xlu0 %v158_v18  ;;  %v115_v23 = vmul.f32 0.03125, %v95_v20  ;;  %v2972_v24 = vmul.f32 %v2916_v32, %v128_v7  ;;  %v2975_v8 = vmul.f32 %v2916_v32, %v129_v17  ;;  %v478_v2 = vld [vmem:[%s4048_s4 + $0x48] sm:$0xff]  ;;  %v473_v17 = vld [vmem:[%s4048_s4 + $0x20] sm:$0xff]  ;;  %v472_v18 = vld [vmem:[%s4048_s4 + $0x18] sm:$0xff] }
  0xa1   :  { %2191 = vmatpush3.xpose.msra.mxu0 %v313_v27  ;;  %2229 = vmatpush3.xpose.msra.mxu1 %v483_v61  ;;  %v474_v7 = vld [vmem:[%s4048_s4 + $0x28] sm:$0xff]  ;;  %v471_v19 = vld [vmem:[%s4048_s4 + $0x10] sm:$0xff]  ;;  %v3089_v61 = vld [vmem:[%s4050_s6] ss:$0 sm:$0xff] }
  0xa2   :  { %v130_v9 = vsub.f32 %v2855_v10, %v114_v22  ;;  %v131_v25 = vsub.f32 %v2860_v11, %v115_v23  ;;  %v160_v26 = vmul.f32 %v2972_v24, %v2972_v24  ;;  %v161_v30 = vmul.f32 %v2975_v8, %v2975_v8  ;;  %2192 = vmatprep.subr.mxu0 %v312_v38  ;;  %v470_v20 = vld [vmem:[%s4048_s4 + $0x8] sm:$0xff] }
  0xa3   :  { %v97_v28 = vpop.xlane.xlu0 %96  ;;  %v99_v29 = vpop.xlane.xlu1 %98  ;;  %2230 = vmatprep.subr.mxu1 %v482_v62 }
  0xa4   :  { %v116_v33 = vmul.f32 0.03125, %v97_v28  ;;  %182 = vadd.xlane.f32.xlu1 %v159_v21  ;;  %184 = vadd.xlane.f32.xlu0 %v160_v26  ;;  %v117_v34 = vmul.f32 0.03125, %v99_v29  ;;  %v2987_v10 = vmul.f32 %v2916_v32, %v130_v9  ;;  %v2990_v11 = vmul.f32 %v2916_v32, %v131_v25 }
  0xa5   :  { %2193 = vmatpush3.xpose.msra.mxu0 %v312_v38  ;;  %2231 = vmatpush3.xpose.msra.mxu1 %v482_v62 }
  0xa6   :  { %v132_v35 = vsub.f32 %v2867_v12, %v116_v33  ;;  %v133_v36 = vsub.f32 %v2872_v13, %v117_v34  ;;  %v162_v37 = vmul.f32 %v2987_v10, %v2987_v10  ;;  %v163_v43 = vmul.f32 %v2990_v11, %v2990_v11  ;;  %2194 = vmatprep.subr.mxu0 %v311_v51 }
  0xa7   :  { %v101_v41 = vpop.xlane.xlu0 %100  ;;  %v103_v42 = vpop.xlane.xlu1 %102  ;;  %2232 = vmatprep.subr.mxu1 %v481_v63 }
  0xa8   :  { %v118_v44 = vmul.f32 0.03125, %v101_v41  ;;  %186 = vadd.xlane.f32.xlu1 %v161_v30  ;;  %188 = vadd.xlane.f32.xlu0 %v162_v37  ;;  %v119_v45 = vmul.f32 0.03125, %v103_v42  ;;  %v3002_v12 = vmul.f32 %v2916_v32, %v132_v35  ;;  %v3005_v13 = vmul.f32 %v2916_v32, %v133_v36 }
  0xa9   :  { %2195 = vmatpush3.xpose.msra.mxu0 %v311_v51  ;;  %2233 = vmatpush3.xpose.msra.mxu1 %v481_v63 }
  0xaa   :  { %v134_v46 = vsub.f32 %v2879_v14, %v118_v44  ;;  %v135_v47 = vsub.f32 %v2884_v15, %v119_v45  ;;  %v164_v48 = vmul.f32 %v3002_v12, %v3002_v12  ;;  %v165_v52 = vmul.f32 %v3005_v13, %v3005_v13  ;;  %2196 = vmatprep.subr.mxu0 %v310_v54 }
  0xab   :  { %2234 = vmatprep.subr.mxu1 %v480_v0 }
  0xac   :  { %190 = vadd.xlane.f32.xlu1 %v163_v43  ;;  %192 = vadd.xlane.f32.xlu0 %v164_v48  ;;  %v3017_v53 = vmul.f32 %v2916_v32, %v134_v46  ;;  %v3020_v14 = vmul.f32 %v2916_v32, %v135_v47 }
  0xad   :  { %2197 = vmatpush3.xpose.msra.mxu0 %v310_v54  ;;  %2235 = vmatpush3.xpose.msra.mxu1 %v480_v0 }
  0xae   :  { %v166_v15 = vmul.f32 %v3017_v53, %v3017_v53  ;;  %v167_v55 = vmul.f32 %v3020_v14, %v3020_v14  ;;  %2198 = vmatprep.subr.mxu0 %v309_v56  ;;  %2236 = vmatprep.subr.mxu1 %v479_v1 }
  0xb0   :  { %194 = vadd.xlane.f32.xlu1 %v165_v52  ;;  %196 = vadd.xlane.f32.xlu0 %v166_v15  ;;  %v3083_v15 = vld [vmem:[%s4049_s5] ss:$0 sm:$0xff] }
  0xb1   :  { %2199 = vmatpush3.xpose.msra.mxu0 %v309_v56  ;;  %2237 = vmatpush3.xpose.msra.mxu1 %v479_v1 }
  0xb2   :  { %2200 = vmatprep.subr.mxu0 %v308_v57  ;;  %2238 = vmatprep.subr.mxu1 %v478_v2 }
  0xb4   :  { %198 = vadd.xlane.f32.xlu1 %v167_v55 }
  0xb5   :  { %2201 = vmatpush3.xpose.msra.mxu0 %v308_v57  ;;  %2239 = vmatpush3.xpose.msra.mxu1 %v478_v2 }
  0xb6   :  { %2240 = vmatprep.subr.mxu1 %v477_v3 }
  0xb9   :  { %2241 = vmatpush3.xpose.msra.mxu1 %v477_v3 }
  0xba   :  { %2242 = vmatprep.subr.mxu1 %v476_v4 }
  0xbd   :  { %2243 = vmatpush3.xpose.msra.mxu1 %v476_v4 }
  0xbe   :  { %2244 = vmatprep.subr.mxu1 %v475_v6 }
  0xc1   :  { %2245 = vmatpush3.xpose.msra.mxu1 %v475_v6 }
  0xc2   :  { %2246 = vmatprep.subr.mxu1 %v474_v7 }
  0xc5   :  { %2247 = vmatpush3.xpose.msra.mxu1 %v474_v7 }
  0xc6   :  { %2248 = vmatprep.subr.mxu1 %v473_v17 }
  0xc9   :  { %2249 = vmatpush3.xpose.msra.mxu1 %v473_v17 }
  0xca   :  { %2250 = vmatprep.subr.mxu1 %v472_v18 }
  0xcd   :  { %2251 = vmatpush3.xpose.msra.mxu1 %v472_v18 }
  0xce   :  { %2252 = vmatprep.subr.mxu1 %v471_v19 }
  0xd1   :  { %2253 = vmatpush3.xpose.msra.mxu1 %v471_v19 }
  0xd2   :  { %2254 = vmatprep.subr.mxu1 %v470_v20 }
  0xd5   :  { %2255 = vmatpush3.xpose.msra.mxu1 %v470_v20 }
 0x11d   :  { %v169_v21 = vpop.xlane.xlu0 %168 }
 0x11e   :  { %v200_v22 = vmul.f32 0.03125, %v169_v21 }
 0x120   :  { %v216_v23 = vadd.f32 1e-05, %v200_v22 }
 0x121   :  { %v171_v9 = vpop.xlane.xlu1 %170  ;;  %v173_v25 = vpop.xlane.xlu0 %172 }
 0x122   :  { %2454 = vrsqrt.f32 %v216_v23  ;;  %v201_v26 = vmul.f32 0.03125, %v171_v9  ;;  %v202_v27 = vmul.f32 0.03125, %v173_v25 }
 0x124   :  { %v217_v28 = vadd.f32 1e-05, %v201_v26  ;;  %v218_v29 = vadd.f32 1e-05, %v202_v27 }
 0x125   :  { %v175_v30 = vpop.xlane.xlu1 %174  ;;  %v177_v33 = vpop.xlane.xlu0 %176 }
 0x126   :  { %2456 = vrsqrt.f32 %v217_v28  ;;  %v203_v34 = vmul.f32 0.03125, %v175_v30  ;;  %v204_v35 = vmul.f32 0.03125, %v177_v33 }
 0x127   :  { %2458 = vrsqrt.f32 %v218_v29 }
 0x128   :  { %v219_v36 = vadd.f32 1e-05, %v203_v34  ;;  %v220_v37 = vadd.f32 1e-05, %v204_v35 }
 0x129   :  { %v179_v38 = vpop.xlane.xlu1 %178  ;;  %v181_v41 = vpop.xlane.xlu0 %180 }
 0x12a   :  { %2460 = vrsqrt.f32 %v219_v36  ;;  %v205_v42 = vmul.f32 0.03125, %v179_v38  ;;  %v206_v43 = vmul.f32 0.03125, %v181_v41 }
 0x12b   :  { %2462 = vrsqrt.f32 %v220_v37 }
 0x12c   :  { %v221_v44 = vadd.f32 1e-05, %v205_v42  ;;  %v222_v45 = vadd.f32 1e-05, %v206_v43 }
 0x12d   :  { %v183_v46 = vpop.xlane.xlu1 %182  ;;  %v185_v47 = vpop.xlane.xlu0 %184 }
 0x12e   :  { %2464 = vrsqrt.f32 %v221_v44  ;;  %v207_v48 = vmul.f32 0.03125, %v183_v46  ;;  %v208_v51 = vmul.f32 0.03125, %v185_v47 }
 0x12f   :  { %v2455_v52 = vpop.eup %2454  ;;  %2466 = vrsqrt.f32 %v222_v45 }
 0x130   :  { %v223_v54 = vadd.f32 1e-05, %v207_v48  ;;  %v224_v55 = vadd.f32 1e-05, %v208_v51  ;;  %v248_v56 = vmul.f32 %v2455_v52, %v2921_v39 }
 0x131   :  { %v187_v57 = vpop.xlane.xlu1 %186  ;;  %v189_v58 = vpop.xlane.xlu0 %188 }
 0x132   :  { %2468 = vrsqrt.f32 %v223_v54  ;;  %v209_v62 = vmul.f32 0.03125, %v187_v57  ;;  %v210_v63 = vmul.f32 0.03125, %v189_v58  ;;  %v270_v0 = vmul.f32 %v3083_v15, %v248_v56 }
 0x133   :  { %v2457_v1 = vpop.eup %2456  ;;  %2470 = vrsqrt.f32 %v224_v55 }
 0x134   :  { %v2459_v2 = vpop.eup %2458  ;;  %v225_v3 = vadd.f32 1e-05, %v209_v62  ;;  %v226_v4 = vadd.f32 1e-05, %v210_v63  ;;  %v292_v6 = vadd.f32 %v3089_v61, %v270_v0  ;;  %v249_v39 = vmul.f32 %v2457_v1, %v2933_v49 }
 0x135   :  { %v191_v7 = vpop.xlane.xlu1 %190  ;;  %v193_v17 = vpop.xlane.xlu0 %192  ;;  %v250_v18 = vmul.f32 %v2459_v2, %v2924_v40 }
 0x136   :  { %2472 = vrsqrt.f32 %v225_v3  ;;  %v211_v19 = vmul.f32 0.03125, %v191_v7  ;;  %v212_v20 = vmul.f32 0.03125, %v193_v17  ;;  %2202 = vmatprep.mubr.f32.mxu0 %v292_v6  ;;  %v271_v21 = vmul.f32 %v3083_v15, %v249_v39 }
 0x137   :  { %v2461_v22 = vpop.eup %2460  ;;  %2474 = vrsqrt.f32 %v226_v4  ;;  %v272_v23 = vmul.f32 %v3083_v15, %v250_v18 }
 0x138   :  { %v2463_v9 = vpop.eup %2462  ;;  %v227_v25 = vadd.f32 1e-05, %v211_v19  ;;  %v228_v26 = vadd.f32 1e-05, %v212_v20  ;;  %v293_v27 = vadd.f32 %v3089_v61, %v271_v21  ;;  %v251_v49 = vmul.f32 %v2461_v22, %v2936_v50 }
 0x139   :  { %v195_v28 = vpop.xlane.xlu1 %194  ;;  %v197_v29 = vpop.xlane.xlu0 %196  ;;  %v294_v40 = vadd.f32 %v3089_v61, %v272_v23  ;;  %v252_v30 = vmul.f32 %v2463_v9, %v2945_v59 }
 0x13a   :  { %2476 = vrsqrt.f32 %v227_v25  ;;  %v213_v33 = vmul.f32 0.03125, %v195_v28  ;;  %v214_v34 = vmul.f32 0.03125, %v197_v29  ;;  %2203 = vmatmul.mubr.f32.vlgmr.msra.gmra.mxu0 %v293_v27  ;;  %v273_v35 = vmul.f32 %v3083_v15, %v251_v49 }
 0x13b   :  { %v2465_v36 = vpop.eup %2464  ;;  %2478 = vrsqrt.f32 %v228_v26  ;;  %2205 = vmatprep.mubr.f32.mxu0 %v294_v40  ;;  %v274_v37 = vmul.f32 %v3083_v15, %v252_v30  ;;  %v2711_v29 = vmov 0   ;;  %v634_v40 = vld [vmem:[%s4051_s1 + $0x20] sm:$0xff] }
 0x13c   :  { %v2467_v38 = vpop.eup %2466  ;;  %v229_v41 = vadd.f32 1e-05, %v213_v33  ;;  %v230_v50 = vadd.f32 1e-05, %v214_v34  ;;  %v295_v42 = vadd.f32 %v3089_v61, %v273_v35  ;;  %v253_v43 = vmul.f32 %v2465_v36, %v2948_v60  ;;  %2453 = vset.pattern.permute.xlu1 %v2711_v29  ;;  %2452 = vset.pattern.permute.xlu0 %v2711_v29  ;;  %v630_v30 = vld [vmem:[%s4051_s1] sm:$0xff]  ;;  %v635_v33 = vld [vmem:[%s4051_s1 + $0x28] sm:$0xff] }
 0x13d   :  { %v199_v44 = vpop.xlane.xlu1 %198  ;;  %v296_v59 = vadd.f32 %v3089_v61, %v274_v37  ;;  %v254_v45 = vmul.f32 %v2467_v38, %v2957_v5  ;;  %648 = vperm.xlu0 %2452, %v630_v30   ;;  %v639_v34 = vld [vmem:[%s4051_s1 + $0x48] sm:$0xff]  ;;  %v636_v35 = vld [vmem:[%s4051_s1 + $0x30] sm:$0xff]  ;;  %v641_v36 = vld [vmem:[%s4051_s1 + $0x58] sm:$0xff] }
 0x13e   :  { %2480 = vrsqrt.f32 %v229_v41  ;;  %v215_v46 = vmul.f32 0.03125, %v199_v44  ;;  %2206 = vmatmul.mubr.f32.gmra.mxu0 %v295_v42  ;;  %v275_v47 = vmul.f32 %v3083_v15, %v253_v43  ;;  %v637_v37 = vld [vmem:[%s4051_s1 + $0x38] sm:$0xff]  ;;  %v643_v38 = vld [vmem:[%s4051_s1 + $0x68] sm:$0xff]  ;;  %v638_v41 = vld [vmem:[%s4051_s1 + $0x40] sm:$0xff] }
 0x13f   :  { %v2469_v48 = vpop.eup %2468  ;;  %2482 = vrsqrt.f32 %v230_v50  ;;  %2208 = vmatprep.mubr.f32.mxu0 %v296_v59  ;;  %v276_v51 = vmul.f32 %v3083_v15, %v254_v45  ;;  %v645_v50 = vld [vmem:[%s4051_s1 + $0x78] sm:$0xff]  ;;  %v640_v42 = vld [vmem:[%s4051_s1 + $0x50] sm:$0xff]  ;;  %v642_v43 = vld [vmem:[%s4051_s1 + $0x60] sm:$0xff] }
 0x140   :  { %v2471_v52 = vpop.eup %2470  ;;  %v231_v54 = vadd.f32 1e-05, %v215_v46  ;;  %v297_v55 = vadd.f32 %v3089_v61, %v275_v47  ;;  %v255_v60 = vmul.f32 %v2469_v48, %v2960_v16  ;;  %v644_v44 = vld [vmem:[%s4051_s1 + $0x70] sm:$0xff] }
 0x141   :  { %v298_v56 = vadd.f32 %v3089_v61, %v276_v51  ;;  %v256_v5 = vmul.f32 %v2471_v52, %v2972_v24  ;;  %675 = vperm.xlu0 %2452, %v639_v34  }
 0x142   :  { %2484 = vrsqrt.f32 %v231_v54  ;;  %2209 = vmatmul.mubr.f32.gmra.mxu0 %v297_v55  ;;  %v277_v57 = vmul.f32 %v3083_v15, %v255_v60 }
 0x143   :  { %v2473_v58 = vpop.eup %2472  ;;  %2211 = vmatprep.mubr.f32.mxu0 %v298_v56  ;;  %v278_v62 = vmul.f32 %v3083_v15, %v256_v5 }
 0x144   :  { %v2475_v63 = vpop.eup %2474  ;;  %v299_v0 = vadd.f32 %v3089_v61, %v277_v57  ;;  %v257_v1 = vmul.f32 %v2473_v58, %v2975_v8 }
 0x145   :  { %v300_v2 = vadd.f32 %v3089_v61, %v278_v62  ;;  %v258_v16 = vmul.f32 %v2475_v63, %v2987_v10  ;;  %681 = vperm.xlu0 %2452, %v641_v36  }
 0x146   :  { %2212 = vmatmul.mubr.f32.gmra.mxu0 %v299_v0  ;;  %v279_v24 = vmul.f32 %v3083_v15, %v257_v1 }
 0x147   :  { %v2477_v3 = vpop.eup %2476  ;;  %2214 = vmatprep.mubr.f32.mxu0 %v300_v2  ;;  %v280_v4 = vmul.f32 %v3083_v15, %v258_v16 }
 0x148   :  { %v2479_v6 = vpop.eup %2478  ;;  %v301_v39 = vadd.f32 %v3089_v61, %v279_v24  ;;  %v259_v7 = vmul.f32 %v2477_v3, %v2990_v11 }
 0x149   :  { %v302_v17 = vadd.f32 %v3089_v61, %v280_v4  ;;  %v260_v8 = vmul.f32 %v2479_v6, %v3002_v12  ;;  %687 = vperm.xlu0 %2452, %v643_v38   ;;  %v3192_v4 = vld [vmem:[%s4052_s2] ss:$0 sm:$0xff] }
 0x14a   :  { %2215 = vmatmul.mubr.f32.gmra.mxu0 %v301_v39  ;;  %v281_v18 = vmul.f32 %v3083_v15, %v259_v7 }
 0x14b   :  { %v2481_v10 = vpop.eup %2480  ;;  %2217 = vmatprep.mubr.f32.mxu0 %v302_v17  ;;  %v282_v19 = vmul.f32 %v3083_v15, %v260_v8 }
 0x14c   :  { %v2483_v20 = vpop.eup %2482  ;;  %v303_v21 = vadd.f32 %v3089_v61, %v281_v18  ;;  %v261_v22 = vmul.f32 %v2481_v10, %v3005_v13 }
 0x14d   :  { %v304_v23 = vadd.f32 %v3089_v61, %v282_v19  ;;  %v262_v11 = vmul.f32 %v2483_v20, %v3017_v53  ;;  %v469_v53 = vld [vmem:[%s4048_s4] sm:$0xff]  ;;  %693 = vperm.xlu0 %2452, %v645_v50  }
 0x14e   :  { %2218 = vmatmul.mubr.f32.gmra.mxu0 %v303_v21  ;;  %v283_v9 = vmul.f32 %v3083_v15, %v261_v22  ;;  %2256 = vmatprep.subr.mxu1 %v469_v53 }
 0x14f   :  { %v2485_v12 = vpop.eup %2484  ;;  %2220 = vmatprep.mubr.f32.mxu0 %v304_v23  ;;  %v284_v25 = vmul.f32 %v3083_v15, %v262_v11  ;;  %2257 = vmatpush3.xpose.msra.mxu1 %v469_v53 }
 0x150   :  { %v305_v26 = vadd.f32 %v3089_v61, %v283_v9  ;;  %v263_v27 = vmul.f32 %v2485_v12, %v3020_v14  ;;  %v631_v14 = vld [vmem:[%s4051_s1 + $0x8] sm:$0xff] }
 0x151   :  { %v306_v49 = vadd.f32 %v3089_v61, %v284_v25  ;;  %651 = vperm.xlu1 %2453, %v631_v14  }
 0x152   :  { %2221 = vmatmul.mubr.f32.gmra.mxu0 %v305_v26  ;;  %v285_v13 = vmul.f32 %v3083_v15, %v263_v27  ;;  %v632_v15 = vld [vmem:[%s4051_s1 + $0x10] sm:$0xff] }
 0x153   :  { %2223 = vmatprep.mubr.f32.mxu0 %v306_v49 }
 0x154   :  { %v307_v28 = vadd.f32 %v3089_v61, %v285_v13  ;;  %v633_v61 = vld [vmem:[%s4051_s1 + $0x18] sm:$0xff] }
 0x155   :  { %654 = vperm.xlu1 %2453, %v632_v15  }
 0x156   :  { %2224 = vmatmul.mubr.f32.gmra.mxu0 %v307_v28 }
 0x159   :  { %657 = vperm.xlu1 %2453, %v633_v61  }
 0x15d   :  { %660 = vperm.xlu1 %2453, %v634_v40  }
 0x161   :  { %663 = vperm.xlu1 %2453, %v635_v33  }
 0x165   :  { %666 = vperm.xlu1 %2453, %v636_v35  }
 0x169   :  { %669 = vperm.xlu1 %2453, %v637_v37  }
 0x16d   :  { %672 = vperm.xlu1 %2453, %v638_v41  }
 0x171   :  { %678 = vperm.xlu1 %2453, %v640_v42  }
 0x175   :  { %684 = vperm.xlu1 %2453, %v642_v43  }
 0x179   :  { %690 = vperm.xlu1 %2453, %v644_v44  }
 0x1b8   :  { %v649_v6 = vpop.permute.xlu0 %648 }
 0x1b9   :  { %vm699_vm2 = vcmp.eq.s32.totalorder %v649_v6, %v3192_v4  ;;  %v981_v6 = vld [vmem:[%s4053_s3 + $0x50] sm:$0xff] }
 0x1ba   :  { %v3200_v17 = vsel %vm699_vm2, 1.0, %v2710_v31 }
 0x1bc   :  { %v676_v11 = vpop.permute.xlu0 %675 }
 0x1bd   :  { %vm708_vm10 = vcmp.eq.s32.totalorder %v676_v11, %v3192_v4 }
 0x1be   :  { %v3264_v38 = vsel %vm708_vm10, 1.0, %v2710_v31 }
 0x1c0   :  { %v682_v14 = vpop.permute.xlu0 %681 }
 0x1c1   :  { %vm710_vm12 = vcmp.eq.s32.totalorder %v682_v14, %v3192_v4 }
 0x1c4   :  { %v688_v41 = vpop.permute.xlu0 %687 }
 0x1c5   :  { %vm712_vm14 = vcmp.eq.s32.totalorder %v688_v41, %v3192_v4 }
 0x1cc   :  { %v652_v0 = vpop.permute.xlu1 %651 }
 0x1cd   :  { %vm700_vm1 = vcmp.eq.s32.totalorder %v652_v0, %v3192_v4 }
 0x1ce   :  { %v3197_v7 = vsel %vm700_vm1, 1.0, %v2710_v31 }
 0x1d0   :  { %v655_v1 = vpop.permute.xlu1 %654 }
 0x1d1   :  { %vm701_vm3 = vcmp.eq.s32.totalorder %v655_v1, %v3192_v4 }
 0x1d2   :  { %v3213_v22 = vsel %vm701_vm3, 1.0, %v2710_v31 }
 0x1d4   :  { %v658_v2 = vpop.permute.xlu1 %657 }
 0x1d5   :  { %vm702_vm4 = vcmp.eq.s32.totalorder %v658_v2, %v3192_v4 }
 0x1d6   :  { %v3216_v23 = vsel %vm702_vm4, 1.0, %v2710_v31 }
 0x1d8   :  { %v661_v16 = vpop.permute.xlu1 %660 }
 0x1d9   :  { %vm703_vm5 = vcmp.eq.s32.totalorder %v661_v16, %v3192_v4  ;;  %v986_v16 = vld [vmem:[%s4053_s3 + $0x78] sm:$0xff] }
 0x1da   :  { %v3229_v27 = vsel %vm703_vm5, 1.0, %v2710_v31  ;;  %2282 = vmatprep.subr.mxu0 %v986_v16 }
 0x1db   :  { %2283 = vmatpush3.msra.mxu0 %v986_v16 }
 0x1dc   :  { %v664_v24 = vpop.permute.xlu1 %663 }
 0x1dd   :  { %vm704_vm6 = vcmp.eq.s32.totalorder %v664_v24, %v3192_v4  ;;  %v984_v24 = vld [vmem:[%s4053_s3 + $0x68] sm:$0xff] }
 0x1de   :  { %v3232_v49 = vsel %vm704_vm6, 1.0, %v2710_v31 }
 0x1e0   :  { %v667_v3 = vpop.permute.xlu1 %666 }
 0x1e1   :  { %vm705_vm7 = vcmp.eq.s32.totalorder %v667_v3, %v3192_v4  ;;  %v983_v3 = vld [vmem:[%s4053_s3 + $0x60] sm:$0xff] }
 0x1e2   :  { %v3245_v61 = vsel %vm705_vm7, 1.0, %v2710_v31 }
 0x1e4   :  { %v670_v39 = vpop.permute.xlu1 %669 }
 0x1e5   :  { %vm706_vm8 = vcmp.eq.s32.totalorder %v670_v39, %v3192_v4  ;;  %v980_v39 = vld [vmem:[%s4053_s3 + $0x48] sm:$0xff] }
 0x1e6   :  { %v3248_v40 = vsel %vm706_vm8, 1.0, %v2710_v31 }
 0x1e8   :  { %v673_v21 = vpop.permute.xlu1 %672 }
 0x1e9   :  { %vm707_vm9 = vcmp.eq.s32.totalorder %v673_v21, %v3192_v4 }
 0x1ea   :  { %v3261_v37 = vsel %vm707_vm9, 1.0, %v2710_v31 }
 0x1ec   :  { %v679_v28 = vpop.permute.xlu1 %678 }
 0x1ed   :  { %vm709_vm11 = vcmp.eq.s32.totalorder %v679_v28, %v3192_v4 }
 0x1f0   :  { %v685_v36 = vpop.permute.xlu1 %684 }
 0x1f1   :  { %vm711_vm13 = vcmp.eq.s32.totalorder %v685_v36, %v3192_v4 }
 0x1fa   :  { %v2204_v59 = vpop.f32.mrf.mxu0 }
 0x1fc   :  { %v390_v45 = vpop.f32.mrf.mxu0 }
 0x1fd   :  { %2258 = vmatprep.mubr.f32.mxu1 %v390_v45  ;;  %v3280_v45 = vsel %vm710_vm12, 1.0, %v2710_v31 }
 0x1fe   :  { %v2207_v46 = vpop.f32.mrf.mxu0  ;;  %2259 = vmatmul.mubr.f32.vlgmr.msra.gmra.mxu1 %v2204_v59  ;;  %v3277_v59 = vsel %vm709_vm11, 1.0, %v2710_v31 }
 0x200   :  { %v400_v47 = vpop.f32.mrf.mxu0 }
 0x201   :  { %2261 = vmatprep.mubr.f32.mxu1 %v400_v47  ;;  %v691_v47 = vpop.permute.xlu1 %690 }
 0x202   :  { %v2210_v48 = vpop.f32.mrf.mxu0  ;;  %2262 = vmatmul.mubr.f32.gmra.mxu1 %v2207_v46  ;;  %vm713_vm15 = vcmp.eq.s32.totalorder %v691_v47, %v3192_v4 }
 0x204   :  { %v410_v51 = vpop.f32.mrf.mxu0 }
 0x205   :  { %2264 = vmatprep.mubr.f32.mxu1 %v410_v51 }
 0x206   :  { %v2213_v52 = vpop.f32.mrf.mxu0  ;;  %2265 = vmatmul.mubr.f32.gmra.mxu1 %v2210_v48 }
 0x208   :  { %v420_v54 = vpop.f32.mrf.mxu0 }
 0x209   :  { %2267 = vmatprep.mubr.f32.mxu1 %v420_v54 }
 0x20a   :  { %v2216_v55 = vpop.f32.mrf.mxu0  ;;  %2268 = vmatmul.mubr.f32.gmra.mxu1 %v2213_v52  ;;  %v694_v52 = vpop.permute.xlu0 %693 }
 0x20b   :  { %vm714_vm0 = vcmp.eq.s32.totalorder %v694_v52, %v3192_v4  ;;  %v982_v4 = vld [vmem:[%s4053_s3 + $0x58] sm:$0xff] }
 0x20c   :  { %v430_v60 = vpop.f32.mrf.mxu0 }
 0x20d   :  { %2270 = vmatprep.mubr.f32.mxu1 %v430_v60  ;;  %v3296_v60 = vsel %vm712_vm14, 1.0, %v2710_v31 }
 0x20e   :  { %v2219_v56 = vpop.f32.mrf.mxu0  ;;  %2271 = vmatmul.mubr.f32.gmra.mxu1 %v2216_v55  ;;  %v3293_v55 = vsel %vm711_vm13, 1.0, %v2710_v31 }
 0x210   :  { %v440_v5 = vpop.f32.mrf.mxu0 }
 0x211   :  { %2273 = vmatprep.mubr.f32.mxu1 %v440_v5 }
 0x212   :  { %v2222_v57 = vpop.f32.mrf.mxu0  ;;  %2274 = vmatmul.mubr.f32.gmra.mxu1 %v2219_v56 }
 0x214   :  { %v450_v58 = vpop.f32.mrf.mxu0 }
 0x215   :  { %2276 = vmatprep.mubr.f32.mxu1 %v450_v58 }
 0x216   :  { %v2225_v62 = vpop.f32.mrf.mxu0  ;;  %2277 = vmatmul.mubr.f32.gmra.mxu1 %v2222_v57 }
 0x218   :  { %v460_v63 = vpop.f32.mrf.mxu0 }
 0x219   :  { %2279 = vmatprep.mubr.f32.mxu1 %v460_v63  ;;  %v3312_v63 = vsel %vm714_vm0, 1.0, %v2710_v31 }
 0x21a   :  { %2280 = vmatmul.mubr.f32.gmra.mxu1 %v2225_v62  ;;  %v3309_v62 = vsel %vm713_vm15, 1.0, %v2710_v31  ;;  %v985_v31 = vld [vmem:[%s4053_s3 + $0x70] sm:$0xff] }
 0x21b   :  { %2284 = vmatprep.subr.mxu0 %v985_v31 }
 0x21c   :  { %2285 = vmatpush3.msra.mxu0 %v985_v31 }
 0x21d   :  { %2286 = vmatprep.subr.mxu0 %v984_v24 }
 0x21e   :  { %2287 = vmatpush3.msra.mxu0 %v984_v24 }
 0x21f   :  { %2288 = vmatprep.subr.mxu0 %v983_v3 }
 0x220   :  { %2289 = vmatpush3.msra.mxu0 %v983_v3 }
 0x221   :  { %2290 = vmatprep.subr.mxu0 %v982_v4 }
 0x222   :  { %2291 = vmatpush3.msra.mxu0 %v982_v4 }
 0x223   :  { %2292 = vmatprep.subr.mxu0 %v981_v6 }
 0x224   :  { %2293 = vmatpush3.msra.mxu0 %v981_v6 }
 0x225   :  { %2294 = vmatprep.subr.mxu0 %v980_v39 }
 0x226   :  { %2295 = vmatpush3.msra.mxu0 %v980_v39 }
 0x2be   :  { %v2260_v8 = vpop.f32.mrf.mxu1 }
 0x2bf   :  { %v3203_v18 = vmul.f32 %v2260_v8, %v3197_v7 }
 0x2c0   :  { %v551_v10 = vpop.f32.mrf.mxu1 }
 0x2c1   :  { %v3208_v19 = vmul.f32 %v3200_v17, %v551_v10  ;;  %765 = vmax.xlane.f32.xlu0 %v3203_v18 }
 0x2c2   :  { %v2263_v20 = vpop.f32.mrf.mxu1 }
 0x2c3   :  { %763 = vmax.xlane.f32.xlu1 %v3208_v19  ;;  %v3221_v12 = vmul.f32 %v2263_v20, %v3216_v23 }
 0x2c4   :  { %v561_v9 = vpop.f32.mrf.mxu1 }
 0x2c5   :  { %v3224_v25 = vmul.f32 %v3213_v22, %v561_v9 }
 0x2c6   :  { %v2266_v26 = vpop.f32.mrf.mxu1 }
 0x2c7   :  { %767 = vmax.xlane.f32.xlu0 %v3224_v25  ;;  %769 = vmax.xlane.f32.xlu1 %v3221_v12  ;;  %v3237_v53 = vmul.f32 %v2266_v26, %v3232_v49 }
 0x2c8   :  { %v571_v13 = vpop.f32.mrf.mxu1 }
 0x2c9   :  { %v3240_v29 = vmul.f32 %v3229_v27, %v571_v13 }
 0x2ca   :  { %v2269_v15 = vpop.f32.mrf.mxu1 }
 0x2cb   :  { %771 = vmax.xlane.f32.xlu0 %v3240_v29  ;;  %773 = vmax.xlane.f32.xlu1 %v3237_v53  ;;  %v3253_v33 = vmul.f32 %v2269_v15, %v3248_v40 }
 0x2cc   :  { %v581_v30 = vpop.f32.mrf.mxu1 }
 0x2cd   :  { %v3256_v34 = vmul.f32 %v3245_v61, %v581_v30 }
 0x2ce   :  { %v2272_v35 = vpop.f32.mrf.mxu1 }
 0x2cf   :  { %775 = vmax.xlane.f32.xlu0 %v3256_v34  ;;  %777 = vmax.xlane.f32.xlu1 %v3253_v33  ;;  %v3269_v42 = vmul.f32 %v2272_v35, %v3264_v38 }
 0x2d0   :  { %v591_v50 = vpop.f32.mrf.mxu1 }
 0x2d1   :  { %v3272_v43 = vmul.f32 %v3261_v37, %v591_v50 }
 0x2d2   :  { %v2275_v44 = vpop.f32.mrf.mxu1 }
 0x2d3   :  { %779 = vmax.xlane.f32.xlu0 %v3272_v43  ;;  %781 = vmax.xlane.f32.xlu1 %v3269_v42  ;;  %v3285_v48 = vmul.f32 %v2275_v44, %v3280_v45 }
 0x2d4   :  { %v601_v46 = vpop.f32.mrf.mxu1 }
 0x2d5   :  { %v3288_v51 = vmul.f32 %v3277_v59, %v601_v46 }
 0x2d6   :  { %v2278_v54 = vpop.f32.mrf.mxu1 }
 0x2d7   :  { %783 = vmax.xlane.f32.xlu0 %v3288_v51  ;;  %785 = vmax.xlane.f32.xlu1 %v3285_v48  ;;  %v3301_v5 = vmul.f32 %v2278_v54, %v3296_v60 }
 0x2d8   :  { %v611_v56 = vpop.f32.mrf.mxu1 }
 0x2d9   :  { %v3304_v57 = vmul.f32 %v3293_v55, %v611_v56 }
 0x2da   :  { %v2281_v58 = vpop.f32.mrf.mxu1 }
 0x2db   :  { %787 = vmax.xlane.f32.xlu0 %v3304_v57  ;;  %789 = vmax.xlane.f32.xlu1 %v3301_v5  ;;  %v3315_v1 = vmul.f32 %v2281_v58, %v3312_v63 }
 0x2dc   :  { %v621_v0 = vpop.f32.mrf.mxu1 }
 0x2dd   :  { %v3318_v2 = vmul.f32 %v3309_v62, %v621_v0 }
 0x2df   :  { %791 = vmax.xlane.f32.xlu0 %v3318_v2  ;;  %793 = vmax.xlane.f32.xlu1 %v3315_v1 }
 0x34a   :  { %v766_v8 = vpop.xlane.xlu0 %765 }
 0x34b   :  { %v796_v10 = vmul.f32 %v3197_v7, %v766_v8 }
 0x34c   :  { %v764_v20 = vpop.xlane.xlu1 %763 }
 0x34d   :  { %v812_v21 = vsub.f32 %v3203_v18, %v796_v10  ;;  %v795_v11 = vmul.f32 %v3200_v17, %v764_v20 }
 0x34f   :  { %v829_v9 = vmul.f32 1.442695, %v812_v21  ;;  %v811_v26 = vsub.f32 %v3208_v19, %v795_v11 }
 0x350   :  { %v770_v13 = vpop.xlane.xlu1 %769  ;;  %v768_v28 = vpop.xlane.xlu0 %767 }
 0x351   :  { %2486 = vpow2.f32 %v829_v9  ;;  %v827_v14 = vmul.f32 1.442695, %v811_v26  ;;  %v798_v15 = vmul.f32 %v3216_v23, %v770_v13  ;;  %v797_v30 = vmul.f32 %v3213_v22, %v768_v28 }
 0x353   :  { %2488 = vpow2.f32 %v827_v14  ;;  %v814_v35 = vsub.f32 %v3221_v12, %v798_v15  ;;  %v813_v36 = vsub.f32 %v3224_v25, %v797_v30 }
 0x354   :  { %v774_v41 = vpop.xlane.xlu1 %773  ;;  %v772_v18 = vpop.xlane.xlu0 %771 }
 0x355   :  { %v833_v50 = vmul.f32 1.442695, %v814_v35  ;;  %v831_v44 = vmul.f32 1.442695, %v813_v36  ;;  %v800_v46 = vmul.f32 %v3232_v49, %v774_v41  ;;  %v799_v19 = vmul.f32 %v3229_v27, %v772_v18 }
 0x357   :  { %2490 = vpow2.f32 %v833_v50  ;;  %v816_v47 = vsub.f32 %v3237_v53, %v800_v46  ;;  %v815_v52 = vsub.f32 %v3240_v29, %v799_v19 }
 0x358   :  { %2492 = vpow2.f32 %v831_v44  ;;  %v778_v54 = vpop.xlane.xlu1 %777  ;;  %v776_v56 = vpop.xlane.xlu0 %775 }
 0x359   :  { %v837_v58 = vmul.f32 1.442695, %v816_v47  ;;  %v835_v12 = vmul.f32 1.442695, %v815_v52  ;;  %v802_v25 = vmul.f32 %v3248_v40, %v778_v54  ;;  %v801_v0 = vmul.f32 %v3245_v61, %v776_v56 }
 0x35b   :  { %2494 = vpow2.f32 %v837_v58  ;;  %v818_v16 = vsub.f32 %v3253_v33, %v802_v25  ;;  %v817_v31 = vsub.f32 %v3256_v34, %v801_v0 }
 0x35c   :  { %2496 = vpow2.f32 %v835_v12  ;;  %v782_v24 = vpop.xlane.xlu1 %781  ;;  %v780_v3 = vpop.xlane.xlu0 %779  ;;  %v979_v12 = vld [vmem:[%s4053_s3 + $0x40] sm:$0xff] }
 0x35d   :  { %v841_v53 = vmul.f32 1.442695, %v818_v16  ;;  %v839_v4 = vmul.f32 1.442695, %v817_v31  ;;  %v804_v29 = vmul.f32 %v3264_v38, %v782_v24  ;;  %v803_v6 = vmul.f32 %v3261_v37, %v780_v3  ;;  %2296 = vmatprep.subr.mxu0 %v979_v12  ;;  %v977_v31 = vld [vmem:[%s4053_s3 + $0x30] sm:$0xff] }
 0x35e   :  { %v2487_v39 = vpop.eup %2486  ;;  %2297 = vmatpush3.msra.mxu0 %v979_v12 }
 0x35f   :  { %2498 = vpow2.f32 %v841_v53  ;;  %v820_v8 = vsub.f32 %v3269_v42, %v804_v29  ;;  %v819_v10 = vsub.f32 %v3272_v43, %v803_v6  ;;  %v3364_v20 = vmul.f32 %v2487_v39, %v3197_v7  ;;  %v976_v53 = vld [vmem:[%s4053_s3 + $0x28] sm:$0xff]  ;;  %v974_v39 = vld [vmem:[%s4053_s3 + $0x18] sm:$0xff] }
 0x360   :  { %v2489_v33 = vpop.eup %2488  ;;  %2500 = vpow2.f32 %v839_v4  ;;  %v786_v34 = vpop.xlane.xlu1 %785 }
 0x361   :  { %v784_v21 = vpop.xlane.xlu0 %783  ;;  %v845_v11 = vmul.f32 1.442695, %v820_v8  ;;  %v843_v9 = vmul.f32 1.442695, %v819_v10  ;;  %v806_v26 = vmul.f32 %v3280_v45, %v786_v34  ;;  %877 = vadd.xlane.f32.xlu1 %v3364_v20  ;;  %v3370_v28 = vmul.f32 %v2489_v33, %v3200_v17 }
 0x362   :  { %v805_v13 = vmul.f32 %v3277_v59, %v784_v21 }
 0x363   :  { %2502 = vpow2.f32 %v845_v11  ;;  %v822_v42 = vsub.f32 %v3285_v48, %v806_v26  ;;  %875 = vadd.xlane.f32.xlu0 %v3370_v28  ;;  %v1145_v26 = vld [vmem:[%s4054_s8 + $0x68] sm:$0xff] }
 0x364   :  { %v821_v7 = vsub.f32 %v3288_v51, %v805_v13  ;;  %v2491_v43 = vpop.eup %2490  ;;  %2504 = vpow2.f32 %v843_v9  ;;  %v790_v14 = vpop.xlane.xlu1 %789  ;;  %v971_v9 = vld [vmem:[%s4053_s3] sm:$0xff] }
 0x365   :  { %v788_v15 = vpop.xlane.xlu0 %787  ;;  %v2493_v30 = vpop.eup %2492  ;;  %v849_v35 = vmul.f32 1.442695, %v822_v42  ;;  %v808_v41 = vmul.f32 %v3296_v60, %v790_v14  ;;  %v3378_v17 = vmul.f32 %v2491_v43, %v3216_v23  ;;  %v1144_v13 = vld [vmem:[%s4054_s8 + $0x60] sm:$0xff]  ;;  %v1143_v42 = vld [vmem:[%s4054_s8 + $0x58] sm:$0xff]  ;;  %v1141_v43 = vld [vmem:[%s4054_s8 + $0x48] sm:$0xff] }
 0x366   :  { %v847_v36 = vmul.f32 1.442695, %v821_v7  ;;  %v807_v18 = vmul.f32 %v3293_v55, %v788_v15  ;;  %v3381_v48 = vmul.f32 %v2493_v30, %v3213_v22  ;;  %v1142_v7 = vld [vmem:[%s4054_s8 + $0x50] sm:$0xff]  ;;  %v1140_v14 = vld [vmem:[%s4054_s8 + $0x40] sm:$0xff]  ;;  %v1139_v15 = vld [vmem:[%s4054_s8 + $0x38] sm:$0xff] }
 0x367   :  { %2506 = vpow2.f32 %v849_v35  ;;  %v824_v51 = vsub.f32 %v3301_v5, %v808_v41  ;;  %881 = vadd.xlane.f32.xlu1 %v3378_v17  ;;  %v1138_v30 = vld [vmem:[%s4054_s8 + $0x30] sm:$0xff]  ;;  %v1137_v35 = vld [vmem:[%s4054_s8 + $0x28] sm:$0xff]  ;;  %v1135_v41 = vld [vmem:[%s4054_s8 + $0x18] sm:$0xff] }
 0x368   :  { %v823_v50 = vsub.f32 %v3304_v57, %v807_v18  ;;  %v2495_v44 = vpop.eup %2494  ;;  %2508 = vpow2.f32 %v847_v36  ;;  %879 = vadd.xlane.f32.xlu0 %v3381_v48  ;;  %v794_v46 = vpop.xlane.xlu1 %793  ;;  %v1136_v36 = vld [vmem:[%s4054_s8 + $0x20] sm:$0xff]  ;;  %v1134_v18 = vld [vmem:[%s4054_s8 + $0x10] sm:$0xff] }
 0x369   :  { %v792_v19 = vpop.xlane.xlu0 %791  ;;  %v2497_v47 = vpop.eup %2496  ;;  %v853_v52 = vmul.f32 1.442695, %v824_v51  ;;  %v810_v54 = vmul.f32 %v3312_v63, %v794_v46  ;;  %v3390_v56 = vmul.f32 %v2495_v44, %v3232_v49  ;;  %v1133_v51 = vld [vmem:[%s4054_s8 + $0x8] sm:$0xff] }
 0x36a   :  { %v851_v23 = vmul.f32 1.442695, %v823_v50  ;;  %v809_v22 = vmul.f32 %v3309_v62, %v792_v19  ;;  %v3393_v5 = vmul.f32 %v2497_v47, %v3229_v27 }
 0x36b   :  { %2510 = vpow2.f32 %v853_v52  ;;  %v826_v57 = vsub.f32 %v3315_v1, %v810_v54  ;;  %885 = vadd.xlane.f32.xlu1 %v3390_v56 }
 0x36c   :  { %v825_v58 = vsub.f32 %v3318_v2, %v809_v22  ;;  %v2499_v25 = vpop.eup %2498  ;;  %2512 = vpow2.f32 %v851_v23  ;;  %883 = vadd.xlane.f32.xlu0 %v3393_v5  ;;  %v978_v2 = vld [vmem:[%s4053_s3 + $0x38] sm:$0xff] }
 0x36d   :  { %v2501_v49 = vpop.eup %2500  ;;  %v857_v0 = vmul.f32 1.442695, %v826_v57  ;;  %v3403_v27 = vmul.f32 %v2499_v25, %v3248_v40  ;;  %2298 = vmatprep.subr.mxu0 %v978_v2 }
 0x36e   :  { %v855_v16 = vmul.f32 1.442695, %v825_v58  ;;  %v3406_v1 = vmul.f32 %v2501_v49, %v3245_v61  ;;  %2299 = vmatpush3.msra.mxu0 %v978_v2 }
 0x36f   :  { %2514 = vpow2.f32 %v857_v0  ;;  %889 = vadd.xlane.f32.xlu1 %v3403_v27  ;;  %2300 = vmatprep.subr.mxu0 %v977_v31 }
 0x370   :  { %v2503_v24 = vpop.eup %2502  ;;  %2516 = vpow2.f32 %v855_v16  ;;  %887 = vadd.xlane.f32.xlu0 %v3406_v1  ;;  %2301 = vmatpush3.msra.mxu0 %v977_v31 }
 0x371   :  { %v2505_v40 = vpop.eup %2504  ;;  %v3417_v61 = vmul.f32 %v2503_v24, %v3264_v38  ;;  %v975_v38 = vld [vmem:[%s4053_s3 + $0x20] sm:$0xff]  ;;  %2302 = vmatprep.subr.mxu0 %v976_v53 }
 0x372   :  { %v3420_v3 = vmul.f32 %v2505_v40, %v3261_v37  ;;  %2303 = vmatpush3.msra.mxu0 %v976_v53 }
 0x373   :  { %893 = vadd.xlane.f32.xlu1 %v3417_v61  ;;  %2304 = vmatprep.subr.mxu0 %v975_v38 }
 0x374   :  { %v2507_v4 = vpop.eup %2506  ;;  %891 = vadd.xlane.f32.xlu0 %v3420_v3  ;;  %2305 = vmatpush3.msra.mxu0 %v975_v38 }
 0x375   :  { %v2509_v29 = vpop.eup %2508  ;;  %v3431_v6 = vmul.f32 %v2507_v4, %v3280_v45  ;;  %2306 = vmatprep.subr.mxu0 %v974_v39 }
 0x376   :  { %v3434_v37 = vmul.f32 %v2509_v29, %v3277_v59  ;;  %v973_v59 = vld [vmem:[%s4053_s3 + $0x10] sm:$0xff]  ;;  %2307 = vmatpush3.msra.mxu0 %v974_v39 }
 0x377   :  { %897 = vadd.xlane.f32.xlu1 %v3431_v6  ;;  %2308 = vmatprep.subr.mxu0 %v973_v59 }
 0x378   :  { %v2511_v8 = vpop.eup %2510  ;;  %895 = vadd.xlane.f32.xlu0 %v3434_v37  ;;  %2309 = vmatpush3.msra.mxu0 %v973_v59 }
 0x379   :  { %v2513_v10 = vpop.eup %2512  ;;  %v3442_v33 = vmul.f32 %v2511_v8, %v3296_v60  ;;  %v972_v60 = vld [vmem:[%s4053_s3 + $0x8] sm:$0xff] }
 0x37a   :  { %v3445_v45 = vmul.f32 %v2513_v10, %v3293_v55  ;;  %2310 = vmatprep.subr.mxu0 %v972_v60 }
 0x37b   :  { %901 = vadd.xlane.f32.xlu1 %v3442_v33  ;;  %2311 = vmatpush3.msra.mxu0 %v972_v60 }
 0x37c   :  { %v2515_v34 = vpop.eup %2514  ;;  %899 = vadd.xlane.f32.xlu0 %v3445_v45  ;;  %2312 = vmatprep.subr.mxu0 %v971_v9 }
 0x37d   :  { %v2517_v21 = vpop.eup %2516  ;;  %v3456_v11 = vmul.f32 %v2515_v34, %v3312_v63  ;;  %2313 = vmatpush3.msra.mxu0 %v971_v9  ;;  %v1147_v63 = vld [vmem:[%s4054_s8 + $0x78] sm:$0xff] }
 0x37e   :  { %v3459_v55 = vmul.f32 %v2517_v21, %v3309_v62  ;;  %v1146_v62 = vld [vmem:[%s4054_s8 + $0x70] sm:$0xff]  ;;  %2338 = vmatprep.subr.mxu1 %v1147_v63 }
 0x37f   :  { %905 = vadd.xlane.f32.xlu1 %v3456_v11  ;;  %2339 = vmatpush3.xpose.msra.mxu1 %v1147_v63 }
 0x380   :  { %903 = vadd.xlane.f32.xlu0 %v3459_v55  ;;  %2340 = vmatprep.subr.mxu1 %v1146_v62 }
 0x383   :  { %2341 = vmatpush3.xpose.msra.mxu1 %v1146_v62 }
 0x384   :  { %2342 = vmatprep.subr.mxu1 %v1145_v26 }
 0x387   :  { %2343 = vmatpush3.xpose.msra.mxu1 %v1145_v26 }
 0x388   :  { %2344 = vmatprep.subr.mxu1 %v1144_v13 }
 0x38b   :  { %2345 = vmatpush3.xpose.msra.mxu1 %v1144_v13 }
 0x38c   :  { %2346 = vmatprep.subr.mxu1 %v1143_v42 }
 0x38f   :  { %2347 = vmatpush3.xpose.msra.mxu1 %v1143_v42  ;;  %v1424_v42 = vld [vmem:[%s4056_s10 + $0x60] sm:$0xff] }
 0x390   :  { %2348 = vmatprep.subr.mxu1 %v1142_v7 }
 0x393   :  { %2349 = vmatpush3.xpose.msra.mxu1 %v1142_v7  ;;  %v1423_v7 = vld [vmem:[%s4056_s10 + $0x58] sm:$0xff] }
 0x394   :  { %2350 = vmatprep.subr.mxu1 %v1141_v43 }
 0x397   :  { %2351 = vmatpush3.xpose.msra.mxu1 %v1141_v43  ;;  %v1422_v43 = vld [vmem:[%s4056_s10 + $0x50] sm:$0xff] }
 0x398   :  { %2352 = vmatprep.subr.mxu1 %v1140_v14 }
 0x39b   :  { %2353 = vmatpush3.xpose.msra.mxu1 %v1140_v14 }
 0x39c   :  { %2354 = vmatprep.subr.mxu1 %v1139_v15 }
 0x39f   :  { %2355 = vmatpush3.xpose.msra.mxu1 %v1139_v15 }
 0x3a0   :  { %2356 = vmatprep.subr.mxu1 %v1138_v30 }
 0x3a3   :  { %2357 = vmatpush3.xpose.msra.mxu1 %v1138_v30 }
 0x3a4   :  { %2358 = vmatprep.subr.mxu1 %v1137_v35 }
 0x3a7   :  { %2359 = vmatpush3.xpose.msra.mxu1 %v1137_v35 }
 0x3a8   :  { %2360 = vmatprep.subr.mxu1 %v1136_v36 }
 0x3ab   :  { %2361 = vmatpush3.xpose.msra.mxu1 %v1136_v36 }
 0x3ac   :  { %2362 = vmatprep.subr.mxu1 %v1135_v41 }
 0x3af   :  { %2363 = vmatpush3.xpose.msra.mxu1 %v1135_v41 }
 0x3b0   :  { %2364 = vmatprep.subr.mxu1 %v1134_v18 }
 0x3b3   :  { %2365 = vmatpush3.xpose.msra.mxu1 %v1134_v18 }
 0x3b4   :  { %2366 = vmatprep.subr.mxu1 %v1133_v51 }
 0x3b7   :  { %2367 = vmatpush3.xpose.msra.mxu1 %v1133_v51 }
 0x3ea   :  { %v878_v50 = vpop.xlane.xlu1 %877 }
 0x3eb   :  { %2518 = vrcp.f32 %v878_v50 }
 0x3ec   :  { %v876_v44 = vpop.xlane.xlu0 %875 }
 0x3ed   :  { %2520 = vrcp.f32 %v876_v44 }
 0x3f0   :  { %v882_v46 = vpop.xlane.xlu1 %881 }
 0x3f1   :  { %v880_v19 = vpop.xlane.xlu0 %879  ;;  %2522 = vrcp.f32 %v882_v46 }
 0x3f2   :  { %2524 = vrcp.f32 %v880_v19 }
 0x3f4   :  { %v886_v47 = vpop.xlane.xlu1 %885 }
 0x3f5   :  { %v884_v52 = vpop.xlane.xlu0 %883  ;;  %2526 = vrcp.f32 %v886_v47 }
 0x3f6   :  { %2528 = vrcp.f32 %v884_v52 }
 0x3f8   :  { %v2519_v23 = vpop.eup %2518  ;;  %v890_v54 = vpop.xlane.xlu1 %889 }
 0x3f9   :  { %v888_v22 = vpop.xlane.xlu0 %887  ;;  %v940_v57 = vmul.f32 %v2519_v23, %v3364_v20  ;;  %2530 = vrcp.f32 %v890_v54 }
 0x3fa   :  { %v2521_v58 = vpop.eup %2520  ;;  %2532 = vrcp.f32 %v888_v22  ;;  %v1421_v22 = vld [vmem:[%s4056_s10 + $0x48] sm:$0xff] }
 0x3fb   :  { %956 = vst [vmem:[%s4055_s15 + $0x8] sm:$0xff] %v940_v57  ;;  %v939_v12 = vmul.f32 %v2521_v58, %v3370_v28  ;;  %v1419_v58 = vld [vmem:[%s4056_s10 + $0x38] sm:$0xff] }
 0x3fc   :  { %v894_v25 = vpop.xlane.xlu1 %893 }
 0x3fd   :  { %v892_v49 = vpop.xlane.xlu0 %891  ;;  %2534 = vrcp.f32 %v894_v25  ;;  %955 = vst [vmem:[%s4055_s15] sm:$0xff] %v939_v12  ;;  %2314 = vmatprep.mubr.f32.mxu0 %v939_v12  ;;  %v1418_v12 = vld [vmem:[%s4056_s10 + $0x30] sm:$0xff]  ;;  %v1417_v25 = vld [vmem:[%s4056_s10 + $0x28] sm:$0xff] }
 0x3fe   :  { %v2523_v0 = vpop.eup %2522  ;;  %2536 = vrcp.f32 %v892_v49  ;;  %2315 = vmatmul.mubr.f32.vlgmr.msra.gmra.mxu0 %v940_v57  ;;  %v1420_v57 = vld [vmem:[%s4056_s10 + $0x40] sm:$0xff] }
 0x3ff   :  { %v2525_v20 = vpop.eup %2524  ;;  %v942_v16 = vmul.f32 %v2523_v0, %v3378_v17  ;;  %v1416_v49 = vld [vmem:[%s4056_s10 + $0x20] sm:$0xff]  ;;  %v1415_v0 = vld [vmem:[%s4056_s10 + $0x18] sm:$0xff] }
 0x400   :  { %v898_v2 = vpop.xlane.xlu1 %897  ;;  %v941_v24 = vmul.f32 %v2525_v20, %v3381_v48  ;;  %v1414_v20 = vld [vmem:[%s4056_s10 + $0x10] sm:$0xff] }
 0x401   :  { %v896_v31 = vpop.xlane.xlu0 %895  ;;  %2538 = vrcp.f32 %v898_v2  ;;  %958 = vst [vmem:[%s4055_s15 + $0x18] sm:$0xff] %v942_v16  ;;  %v1412_v2 = vld [vmem:[%s4056_s10] sm:$0xff] }
 0x402   :  { %v2527_v28 = vpop.eup %2526  ;;  %2540 = vrcp.f32 %v896_v31  ;;  %957 = vst [vmem:[%s4055_s15 + $0x10] sm:$0xff] %v941_v24  ;;  %2317 = vmatprep.mubr.f32.mxu0 %v941_v24  ;;  %v3629_v31 = vld [vmem:[%s4057_s9] ss:$0 sm:$0xff] }
 0x403   :  { %v2529_v40 = vpop.eup %2528  ;;  %2318 = vmatmul.mubr.f32.gmra.mxu0 %v942_v16  ;;  %v944_v17 = vmul.f32 %v2527_v28, %v3390_v56  ;;  %v1413_v16 = vld [vmem:[%s4056_s10 + $0x8] sm:$0xff] }
 0x404   :  { %v902_v53 = vpop.xlane.xlu1 %901  ;;  %v943_v48 = vmul.f32 %v2529_v40, %v3393_v5 }
 0x405   :  { %v900_v4 = vpop.xlane.xlu0 %899  ;;  %2542 = vrcp.f32 %v902_v53  ;;  %960 = vst [vmem:[%s4055_s15 + $0x28] sm:$0xff] %v944_v17 }
 0x406   :  { %v2531_v38 = vpop.eup %2530  ;;  %2544 = vrcp.f32 %v900_v4  ;;  %959 = vst [vmem:[%s4055_s15 + $0x20] sm:$0xff] %v943_v48  ;;  %2320 = vmatprep.mubr.f32.mxu0 %v943_v48 }
 0x407   :  { %v2533_v29 = vpop.eup %2532  ;;  %2321 = vmatmul.mubr.f32.gmra.mxu0 %v944_v17  ;;  %v946_v56 = vmul.f32 %v2531_v38, %v3403_v27 }
 0x408   :  { %v906_v39 = vpop.xlane.xlu1 %905  ;;  %v945_v5 = vmul.f32 %v2533_v29, %v3406_v1 }
 0x409   :  { %v904_v8 = vpop.xlane.xlu0 %903  ;;  %2546 = vrcp.f32 %v906_v39  ;;  %962 = vst [vmem:[%s4055_s15 + $0x38] sm:$0xff] %v946_v56 }
 0x40a   :  { %v2535_v10 = vpop.eup %2534  ;;  %2548 = vrcp.f32 %v904_v8  ;;  %961 = vst [vmem:[%s4055_s15 + $0x30] sm:$0xff] %v945_v5  ;;  %2323 = vmatprep.mubr.f32.mxu0 %v945_v5 }
 0x40b   :  { %v2537_v59 = vpop.eup %2536  ;;  %2324 = vmatmul.mubr.f32.gmra.mxu0 %v946_v56  ;;  %v948_v27 = vmul.f32 %v2535_v10, %v3417_v61 }
 0x40c   :  { %v947_v34 = vmul.f32 %v2537_v59, %v3420_v3 }
 0x40d   :  { %964 = vst [vmem:[%s4055_s15 + $0x48] sm:$0xff] %v948_v27 }
 0x40e   :  { %v2539_v1 = vpop.eup %2538  ;;  %963 = vst [vmem:[%s4055_s15 + $0x40] sm:$0xff] %v947_v34  ;;  %2326 = vmatprep.mubr.f32.mxu0 %v947_v34 }
 0x40f   :  { %v2541_v60 = vpop.eup %2540  ;;  %2327 = vmatmul.mubr.f32.gmra.mxu0 %v948_v27  ;;  %v950_v21 = vmul.f32 %v2539_v1, %v3431_v6 }
 0x410   :  { %v949_v9 = vmul.f32 %v2541_v60, %v3434_v37 }
 0x411   :  { %966 = vst [vmem:[%s4055_s15 + $0x58] sm:$0xff] %v950_v21 }
 0x412   :  { %v2543_v61 = vpop.eup %2542  ;;  %965 = vst [vmem:[%s4055_s15 + $0x50] sm:$0xff] %v949_v9  ;;  %2329 = vmatprep.mubr.f32.mxu0 %v949_v9 }
 0x413   :  { %v2545_v3 = vpop.eup %2544  ;;  %2330 = vmatmul.mubr.f32.gmra.mxu0 %v950_v21  ;;  %v952_v63 = vmul.f32 %v2543_v61, %v3442_v33  ;;  %v1132_v33 = vld [vmem:[%s4054_s8] sm:$0xff] }
 0x414   :  { %v951_v62 = vmul.f32 %v2545_v3, %v3445_v45  ;;  %2368 = vmatprep.subr.mxu1 %v1132_v33  ;;  %v1427_v45 = vld [vmem:[%s4056_s10 + $0x78] sm:$0xff] }
 0x415   :  { %968 = vst [vmem:[%s4055_s15 + $0x68] sm:$0xff] %v952_v63  ;;  %2369 = vmatpush3.xpose.msra.mxu1 %v1132_v33  ;;  %2394 = vmatprep.subr.mxu0 %v1427_v45 }
 0x416   :  { %v2547_v6 = vpop.eup %2546  ;;  %967 = vst [vmem:[%s4055_s15 + $0x60] sm:$0xff] %v951_v62  ;;  %2332 = vmatprep.mubr.f32.mxu0 %v951_v62  ;;  %2395 = vmatpush3.xpose.msra.mxu0 %v1427_v45 }
 0x417   :  { %v2549_v37 = vpop.eup %2548  ;;  %2333 = vmatmul.mubr.f32.gmra.mxu0 %v952_v63  ;;  %v954_v26 = vmul.f32 %v2547_v6, %v3456_v11  ;;  %v1426_v11 = vld [vmem:[%s4056_s10 + $0x70] sm:$0xff] }
 0x418   :  { %v953_v13 = vmul.f32 %v2549_v37, %v3459_v55  ;;  %2396 = vmatprep.subr.mxu0 %v1426_v11  ;;  %v1425_v55 = vld [vmem:[%s4056_s10 + $0x68] sm:$0xff] }
 0x419   :  { %970 = vst [vmem:[%s4055_s15 + $0x78] sm:$0xff] %v954_v26 }
 0x41a   :  { %969 = vst [vmem:[%s4055_s15 + $0x70] sm:$0xff] %v953_v13  ;;  %2335 = vmatprep.mubr.f32.mxu0 %v953_v13  ;;  %2397 = vmatpush3.xpose.msra.mxu0 %v1426_v11 }
 0x41b   :  { %2336 = vmatmul.mubr.f32.gmra.mxu0 %v954_v26  ;;  %2398 = vmatprep.subr.mxu0 %v1425_v55 }
 0x41e   :  { %2399 = vmatpush3.xpose.msra.mxu0 %v1425_v55 }
 0x41f   :  { %2400 = vmatprep.subr.mxu0 %v1424_v42 }
 0x422   :  { %2401 = vmatpush3.xpose.msra.mxu0 %v1424_v42 }
 0x423   :  { %2402 = vmatprep.subr.mxu0 %v1423_v7 }
 0x426   :  { %2403 = vmatpush3.xpose.msra.mxu0 %v1423_v7 }
 0x427   :  { %2404 = vmatprep.subr.mxu0 %v1422_v43 }
 0x42a   :  { %2405 = vmatpush3.xpose.msra.mxu0 %v1422_v43 }
 0x42b   :  { %2406 = vmatprep.subr.mxu0 %v1421_v22 }
 0x42e   :  { %2407 = vmatpush3.xpose.msra.mxu0 %v1421_v22 }
 0x42f   :  { %2408 = vmatprep.subr.mxu0 %v1420_v57 }
 0x432   :  { %2409 = vmatpush3.xpose.msra.mxu0 %v1420_v57 }
 0x433   :  { %2410 = vmatprep.subr.mxu0 %v1419_v58 }
 0x436   :  { %2411 = vmatpush3.xpose.msra.mxu0 %v1419_v58 }
 0x437   :  { %2412 = vmatprep.subr.mxu0 %v1418_v12 }
 0x43a   :  { %2413 = vmatpush3.xpose.msra.mxu0 %v1418_v12 }
 0x43b   :  { %2414 = vmatprep.subr.mxu0 %v1417_v25 }
 0x43e   :  { %2415 = vmatpush3.xpose.msra.mxu0 %v1417_v25 }
 0x43f   :  { %2416 = vmatprep.subr.mxu0 %v1416_v49 }
 0x442   :  { %2417 = vmatpush3.xpose.msra.mxu0 %v1416_v49 }
 0x443   :  { %2418 = vmatprep.subr.mxu0 %v1415_v0 }
 0x446   :  { %2419 = vmatpush3.xpose.msra.mxu0 %v1415_v0 }
 0x447   :  { %2420 = vmatprep.subr.mxu0 %v1414_v20 }
 0x44a   :  { %2421 = vmatpush3.xpose.msra.mxu0 %v1414_v20 }
 0x44b   :  { %2422 = vmatprep.subr.mxu0 %v1413_v16 }
 0x44e   :  { %2423 = vmatpush3.xpose.msra.mxu0 %v1413_v16 }
 0x44f   :  { %2424 = vmatprep.subr.mxu0 %v1412_v2 }
 0x452   :  { %2425 = vmatpush3.xpose.msra.mxu0 %v1412_v2 }
 0x4be   :  { %v2316_v14 = vpop.f32.mrf.mxu0 }
 0x4c0   :  { %v1053_v15 = vpop.f32.mrf.mxu0 }
 0x4c1   :  { %2370 = vmatprep.mubr.f32.mxu1 %v1053_v15 }
 0x4c2   :  { %2371 = vmatmul.mubr.f32.vlgmr.msra.gmra.mxu1 %v2316_v14 }
 0x4c3   :  { %v2319_v30 = vpop.f32.mrf.mxu0 }
 0x4c5   :  { %v1063_v35 = vpop.f32.mrf.mxu0 }
 0x4c6   :  { %2373 = vmatprep.mubr.f32.mxu1 %v1063_v35 }
 0x4c7   :  { %v2322_v36 = vpop.f32.mrf.mxu0  ;;  %2374 = vmatmul.mubr.f32.gmra.mxu1 %v2319_v30 }
 0x4c9   :  { %v1073_v41 = vpop.f32.mrf.mxu0 }
 0x4ca   :  { %2376 = vmatprep.mubr.f32.mxu1 %v1073_v41 }
 0x4cb   :  { %v2325_v18 = vpop.f32.mrf.mxu0  ;;  %2377 = vmatmul.mubr.f32.gmra.mxu1 %v2322_v36 }
 0x4cd   :  { %v1083_v51 = vpop.f32.mrf.mxu0 }
 0x4ce   :  { %2379 = vmatprep.mubr.f32.mxu1 %v1083_v51 }
 0x4cf   :  { %v2328_v50 = vpop.f32.mrf.mxu0  ;;  %2380 = vmatmul.mubr.f32.gmra.mxu1 %v2325_v18 }
 0x4d1   :  { %v1093_v44 = vpop.f32.mrf.mxu0 }
 0x4d2   :  { %2382 = vmatprep.mubr.f32.mxu1 %v1093_v44 }
 0x4d3   :  { %v2331_v46 = vpop.f32.mrf.mxu0  ;;  %2383 = vmatmul.mubr.f32.gmra.mxu1 %v2328_v50 }
 0x4d5   :  { %v1103_v19 = vpop.f32.mrf.mxu0 }
 0x4d6   :  { %2385 = vmatprep.mubr.f32.mxu1 %v1103_v19 }
 0x4d7   :  { %v2334_v47 = vpop.f32.mrf.mxu0  ;;  %2386 = vmatmul.mubr.f32.gmra.mxu1 %v2331_v46 }
 0x4d9   :  { %v1113_v52 = vpop.f32.mrf.mxu0 }
 0x4da   :  { %2388 = vmatprep.mubr.f32.mxu1 %v1113_v52 }
 0x4db   :  { %v2337_v23 = vpop.f32.mrf.mxu0  ;;  %2389 = vmatmul.mubr.f32.gmra.mxu1 %v2334_v47 }
 0x4dd   :  { %v1123_v54 = vpop.f32.mrf.mxu0 }
 0x4de   :  { %2391 = vmatprep.mubr.f32.mxu1 %v1123_v54 }
 0x4df   :  { %2392 = vmatmul.mubr.f32.gmra.mxu1 %v2337_v23 }
 0x582   :  { %v2372_v24 = vpop.f32.mrf.mxu1 }
 0x583   :  { %v3632_v28 = vadd.f32 %v2372_v24, %v3629_v31 }
 0x584   :  { %v1221_v40 = vpop.f32.mrf.mxu1 }
 0x585   :  { %v1976_v17 = vmul.f32 -1.442695, %v3632_v28  ;;  %v3636_v53 = vadd.f32 %v3629_v31, %v1221_v40 }
 0x587   :  { %2550 = vpow2.f32 %v1976_v17  ;;  %v1975_v4 = vmul.f32 -1.442695, %v3636_v53  ;;  %v2375_v48 = vpop.f32.mrf.mxu1 }
 0x588   :  { %v3640_v38 = vadd.f32 %v2375_v48, %v3629_v31 }
 0x589   :  { %2552 = vpow2.f32 %v1975_v4  ;;  %v1231_v29 = vpop.f32.mrf.mxu1 }
 0x58a   :  { %v1978_v56 = vmul.f32 -1.442695, %v3640_v38  ;;  %v3644_v39 = vadd.f32 %v3629_v31, %v1231_v29 }
 0x58b   :  { %v2378_v8 = vpop.f32.mrf.mxu1 }
 0x58c   :  { %2554 = vpow2.f32 %v1978_v56  ;;  %v1977_v5 = vmul.f32 -1.442695, %v3644_v39  ;;  %v3648_v10 = vadd.f32 %v2378_v8, %v3629_v31 }
 0x58d   :  { %v1241_v59 = vpop.f32.mrf.mxu1 }
 0x58e   :  { %2556 = vpow2.f32 %v1977_v5  ;;  %v1980_v27 = vmul.f32 -1.442695, %v3648_v10  ;;  %v3652_v34 = vadd.f32 %v3629_v31, %v1241_v59 }
 0x58f   :  { %v2381_v1 = vpop.f32.mrf.mxu1 }
 0x590   :  { %2558 = vpow2.f32 %v1980_v27  ;;  %v1979_v60 = vmul.f32 -1.442695, %v3652_v34  ;;  %v3656_v21 = vadd.f32 %v2381_v1, %v3629_v31 }
 0x591   :  { %v1251_v9 = vpop.f32.mrf.mxu1 }
 0x592   :  { %2560 = vpow2.f32 %v1979_v60  ;;  %v1982_v61 = vmul.f32 -1.442695, %v3656_v21  ;;  %v3660_v3 = vadd.f32 %v3629_v31, %v1251_v9 }
 0x593   :  { %v2384_v63 = vpop.f32.mrf.mxu1 }
 0x594   :  { %v2551_v62 = vpop.eup %2550  ;;  %2562 = vpow2.f32 %v1982_v61  ;;  %v1981_v6 = vmul.f32 -1.442695, %v3660_v3  ;;  %v3664_v37 = vadd.f32 %v2384_v63, %v3629_v31 }
 0x595   :  { %v1349_v26 = vadd.f32 1.0, %v2551_v62  ;;  %v1261_v13 = vpop.f32.mrf.mxu1 }
 0x596   :  { %v2553_v33 = vpop.eup %2552  ;;  %2564 = vpow2.f32 %v1981_v6  ;;  %v1984_v45 = vmul.f32 -1.442695, %v3664_v37  ;;  %v3668_v11 = vadd.f32 %v3629_v31, %v1261_v13 }
 0x597   :  { %2566 = vrcp.f32 %v1349_v26  ;;  %v1348_v55 = vadd.f32 1.0, %v2553_v33  ;;  %v2387_v42 = vpop.f32.mrf.mxu1 }
 0x598   :  { %2568 = vpow2.f32 %v1984_v45  ;;  %v1983_v7 = vmul.f32 -1.442695, %v3668_v11  ;;  %v3672_v43 = vadd.f32 %v2387_v42, %v3629_v31 }
 0x599   :  { %v2555_v14 = vpop.eup %2554  ;;  %2570 = vrcp.f32 %v1348_v55  ;;  %v1271_v15 = vpop.f32.mrf.mxu1 }
 0x59a   :  { %v1351_v30 = vadd.f32 1.0, %v2555_v14  ;;  %2572 = vpow2.f32 %v1983_v7  ;;  %v1986_v35 = vmul.f32 -1.442695, %v3672_v43  ;;  %v3676_v36 = vadd.f32 %v3629_v31, %v1271_v15 }
 0x59b   :  { %v2557_v41 = vpop.eup %2556  ;;  %v2390_v18 = vpop.f32.mrf.mxu1 }
 0x59c   :  { %2574 = vrcp.f32 %v1351_v30  ;;  %v1350_v51 = vadd.f32 1.0, %v2557_v41  ;;  %v1985_v50 = vmul.f32 -1.442695, %v3676_v36  ;;  %v3680_v44 = vadd.f32 %v2390_v18, %v3629_v31 }
 0x59d   :  { %v2559_v46 = vpop.eup %2558  ;;  %2576 = vpow2.f32 %v1986_v35  ;;  %v1281_v19 = vpop.f32.mrf.mxu1 }
 0x59e   :  { %2578 = vrcp.f32 %v1350_v51  ;;  %v1353_v47 = vadd.f32 1.0, %v2559_v46  ;;  %v1988_v52 = vmul.f32 -1.442695, %v3680_v44  ;;  %v3684_v23 = vadd.f32 %v3629_v31, %v1281_v19 }
 0x59f   :  { %v2561_v54 = vpop.eup %2560  ;;  %2580 = vpow2.f32 %v1985_v50  ;;  %v2393_v22 = vpop.f32.mrf.mxu1 }
 0x5a0   :  { %2582 = vrcp.f32 %v1353_v47  ;;  %v1352_v57 = vadd.f32 1.0, %v2561_v54  ;;  %v1987_v58 = vmul.f32 -1.442695, %v3684_v23  ;;  %v3688_v12 = vadd.f32 %v2393_v22, %v3629_v31 }
 0x5a1   :  { %v2563_v25 = vpop.eup %2562  ;;  %2584 = vpow2.f32 %v1988_v52  ;;  %v1291_v49 = vpop.f32.mrf.mxu1 }
 0x5a2   :  { %2586 = vrcp.f32 %v1352_v57  ;;  %v1355_v0 = vadd.f32 1.0, %v2563_v25  ;;  %v1990_v20 = vmul.f32 -1.442695, %v3688_v12  ;;  %v3692_v16 = vadd.f32 %v3629_v31, %v1291_v49 }
 0x5a3   :  { %v2565_v2 = vpop.eup %2564  ;;  %2588 = vpow2.f32 %v1987_v58 }
 0x5a4   :  { %v2567_v24 = vpop.eup %2566  ;;  %2590 = vrcp.f32 %v1355_v0  ;;  %v1354_v40 = vadd.f32 1.0, %v2565_v2  ;;  %v1989_v17 = vmul.f32 -1.442695, %v3692_v16 }
 0x5a5   :  { %v2569_v4 = vpop.eup %2568  ;;  %2592 = vpow2.f32 %v1990_v20  ;;  %v1397_v5 = vmul.f32 %v2567_v24, %v3632_v28 }
 0x5a6   :  { %v2571_v48 = vpop.eup %2570  ;;  %2594 = vrcp.f32 %v1354_v40  ;;  %v1357_v29 = vadd.f32 1.0, %v2569_v4 }
 0x5a7   :  { %v2573_v56 = vpop.eup %2572  ;;  %v1396_v8 = vmul.f32 %v2571_v48, %v3636_v53  ;;  %2596 = vpow2.f32 %v1989_v17 }
 0x5a8   :  { %v1356_v31 = vadd.f32 1.0, %v2573_v56  ;;  %2598 = vrcp.f32 %v1357_v29 }
 0x5a9   :  { %v2575_v59 = vpop.eup %2574  ;;  %2426 = vmatprep.mubr.f32.mxu0 %v1396_v8 }
 0x5aa   :  { %v2577_v27 = vpop.eup %2576  ;;  %2600 = vrcp.f32 %v1356_v31  ;;  %2427 = vmatmul.mubr.f32.vlgmr.msra.gmra.mxu0 %v1397_v5  ;;  %v1399_v62 = vmul.f32 %v2575_v59, %v3640_v38 }
 0x5ab   :  { %v2579_v1 = vpop.eup %2578  ;;  %v1359_v60 = vadd.f32 1.0, %v2577_v27 }
 0x5ac   :  { %v2581_v9 = vpop.eup %2580  ;;  %v1398_v61 = vmul.f32 %v2579_v1, %v3644_v39 }
 0x5ad   :  { %v2583_v63 = vpop.eup %2582  ;;  %v1358_v6 = vadd.f32 1.0, %v2581_v9  ;;  %2602 = vrcp.f32 %v1359_v60 }
 0x5ae   :  { %v2585_v53 = vpop.eup %2584  ;;  %2429 = vmatprep.mubr.f32.mxu0 %v1398_v61  ;;  %v1401_v55 = vmul.f32 %v2583_v63, %v3648_v10 }
 0x5af   :  { %v2587_v28 = vpop.eup %2586  ;;  %2604 = vrcp.f32 %v1358_v6  ;;  %v1361_v26 = vadd.f32 1.0, %v2585_v53  ;;  %2430 = vmatmul.mubr.f32.gmra.mxu0 %v1399_v62 }
 0x5b0   :  { %v2589_v13 = vpop.eup %2588  ;;  %v1400_v33 = vmul.f32 %v2587_v28, %v3652_v34 }
 0x5b1   :  { %v2591_v45 = vpop.eup %2590  ;;  %v1360_v42 = vadd.f32 1.0, %v2589_v13  ;;  %2606 = vrcp.f32 %v1361_v26 }
 0x5b2   :  { %v2593_v7 = vpop.eup %2592  ;;  %2432 = vmatprep.mubr.f32.mxu0 %v1400_v33  ;;  %v1403_v30 = vmul.f32 %v2591_v45, %v3656_v21 }
 0x5b3   :  { %v2595_v39 = vpop.eup %2594  ;;  %2608 = vrcp.f32 %v1360_v42  ;;  %v1363_v38 = vadd.f32 1.0, %v2593_v7  ;;  %2433 = vmatmul.mubr.f32.gmra.mxu0 %v1401_v55 }
 0x5b4   :  { %v2597_v14 = vpop.eup %2596  ;;  %v1402_v15 = vmul.f32 %v2595_v39, %v3660_v3 }
 0x5b5   :  { %v1362_v35 = vadd.f32 1.0, %v2597_v14  ;;  %v2599_v41 = vpop.eup %2598  ;;  %2610 = vrcp.f32 %v1363_v38 }
 0x5b6   :  { %2435 = vmatprep.mubr.f32.mxu0 %v1402_v15  ;;  %v1405_v18 = vmul.f32 %v2599_v41, %v3664_v37 }
 0x5b7   :  { %v2601_v34 = vpop.eup %2600  ;;  %2612 = vrcp.f32 %v1362_v35  ;;  %2436 = vmatmul.mubr.f32.gmra.mxu0 %v1403_v30 }
 0x5b8   :  { %v1404_v10 = vmul.f32 %v2601_v34, %v3668_v11 }
 0x5ba   :  { %2438 = vmatprep.mubr.f32.mxu0 %v1404_v10  ;;  %v2603_v51 = vpop.eup %2602 }
 0x5bb   :  { %2439 = vmatmul.mubr.f32.gmra.mxu0 %v1405_v18  ;;  %v1407_v3 = vmul.f32 %v2603_v51, %v3672_v43  ;;  %v3714_v43 = vld [vmem:[%s4058_s11] ss:$0 sm:$0xff] }
 0x5bc   :  { %v2605_v50 = vpop.eup %2604 }
 0x5bd   :  { %v1406_v46 = vmul.f32 %v2605_v50, %v3676_v36 }
 0x5be   :  { %v2607_v21 = vpop.eup %2606 }
 0x5bf   :  { %2441 = vmatprep.mubr.f32.mxu0 %v1406_v46  ;;  %v1409_v52 = vmul.f32 %v2607_v21, %v3680_v44 }
 0x5c0   :  { %v2609_v19 = vpop.eup %2608  ;;  %2442 = vmatmul.mubr.f32.gmra.mxu0 %v1407_v3 }
 0x5c1   :  { %v1408_v47 = vmul.f32 %v2609_v19, %v3684_v23 }
 0x5c2   :  { %v2611_v54 = vpop.eup %2610 }
 0x5c3   :  { %2444 = vmatprep.mubr.f32.mxu0 %v1408_v47  ;;  %v1411_v22 = vmul.f32 %v2611_v54, %v3688_v12 }
 0x5c4   :  { %v2613_v11 = vpop.eup %2612  ;;  %2445 = vmatmul.mubr.f32.gmra.mxu0 %v1409_v52 }
 0x5c5   :  { %v1410_v37 = vmul.f32 %v2613_v11, %v3692_v16 }
 0x5c7   :  { %2447 = vmatprep.mubr.f32.mxu0 %v1410_v37 }
 0x5c8   :  { %2448 = vmatmul.mubr.f32.gmra.mxu0 %v1411_v22 }
 0x66a   :  { %v2428_v36 = vpop.f32.mrf.mxu0 }
 0x66b   :  { %v3717_v23 = vadd.f32 %v2428_v36, %v3714_v43 }
 0x66c   :  { %v1501_v44 = vpop.f32.mrf.mxu0 }
 0x66d   :  { %v1993_v57 = vmul.f32 -1.442695, %v3717_v23  ;;  %v3721_v58 = vadd.f32 %v3714_v43, %v1501_v44 }
 0x66f   :  { %2614 = vpow2.f32 %v1993_v57  ;;  %v1992_v12 = vmul.f32 -1.442695, %v3721_v58  ;;  %v2431_v25 = vpop.f32.mrf.mxu0 }
 0x670   :  { %v3725_v49 = vadd.f32 %v2431_v25, %v3714_v43 }
 0x671   :  { %2616 = vpow2.f32 %v1992_v12  ;;  %v1511_v0 = vpop.f32.mrf.mxu0 }
 0x672   :  { %v1995_v20 = vmul.f32 -1.442695, %v3725_v49  ;;  %v3729_v16 = vadd.f32 %v3714_v43, %v1511_v0 }
 0x673   :  { %v2434_v2 = vpop.f32.mrf.mxu0 }
 0x674   :  { %2618 = vpow2.f32 %v1995_v20  ;;  %v1994_v24 = vmul.f32 -1.442695, %v3729_v16  ;;  %v3733_v40 = vadd.f32 %v2434_v2, %v3714_v43 }
 0x675   :  { %v1521_v17 = vpop.f32.mrf.mxu0 }
 0x676   :  { %2620 = vpow2.f32 %v1994_v24  ;;  %v1997_v4 = vmul.f32 -1.442695, %v3733_v40  ;;  %v3737_v48 = vadd.f32 %v3714_v43, %v1521_v17 }
 0x677   :  { %v2437_v29 = vpop.f32.mrf.mxu0 }
 0x678   :  { %2622 = vpow2.f32 %v1997_v4  ;;  %v1996_v56 = vmul.f32 -1.442695, %v3737_v48  ;;  %v3741_v8 = vadd.f32 %v2437_v29, %v3714_v43 }
 0x679   :  { %v1531_v5 = vpop.f32.mrf.mxu0 }
 0x67a   :  { %2624 = vpow2.f32 %v1996_v56  ;;  %v1999_v31 = vmul.f32 -1.442695, %v3741_v8  ;;  %v3745_v59 = vadd.f32 %v3714_v43, %v1531_v5 }
 0x67b   :  { %v2440_v27 = vpop.f32.mrf.mxu0 }
 0x67c   :  { %v2615_v1 = vpop.eup %2614  ;;  %2626 = vpow2.f32 %v1999_v31  ;;  %v1998_v60 = vmul.f32 -1.442695, %v3745_v59  ;;  %v3749_v9 = vadd.f32 %v2440_v27, %v3714_v43 }
 0x67d   :  { %v1629_v61 = vadd.f32 1.0, %v2615_v1  ;;  %v1541_v63 = vpop.f32.mrf.mxu0 }
 0x67e   :  { %v2617_v62 = vpop.eup %2616  ;;  %2628 = vpow2.f32 %v1998_v60  ;;  %v2001_v6 = vmul.f32 -1.442695, %v3749_v9  ;;  %v3753_v53 = vadd.f32 %v3714_v43, %v1541_v63 }
 0x67f   :  { %2630 = vrcp.f32 %v1629_v61  ;;  %v1628_v28 = vadd.f32 1.0, %v2617_v62 }
 0x680   :  { %2632 = vpow2.f32 %v2001_v6  ;;  %v2000_v26 = vmul.f32 -1.442695, %v3753_v53  ;;  %v2443_v13 = vpop.f32.mrf.mxu0 }
 0x681   :  { %v2619_v33 = vpop.eup %2618  ;;  %2634 = vrcp.f32 %v1628_v28  ;;  %v3757_v45 = vadd.f32 %v2443_v13, %v3714_v43 }
 0x682   :  { %v1631_v55 = vadd.f32 1.0, %v2619_v33  ;;  %2636 = vpow2.f32 %v2000_v26  ;;  %v1551_v42 = vpop.f32.mrf.mxu0 }
 0x683   :  { %v2621_v7 = vpop.eup %2620  ;;  %v2003_v39 = vmul.f32 -1.442695, %v3757_v45  ;;  %v3761_v38 = vadd.f32 %v3714_v43, %v1551_v42 }
 0x684   :  { %2638 = vrcp.f32 %v1631_v55  ;;  %v1630_v14 = vadd.f32 1.0, %v2621_v7  ;;  %v2446_v15 = vpop.f32.mrf.mxu0 }
 0x685   :  { %v2623_v30 = vpop.eup %2622  ;;  %2640 = vpow2.f32 %v2003_v39  ;;  %v2002_v35 = vmul.f32 -1.442695, %v3761_v38  ;;  %v3765_v41 = vadd.f32 %v2446_v15, %v3714_v43 }
 0x686   :  { %2642 = vrcp.f32 %v1630_v14  ;;  %v1633_v34 = vadd.f32 1.0, %v2623_v30  ;;  %v1561_v10 = vpop.f32.mrf.mxu0 }
 0x687   :  { %v2625_v18 = vpop.eup %2624  ;;  %2644 = vpow2.f32 %v2002_v35  ;;  %v2005_v51 = vmul.f32 -1.442695, %v3765_v41  ;;  %v3769_v50 = vadd.f32 %v3714_v43, %v1561_v10 }
 0x688   :  { %2646 = vrcp.f32 %v1633_v34  ;;  %v1632_v46 = vadd.f32 1.0, %v2625_v18  ;;  %v2449_v3 = vpop.f32.mrf.mxu0 }
 0x689   :  { %v2627_v21 = vpop.eup %2626  ;;  %2648 = vpow2.f32 %v2005_v51  ;;  %v2004_v19 = vmul.f32 -1.442695, %v3769_v50  ;;  %v3773_v47 = vadd.f32 %v2449_v3, %v3714_v43 }
 0x68a   :  { %2650 = vrcp.f32 %v1632_v46  ;;  %v1635_v52 = vadd.f32 1.0, %v2627_v21  ;;  %v1571_v54 = vpop.f32.mrf.mxu0 }
 0x68b   :  { %v2629_v11 = vpop.eup %2628  ;;  %2652 = vpow2.f32 %v2004_v19  ;;  %v2007_v37 = vmul.f32 -1.442695, %v3773_v47  ;;  %v3777_v22 = vadd.f32 %v3714_v43, %v1571_v54 }
 0x68c   :  { %v2631_v36 = vpop.eup %2630  ;;  %2654 = vrcp.f32 %v1635_v52  ;;  %v1634_v44 = vadd.f32 1.0, %v2629_v11 }
 0x68d   :  { %v2633_v57 = vpop.eup %2632  ;;  %2656 = vpow2.f32 %v2007_v37  ;;  %v2006_v12 = vmul.f32 -1.442695, %v3777_v22  ;;  %v3781_v25 = vmul.f32 %v2631_v36, %v3717_v23 }
 0x68e   :  { %v2635_v0 = vpop.eup %2634  ;;  %2658 = vrcp.f32 %v1634_v44  ;;  %v1637_v20 = vadd.f32 1.0, %v2633_v57 }
 0x68f   :  { %v2637_v2 = vpop.eup %2636  ;;  %2660 = vpow2.f32 %v2006_v12  ;;  %1696 = vadd.xlane.f32.xlu1 %v3781_v25  ;;  %v3785_v43 = vmul.f32 %v2635_v0, %v3721_v58 }
 0x690   :  { %2662 = vrcp.f32 %v1637_v20  ;;  %v1636_v24 = vadd.f32 1.0, %v2637_v2 }
 0x691   :  { %v2639_v17 = vpop.eup %2638  ;;  %1694 = vadd.xlane.f32.xlu0 %v3785_v43 }
 0x692   :  { %v2641_v4 = vpop.eup %2640  ;;  %2664 = vrcp.f32 %v1636_v24  ;;  %v3789_v23 = vmul.f32 %v2639_v17, %v3725_v49 }
 0x693   :  { %v2643_v29 = vpop.eup %2642  ;;  %v1639_v56 = vadd.f32 1.0, %v2641_v4 }
 0x694   :  { %v2645_v5 = vpop.eup %2644  ;;  %1700 = vadd.xlane.f32.xlu1 %v3789_v23  ;;  %v3793_v31 = vmul.f32 %v2643_v29, %v3729_v16 }
 0x695   :  { %v2647_v58 = vpop.eup %2646  ;;  %2666 = vrcp.f32 %v1639_v56  ;;  %v1638_v27 = vadd.f32 1.0, %v2645_v5 }
 0x696   :  { %v2649_v1 = vpop.eup %2648  ;;  %1698 = vadd.xlane.f32.xlu0 %v3793_v31  ;;  %v3797_v60 = vmul.f32 %v2647_v58, %v3733_v40 }
 0x697   :  { %v2651_v61 = vpop.eup %2650  ;;  %2668 = vrcp.f32 %v1638_v27  ;;  %v1641_v49 = vadd.f32 1.0, %v2649_v1 }
 0x698   :  { %v2653_v63 = vpop.eup %2652  ;;  %1704 = vadd.xlane.f32.xlu1 %v3797_v60  ;;  %v3801_v62 = vmul.f32 %v2651_v61, %v3737_v48 }
 0x699   :  { %v2655_v16 = vpop.eup %2654  ;;  %2670 = vrcp.f32 %v1641_v49  ;;  %v1640_v6 = vadd.f32 1.0, %v2653_v63 }
 0x69a   :  { %v2657_v28 = vpop.eup %2656  ;;  %1702 = vadd.xlane.f32.xlu0 %v3801_v62  ;;  %v3805_v26 = vmul.f32 %v2655_v16, %v3741_v8 }
 0x69b   :  { %v2659_v40 = vpop.eup %2658  ;;  %2672 = vrcp.f32 %v1640_v6  ;;  %v1643_v13 = vadd.f32 1.0, %v2657_v28 }
 0x69c   :  { %v2661_v33 = vpop.eup %2660  ;;  %1708 = vadd.xlane.f32.xlu1 %v3805_v26  ;;  %v3809_v55 = vmul.f32 %v2659_v40, %v3745_v59 }
 0x69d   :  { %v2663_v48 = vpop.eup %2662  ;;  %2674 = vrcp.f32 %v1643_v13  ;;  %v1642_v42 = vadd.f32 1.0, %v2661_v33 }
 0x69e   :  { %1706 = vadd.xlane.f32.xlu0 %v3809_v55  ;;  %v3813_v7 = vmul.f32 %v2663_v48, %v3749_v9 }
 0x69f   :  { %v2665_v39 = vpop.eup %2664  ;;  %2676 = vrcp.f32 %v1642_v42 }
 0x6a0   :  { %1712 = vadd.xlane.f32.xlu1 %v3813_v7  ;;  %v3817_v8 = vmul.f32 %v2665_v39, %v3753_v53 }
 0x6a2   :  { %v2667_v14 = vpop.eup %2666  ;;  %1710 = vadd.xlane.f32.xlu0 %v3817_v8 }
 0x6a3   :  { %v3821_v59 = vmul.f32 %v2667_v14, %v3757_v45 }
 0x6a4   :  { %v2669_v15 = vpop.eup %2668 }
 0x6a5   :  { %1716 = vadd.xlane.f32.xlu1 %v3821_v59  ;;  %v3825_v30 = vmul.f32 %v2669_v15, %v3761_v38 }
 0x6a6   :  { %v2671_v9 = vpop.eup %2670 }
 0x6a7   :  { %v3828_v35 = vmul.f32 %v2671_v9, %v3765_v41  ;;  %1714 = vadd.xlane.f32.xlu0 %v3825_v30 }
 0x6a8   :  { %v2673_v53 = vpop.eup %2672 }
 0x6a9   :  { %1720 = vadd.xlane.f32.xlu1 %v3828_v35  ;;  %v3833_v34 = vmul.f32 %v2673_v53, %v3769_v50 }
 0x6aa   :  { %v2675_v45 = vpop.eup %2674 }
 0x6ab   :  { %v3836_v10 = vmul.f32 %v2675_v45, %v3773_v47  ;;  %1718 = vadd.xlane.f32.xlu0 %v3833_v34 }
 0x6ac   :  { %v2677_v38 = vpop.eup %2676 }
 0x6ad   :  { %1724 = vadd.xlane.f32.xlu1 %v3836_v10  ;;  %v3841_v41 = vmul.f32 %v2677_v38, %v3777_v22 }
 0x6af   :  { %1722 = vadd.xlane.f32.xlu0 %v3841_v41 }
 0x718   :  { %v1697_v18 = vpop.xlane.xlu1 %1696 }
 0x719   :  { %v1727_v51 = vmul.f32 0.03125, %v1697_v18 }
 0x71a   :  { %v1695_v46 = vpop.xlane.xlu0 %1694 }
 0x71b   :  { %v1743_v50 = vsub.f32 %v3781_v25, %v1727_v51  ;;  %v1726_v3 = vmul.f32 0.03125, %v1695_v46 }
 0x71d   :  { %v3846_v21 = vmul.f32 %v2916_v32, %v1743_v50  ;;  %v1742_v19 = vsub.f32 %v3785_v43, %v1726_v3  ;;  %v1701_v47 = vpop.xlane.xlu1 %1700 }
 0x71e   :  { %v1729_v52 = vmul.f32 0.03125, %v1701_v47 }
 0x71f   :  { %v1699_v54 = vpop.xlane.xlu0 %1698  ;;  %v1775_v11 = vmul.f32 %v3846_v21, %v3846_v21  ;;  %v3852_v37 = vmul.f32 %v2916_v32, %v1742_v19 }
 0x720   :  { %v1745_v22 = vsub.f32 %v3789_v23, %v1729_v52  ;;  %v1728_v36 = vmul.f32 0.03125, %v1699_v54 }
 0x721   :  { %v1705_v44 = vpop.xlane.xlu1 %1704  ;;  %1792 = vadd.xlane.f32.xlu1 %v1775_v11  ;;  %v1774_v57 = vmul.f32 %v3852_v37, %v3852_v37 }
 0x722   :  { %v3858_v12 = vmul.f32 %v2916_v32, %v1745_v22  ;;  %v1744_v25 = vsub.f32 %v3793_v31, %v1728_v36  ;;  %v1731_v0 = vmul.f32 0.03125, %v1705_v44 }
 0x723   :  { %v1703_v20 = vpop.xlane.xlu0 %1702  ;;  %1790 = vadd.xlane.f32.xlu0 %v1774_v57 }
 0x724   :  { %v1747_v2 = vsub.f32 %v3797_v60, %v1731_v0  ;;  %v1730_v43 = vmul.f32 0.03125, %v1703_v20  ;;  %v1777_v24 = vmul.f32 %v3858_v12, %v3858_v12  ;;  %v3865_v17 = vmul.f32 %v2916_v32, %v1744_v25 }
 0x725   :  { %v1709_v4 = vpop.xlane.xlu1 %1708 }
 0x726   :  { %v3868_v23 = vmul.f32 %v2916_v32, %v1747_v2  ;;  %v1746_v29 = vsub.f32 %v3801_v62, %v1730_v43  ;;  %v1733_v56 = vmul.f32 0.03125, %v1709_v4  ;;  %1796 = vadd.xlane.f32.xlu1 %v1777_v24  ;;  %v1776_v5 = vmul.f32 %v3865_v17, %v3865_v17 }
 0x727   :  { %v1707_v31 = vpop.xlane.xlu0 %1706 }
 0x728   :  { %v1749_v58 = vsub.f32 %v3805_v26, %v1733_v56  ;;  %v1732_v27 = vmul.f32 0.03125, %v1707_v31  ;;  %1794 = vadd.xlane.f32.xlu0 %v1776_v5  ;;  %v1779_v1 = vmul.f32 %v3868_v23, %v3868_v23  ;;  %v3877_v60 = vmul.f32 %v2916_v32, %v1746_v29 }
 0x729   :  { %v1713_v61 = vpop.xlane.xlu1 %1712 }
 0x72a   :  { %v3880_v49 = vmul.f32 %v2916_v32, %v1749_v58  ;;  %v1748_v63 = vsub.f32 %v3809_v55, %v1732_v27  ;;  %v1735_v62 = vmul.f32 0.03125, %v1713_v61  ;;  %1800 = vadd.xlane.f32.xlu1 %v1779_v1  ;;  %v1778_v16 = vmul.f32 %v3877_v60, %v3877_v60 }
 0x72b   :  { %v1711_v6 = vpop.xlane.xlu0 %1710 }
 0x72c   :  { %v1751_v28 = vsub.f32 %v3813_v7, %v1735_v62  ;;  %v1734_v26 = vmul.f32 0.03125, %v1711_v6  ;;  %1798 = vadd.xlane.f32.xlu0 %v1778_v16  ;;  %v1781_v40 = vmul.f32 %v3880_v49, %v3880_v49  ;;  %v3889_v13 = vmul.f32 %v2916_v32, %v1748_v63 }
 0x72e   :  { %v3892_v33 = vmul.f32 %v2916_v32, %v1751_v28  ;;  %v1750_v55 = vsub.f32 %v3817_v8, %v1734_v26  ;;  %v1717_v48 = vpop.xlane.xlu1 %1716  ;;  %1804 = vadd.xlane.f32.xlu1 %v1781_v40  ;;  %v1780_v42 = vmul.f32 %v3889_v13, %v3889_v13 }
 0x72f   :  { %v1737_v39 = vmul.f32 0.03125, %v1717_v48 }
 0x730   :  { %v3898_v7 = vmul.f32 %v2916_v32, %v1750_v55  ;;  %v1715_v14 = vpop.xlane.xlu0 %1714  ;;  %1802 = vadd.xlane.f32.xlu0 %v1780_v42  ;;  %v1783_v15 = vmul.f32 %v3892_v33, %v3892_v33 }
 0x731   :  { %v1753_v9 = vsub.f32 %v3821_v59, %v1737_v39  ;;  %v1736_v53 = vmul.f32 0.03125, %v1715_v14 }
 0x732   :  { %v1721_v45 = vpop.xlane.xlu1 %1720  ;;  %1808 = vadd.xlane.f32.xlu1 %v1783_v15  ;;  %v1782_v8 = vmul.f32 %v3898_v7, %v3898_v7  ;;  %v3943_v15 = vld [vmem:[%s4059_s12] ss:$0 sm:$0xff] }
 0x733   :  { %v3906_v38 = vmul.f32 %v2916_v32, %v1753_v9  ;;  %v1752_v18 = vsub.f32 %v3825_v30, %v1736_v53  ;;  %v1739_v51 = vmul.f32 0.03125, %v1721_v45 }
 0x734   :  { %v1719_v46 = vpop.xlane.xlu0 %1718  ;;  %1806 = vadd.xlane.f32.xlu0 %v1782_v8 }
 0x735   :  { %v3910_v50 = vmul.f32 %v2916_v32, %v1752_v18  ;;  %v1755_v3 = vsub.f32 %v3828_v35, %v1739_v51  ;;  %v1738_v59 = vmul.f32 0.03125, %v1719_v46  ;;  %v1785_v19 = vmul.f32 %v3906_v38, %v3906_v38  ;;  %v3949_v51 = vld [vmem:[%s4060_s13] ss:$0 sm:$0xff] }
 0x736   :  { %v1725_v47 = vpop.xlane.xlu1 %1724 }
 0x737   :  { %v3916_v52 = vmul.f32 %v2916_v32, %v1755_v3  ;;  %v1754_v54 = vsub.f32 %v3833_v34, %v1738_v59  ;;  %v1741_v11 = vmul.f32 0.03125, %v1725_v47  ;;  %1812 = vadd.xlane.f32.xlu1 %v1785_v19  ;;  %v1784_v30 = vmul.f32 %v3910_v50, %v3910_v50 }
 0x738   :  { %v1723_v22 = vpop.xlane.xlu0 %1722 }
 0x739   :  { %v3922_v36 = vmul.f32 %v2916_v32, %v1754_v54  ;;  %v1757_v35 = vsub.f32 %v3836_v10, %v1741_v11  ;;  %v1740_v44 = vmul.f32 0.03125, %v1723_v22  ;;  %1810 = vadd.xlane.f32.xlu0 %v1784_v30  ;;  %v1787_v57 = vmul.f32 %v3916_v52, %v3916_v52 }
 0x73b   :  { %v3928_v25 = vmul.f32 %v2916_v32, %v1757_v35  ;;  %v1756_v34 = vsub.f32 %v3841_v41, %v1740_v44  ;;  %1816 = vadd.xlane.f32.xlu1 %v1787_v57  ;;  %v1786_v0 = vmul.f32 %v3922_v36, %v3922_v36 }
 0x73d   :  { %v3934_v20 = vmul.f32 %v2916_v32, %v1756_v34  ;;  %1814 = vadd.xlane.f32.xlu0 %v1786_v0  ;;  %v1789_v10 = vmul.f32 %v3928_v25, %v3928_v25 }
 0x73f   :  { %1820 = vadd.xlane.f32.xlu1 %v1789_v10  ;;  %v1788_v2 = vmul.f32 %v3934_v20, %v3934_v20 }
 0x741   :  { %1818 = vadd.xlane.f32.xlu0 %v1788_v2 }
 0x7aa   :  { %v1793_v43 = vpop.xlane.xlu1 %1792 }
 0x7ab   :  { %v1823_v24 = vmul.f32 0.03125, %v1793_v43 }
 0x7ac   :  { %v1791_v4 = vpop.xlane.xlu0 %1790 }
 0x7ad   :  { %v1839_v41 = vadd.f32 1e-05, %v1823_v24  ;;  %v1822_v29 = vmul.f32 0.03125, %v1791_v4 }
 0x7af   :  { %2678 = vrsqrt.f32 %v1839_v41  ;;  %v1838_v56 = vadd.f32 1e-05, %v1822_v29  ;;  %v1797_v5 = vpop.xlane.xlu1 %1796 }
 0x7b0   :  { %v1825_v31 = vmul.f32 0.03125, %v1797_v5 }
 0x7b1   :  { %2680 = vrsqrt.f32 %v1838_v56  ;;  %v1795_v32 = vpop.xlane.xlu0 %1794 }
 0x7b2   :  { %v1841_v58 = vadd.f32 1e-05, %v1825_v31  ;;  %v1824_v27 = vmul.f32 0.03125, %v1795_v32 }
 0x7b3   :  { %v1801_v1 = vpop.xlane.xlu1 %1800 }
 0x7b4   :  { %2682 = vrsqrt.f32 %v1841_v58  ;;  %v1840_v61 = vadd.f32 1e-05, %v1824_v27  ;;  %v1827_v63 = vmul.f32 0.03125, %v1801_v1 }
 0x7b5   :  { %v1799_v62 = vpop.xlane.xlu0 %1798 }
 0x7b6   :  { %2684 = vrsqrt.f32 %v1840_v61  ;;  %v1843_v16 = vadd.f32 1e-05, %v1827_v63  ;;  %v1826_v6 = vmul.f32 0.03125, %v1799_v62 }
 0x7b7   :  { %v1805_v28 = vpop.xlane.xlu1 %1804 }
 0x7b8   :  { %2686 = vrsqrt.f32 %v1843_v16  ;;  %v1842_v26 = vadd.f32 1e-05, %v1826_v6  ;;  %v1829_v40 = vmul.f32 0.03125, %v1805_v28 }
 0x7b9   :  { %v1803_v55 = vpop.xlane.xlu0 %1802 }
 0x7ba   :  { %2688 = vrsqrt.f32 %v1842_v26  ;;  %v1845_v48 = vadd.f32 1e-05, %v1829_v40  ;;  %v1828_v42 = vmul.f32 0.03125, %v1803_v55 }
 0x7bb   :  { %v1809_v39 = vpop.xlane.xlu1 %1808 }
 0x7bc   :  { %v2679_v14 = vpop.eup %2678  ;;  %2690 = vrsqrt.f32 %v1845_v48  ;;  %v1844_v9 = vadd.f32 1e-05, %v1828_v42  ;;  %v1831_v53 = vmul.f32 0.03125, %v1809_v39 }
 0x7bd   :  { %v1871_v45 = vmul.f32 %v2679_v14, %v3846_v21  ;;  %v1807_v8 = vpop.xlane.xlu0 %1806 }
 0x7be   :  { %v2681_v18 = vpop.eup %2680  ;;  %2692 = vrsqrt.f32 %v1844_v9  ;;  %v1847_v46 = vadd.f32 1e-05, %v1831_v53  ;;  %v1830_v3 = vmul.f32 0.03125, %v1807_v8 }
 0x7bf   :  { %v1893_v59 = vmul.f32 %v3943_v15, %v1871_v45  ;;  %v1870_v19 = vmul.f32 %v2681_v18, %v3852_v37 }
 0x7c0   :  { %2694 = vrsqrt.f32 %v1847_v46  ;;  %v1846_v47 = vadd.f32 1e-05, %v1830_v3  ;;  %v1813_v54 = vpop.xlane.xlu1 %1812 }
 0x7c1   :  { %v2683_v11 = vpop.eup %2682  ;;  %v1915_v21 = vadd.f32 %v3949_v51, %v1893_v59  ;;  %v1892_v30 = vmul.f32 %v3943_v15, %v1870_v19  ;;  %v1833_v22 = vmul.f32 0.03125, %v1813_v54 }
 0x7c2   :  { %v1873_v35 = vmul.f32 %v2683_v11, %v3858_v12  ;;  %2696 = vrsqrt.f32 %v1846_v47  ;;  %v1811_v44 = vpop.xlane.xlu0 %1810 }
 0x7c3   :  { %v2685_v57 = vpop.eup %2684  ;;  %1931 = vst [vmem:[%s4061_s14 + $0x8] sm:$0xff] %v1915_v21  ;;  %v1914_v37 = vadd.f32 %v3949_v51, %v1892_v30  ;;  %v1849_v34 = vadd.f32 1e-05, %v1833_v22  ;;  %v1832_v0 = vmul.f32 0.03125, %v1811_v44 }
 0x7c4   :  { %v1895_v10 = vmul.f32 %v3943_v15, %v1873_v35  ;;  %v1872_v2 = vmul.f32 %v2685_v57, %v3865_v17  ;;  %v1817_v43 = vpop.xlane.xlu1 %1816 }
 0x7c5   :  { %v2687_v24 = vpop.eup %2686  ;;  %1930 = vst [vmem:[%s4061_s14] sm:$0xff] %v1914_v37  ;;  %2698 = vrsqrt.f32 %v1849_v34  ;;  %v1848_v12 = vadd.f32 1e-05, %v1832_v0  ;;  %v1835_v4 = vmul.f32 0.03125, %v1817_v43 }
 0x7c6   :  { %v1917_v41 = vadd.f32 %v3949_v51, %v1895_v10  ;;  %v1894_v29 = vmul.f32 %v3943_v15, %v1872_v2  ;;  %v1875_v56 = vmul.f32 %v2687_v24, %v3868_v23  ;;  %v1815_v5 = vpop.xlane.xlu0 %1814 }
 0x7c7   :  { %v2689_v31 = vpop.eup %2688  ;;  %2700 = vrsqrt.f32 %v1848_v12  ;;  %v1851_v32 = vadd.f32 1e-05, %v1835_v4  ;;  %v1834_v17 = vmul.f32 0.03125, %v1815_v5 }
 0x7c8   :  { %1933 = vst [vmem:[%s4061_s14 + $0x18] sm:$0xff] %v1917_v41  ;;  %v1916_v58 = vadd.f32 %v3949_v51, %v1894_v29  ;;  %v1897_v27 = vmul.f32 %v3943_v15, %v1875_v56  ;;  %v1874_v1 = vmul.f32 %v2689_v31, %v3877_v60  ;;  %v1821_v61 = vpop.xlane.xlu1 %1820 }
 0x7c9   :  { %v2691_v63 = vpop.eup %2690  ;;  %2702 = vrsqrt.f32 %v1851_v32  ;;  %v1850_v62 = vadd.f32 1e-05, %v1834_v17  ;;  %v1837_v23 = vmul.f32 0.03125, %v1821_v61 }
 0x7ca   :  { %1932 = vst [vmem:[%s4061_s14 + $0x10] sm:$0xff] %v1916_v58  ;;  %v1919_v16 = vadd.f32 %v3949_v51, %v1897_v27  ;;  %v1896_v6 = vmul.f32 %v3943_v15, %v1874_v1  ;;  %v1877_v28 = vmul.f32 %v2691_v63, %v3880_v49  ;;  %v1819_v26 = vpop.xlane.xlu0 %1818 }
 0x7cb   :  { %v2693_v40 = vpop.eup %2692  ;;  %2704 = vrsqrt.f32 %v1850_v62  ;;  %v1853_v55 = vadd.f32 1e-05, %v1837_v23  ;;  %v1836_v60 = vmul.f32 0.03125, %v1819_v26 }
 0x7cc   :  { %1935 = vst [vmem:[%s4061_s14 + $0x28] sm:$0xff] %v1919_v16  ;;  %v1918_v48 = vadd.f32 %v3949_v51, %v1896_v6  ;;  %v1899_v42 = vmul.f32 %v3943_v15, %v1877_v28  ;;  %v1876_v39 = vmul.f32 %v2693_v40, %v3889_v13 }
 0x7cd   :  { %v2695_v14 = vpop.eup %2694  ;;  %2706 = vrsqrt.f32 %v1853_v55  ;;  %v1852_v9 = vadd.f32 1e-05, %v1836_v60 }
 0x7ce   :  { %1934 = vst [vmem:[%s4061_s14 + $0x20] sm:$0xff] %v1918_v48  ;;  %v1921_v49 = vadd.f32 %v3949_v51, %v1899_v42  ;;  %v1898_v53 = vmul.f32 %v3943_v15, %v1876_v39  ;;  %v1879_v45 = vmul.f32 %v2695_v14, %v3892_v33 }
 0x7cf   :  { %v2697_v8 = vpop.eup %2696  ;;  %2708 = vrsqrt.f32 %v1852_v9 }
 0x7d0   :  { %1937 = vst [vmem:[%s4061_s14 + $0x38] sm:$0xff] %v1921_v49  ;;  %v1920_v13 = vadd.f32 %v3949_v51, %v1898_v53  ;;  %v1901_v18 = vmul.f32 %v3943_v15, %v1879_v45  ;;  %v1878_v46 = vmul.f32 %v2697_v8, %v3898_v7 }
 0x7d2   :  { %v2699_v3 = vpop.eup %2698  ;;  %1936 = vst [vmem:[%s4061_s14 + $0x30] sm:$0xff] %v1920_v13  ;;  %v1923_v59 = vadd.f32 %v3949_v51, %v1901_v18  ;;  %v1900_v33 = vmul.f32 %v3943_v15, %v1878_v46 }
 0x7d3   :  { %v1881_v19 = vmul.f32 %v2699_v3, %v3906_v38 }
 0x7d4   :  { %v2701_v47 = vpop.eup %2700  ;;  %1939 = vst [vmem:[%s4061_s14 + $0x48] sm:$0xff] %v1923_v59  ;;  %v1922_v54 = vadd.f32 %v3949_v51, %v1900_v33 }
 0x7d5   :  { %v1903_v7 = vmul.f32 %v3943_v15, %v1881_v19  ;;  %v1880_v11 = vmul.f32 %v2701_v47, %v3910_v50 }
 0x7d6   :  { %v2703_v21 = vpop.eup %2702  ;;  %1938 = vst [vmem:[%s4061_s14 + $0x40] sm:$0xff] %v1922_v54 }
 0x7d7   :  { %v1925_v30 = vadd.f32 %v3949_v51, %v1903_v7  ;;  %v1902_v38 = vmul.f32 %v3943_v15, %v1880_v11  ;;  %v1883_v22 = vmul.f32 %v2703_v21, %v3916_v52 }
 0x7d8   :  { %v2705_v35 = vpop.eup %2704 }
 0x7d9   :  { %1941 = vst [vmem:[%s4061_s14 + $0x58] sm:$0xff] %v1925_v30  ;;  %v1924_v44 = vadd.f32 %v3949_v51, %v1902_v38  ;;  %v1905_v50 = vmul.f32 %v3943_v15, %v1883_v22  ;;  %v1882_v57 = vmul.f32 %v2705_v35, %v3922_v36 }
 0x7da   :  { %v2707_v37 = vpop.eup %2706 }
 0x7db   :  { %1940 = vst [vmem:[%s4061_s14 + $0x50] sm:$0xff] %v1924_v44  ;;  %v1927_v34 = vadd.f32 %v3949_v51, %v1905_v50  ;;  %v1904_v52 = vmul.f32 %v3943_v15, %v1882_v57  ;;  %v1885_v0 = vmul.f32 %v2707_v37, %v3928_v25 }
 0x7dc   :  { %v2709_v10 = vpop.eup %2708 }
 0x7dd   :  { %1943 = vst [vmem:[%s4061_s14 + $0x68] sm:$0xff] %v1927_v34  ;;  %v1926_v2 = vadd.f32 %v3949_v51, %v1904_v52  ;;  %v1907_v36 = vmul.f32 %v3943_v15, %v1885_v0  ;;  %v1884_v43 = vmul.f32 %v2709_v10, %v3934_v20 }
 0x7df   :  { %1942 = vst [vmem:[%s4061_s14 + $0x60] sm:$0xff] %v1926_v2  ;;  %v1929_v24 = vadd.f32 %v3949_v51, %v1907_v36  ;;  %v1906_v12 = vmul.f32 %v3943_v15, %v1884_v43 }
 0x7e1   :  { %1945 = vst [vmem:[%s4061_s14 + $0x78] sm:$0xff] %v1929_v24  ;;  %v1928_v25 = vadd.f32 %v3949_v51, %v1906_v12 }
 0x7e3   :  { %1944 = vst [vmem:[%s4061_s14 + $0x70] sm:$0xff] %v1928_v25 }

</bundles_post_ra>
